<compile_context>
chip_gen: v7x
topology: tpu7x:2x2x1
jax: 0.10.0
libtpu: 0.0.40
codegen_flags: <defaults>
</compile_context>

<pallas_src>
import jax
import jax.numpy as jnp
from jax import lax
from jax.experimental import pallas as pl
from jax.experimental.pallas import tpu as pltpu


# ----------------------------------------------------------------------------
# helpers
# ----------------------------------------------------------------------------
def _round_up(x, m):
    return (x + m - 1) // m * m


def _pad2(a, rows, cols):
    return jnp.pad(a, ((0, rows - a.shape[0]), (0, cols - a.shape[1])))


def _vmem_capacity_bytes():
    try:
        cap = int(pltpu.get_tpu_info().vmem_capacity_bytes)
        if cap >= 16 * 1024 * 1024:
            return cap
    except Exception:
        pass
    return 64 * 1024 * 1024          # conservative (v7x-sized) fallback


def _pick_tiles(n):
    """Generation-aware tiles + VMEM limit.
    TK (column tile) is fat to amortize per-step overhead; TM keeps the double-
    buffered int8 adjacency slab within ~1/4 of physical VMEM; the row axis is
    guaranteed >= 2 tiles so the 'parallel' grid axis can split across cores."""
    vmem = _vmem_capacity_bytes()
    vmem_limit = int(max(32 * 2**20, min(vmem - 8 * 2**20, 100 * 2**20)))
    np0 = _round_up(max(n, 1), 128)
    tk_max = 2048 if vmem >= 96 * 2**20 else 1024
    if np0 <= tk_max:
        npad = np0
        tk = np0
        tm = 512 if npad % 512 == 0 else (256 if npad % 256 == 0 else 128)
        tm = min(tm, npad)
    else:
        tk = tk_max
        budget = vmem // 4                              # 2 bufs * 2*TM * TK * 1 B
        tm = budget // (4 * tk)
        tm = 512 if tm >= 512 else (256 if tm >= 256 else 128)
        npad = _round_up(n, tk)
    if npad // tm < 2:                                  # megacore / v7x 2-TC split
        tm = max(8, npad // 2)
    return tm, tk, npad, vmem_limit


# ----------------------------------------------------------------------------
# Per-layer ADiGCNConv kernel: (row-tile, K-tile) grid with sparse tile skipping
# ----------------------------------------------------------------------------
def adigcn_layer_kernel(ktab_ref, kcnt_ref,
                        adj_ref, hk_ref, hown_ref, rs_ref, aux_ref,
                        wcat_ref, bcat_ref, wflt_ref, xjkp_ref, cprev_ref,
                        y_ref, xjk_ref, cacc_ref,
                        acc_ref):
    i = pl.program_id(0)
    k = pl.program_id(1)
    nk = pl.num_programs(1)
    tm = y_ref.shape[0]

    @pl.when(k == 0)
    def _init():
        acc_ref[...] = jnp.zeros_like(acc_ref)

    # accumulate only over non-empty adjacency column tiles (compacted ktab)
    @pl.when(k < kcnt_ref[i])
    def _accum():
        adj_bf = adj_ref[...].astype(jnp.float32).astype(jnp.bfloat16)
        acc_ref[...] += jnp.dot(adj_bf, hk_ref[...],
                                preferred_element_type=jnp.float32)

    @pl.when(k == nk - 1)
    def _epilogue():
        agg = acc_ref[...] * rs_ref[...]                 # int8 dequant (per-row scale)
        out_nei = agg[:tm]
        in_nei = agg[tm:]
        x_bf = hown_ref[...]
        x_f = x_bf.astype(jnp.float32)
        aux = aux_ref[...]                               # masks(4) | emb.w+b (2) | 0 0

        # degree-filter logits on VPU/XLU (no 1-lane MXU matmul)
        logit_out = (jnp.sum((out_nei - x_f) * wflt_ref[0:1, :], axis=-1,
                             keepdims=True) + aux[:, 4:5])
        logit_in = (jnp.sum((in_nei - x_f) * wflt_ref[1:2, :], axis=-1,
                            keepdims=True) + aux[:, 5:6])

        # 2-way softmax (exact divide; these values are returned to the caller)
        m = jnp.maximum(logit_out, logit_in)
        e_out = jnp.exp(logit_out - m)
        e_in = jnp.exp(logit_in - m)
        den = e_out + e_in
        c_out = (e_out / den) * aux[:, 0:1] + aux[:, 1:2]
        c_in = (e_in / den) * aux[:, 2:3] + aux[:, 3:4]

        # fused output linear: [c_out*out_nei | c_in*in_nei | x] @ [Wsd; Wds; a*Wfc]
        lhs = jnp.concatenate(
            [(c_out * out_nei).astype(jnp.bfloat16),
             (c_in * in_nei).astype(jnp.bfloat16),
             x_bf], axis=1)
        y = jnp.dot(lhs, wcat_ref[...], preferred_element_type=jnp.float32)
        y = (y + c_out * bcat_ref[0:1, :] + c_in * bcat_ref[1:2, :]
             + bcat_ref[2:3, :])
        y = jnp.maximum(y, 0.0)                          # relu on every layer (JK truthy)

        y_ref[...] = y.astype(jnp.bfloat16)              # next layer's input
        xjk_ref[...] = jnp.maximum(xjkp_ref[...], y)     # JK 'max' running max

        col = lax.broadcasted_iota(jnp.int32, (tm, cacc_ref.shape[1]), 1)
        c_pair = jnp.where(col == 0, c_out, jnp.where(col == 1, c_in, 0.0))
        cacc_ref[...] = cprev_ref[...] + c_pair          # lanes 0/1 = running C sums


def adigcn_layer(ktab, kcnt, adj_q, rscale, h, aux, wcat, bcat, wflt,
                 xjk_prev, c_prev, *, tm, tk, nk, vmem_limit):
    npad, fpi = h.shape
    fpo = wcat.shape[1]
    nt = npad // tm

    def adj_map(i, k, kt, kc):
        return (i, kt[i * nk + k])

    def hk_map(i, k, kt, kc):
        return (kt[i * nk + k], 0)

    def row_map(i, k, kt, kc):
        return (i, 0)

    def const_map(i, k, kt, kc):
        return (0, 0)

    grid_spec = pltpu.PrefetchScalarGridSpec(
        num_scalar_prefetch=2,
        grid=(nt, nk),
        in_specs=[
            pl.BlockSpec((2 * tm, tk), adj_map),         # int8 stacked [adj; adjT] tile
            pl.BlockSpec((tk, fpi), hk_map),             # streamed h K-tile (bf16)
            pl.BlockSpec((tm, fpi), row_map),            # this row-tile's own features
            pl.BlockSpec((2 * tm, 1), row_map),          # per-row dequant scales
            pl.BlockSpec((tm, 8), row_map),              # masks + (emb.w + b) scalars
            pl.BlockSpec((3 * fpi, fpo), const_map),     # [Wsd; Wds; alpha*Wfc] bf16
            pl.BlockSpec((3, fpo), const_map),           # [bsd; bds; alpha*bfc]
            pl.BlockSpec((2, fpi), const_map),           # [w_outf^T; w_inf^T]
            pl.BlockSpec((tm, fpo), row_map),            # running JK max (prev)
            pl.BlockSpec((tm, 128), row_map),            # running C sums (prev, lane-dense)
        ],
        out_specs=(
            pl.BlockSpec((tm, fpo), row_map),
            pl.BlockSpec((tm, fpo), row_map),
            pl.BlockSpec((tm, 128), row_map),
        ),
        scratch_shapes=[pltpu.VMEM((2 * tm, fpi), jnp.float32)],
    )
    return pl.pallas_call(
        adigcn_layer_kernel,
        grid_spec=grid_spec,
        out_shape=(
            jax.ShapeDtypeStruct((npad, fpo), jnp.bfloat16),   # y (next-layer h)
            jax.ShapeDtypeStruct((npad, fpo), jnp.float32),    # JK running max
            jax.ShapeDtypeStruct((npad, 128), jnp.float32),    # [C_out, C_in, 0...] sums
        ),
        compiler_params=pltpu.CompilerParams(
            dimension_semantics=("parallel", "arbitrary"),
            vmem_limit_bytes=vmem_limit),
    )(ktab, kcnt, adj_q, h, h, rscale, aux, wcat, bcat, wflt, xjk_prev, c_prev)


# ----------------------------------------------------------------------------
# Edge-pair classifier head: per-node projection + one-hot gather + log_softmax
# ----------------------------------------------------------------------------
def node_proj_kernel(x_ref, w_ref, z_ref):
    z_ref[...] = jnp.dot(x_ref[...].astype(jnp.bfloat16), w_ref[...],
                         preferred_element_type=jnp.float32).astype(jnp.bfloat16)


def node_proj(x_jk, w_head, *, tm, vmem_limit):
    npad, fph = x_jk.shape
    cp2 = w_head.shape[1]
    return pl.pallas_call(
        node_proj_kernel,
        grid=(npad // tm,),
        in_specs=[pl.BlockSpec((tm, fph), lambda i: (i, 0)),
                  pl.BlockSpec((fph, cp2), lambda i: (0, 0))],
        out_specs=pl.BlockSpec((tm, cp2), lambda i: (i, 0)),
        out_shape=jax.ShapeDtypeStruct((npad, cp2), jnp.bfloat16),
        compiler_params=pltpu.CompilerParams(
            dimension_semantics=("parallel",),
            vmem_limit_bytes=vmem_limit),
    )(x_jk, w_head)


def edge_head_kernel(idx_ref, z_ref, b_ref, o_ref):
    te, cp = o_ref.shape
    npad = z_ref.shape[0]
    idx = idx_ref[...]                                   # (te, 128) int32; lanes 0/1 used
    cols = lax.broadcasted_iota(jnp.int32, (te, npad), 1)
    oh_s = jnp.where(cols == idx[:, 0:1], 1.0, 0.0).astype(jnp.bfloat16)
    oh_d = jnp.where(cols == idx[:, 1:2], 1.0, 0.0).astype(jnp.bfloat16)
    z_all = z_ref[...]                                   # (npad, 2*cp) bf16, VMEM resident
    z = (jnp.dot(oh_s, z_all[:, :cp], preferred_element_type=jnp.float32)
         + jnp.dot(oh_d, z_all[:, cp:], preferred_element_type=jnp.float32)
         + b_ref[...])
    m = jnp.max(z, axis=1, keepdims=True)
    lse = jnp.log(jnp.sum(jnp.exp(z - m), axis=1, keepdims=True)) + m
    o_ref[...] = z - lse


def edge_head(idx, z_nodes, b_head, *, te, vmem_limit):
    e_pad = idx.shape[0]
    npad, cp2 = z_nodes.shape
    cp = cp2 // 2
    return pl.pallas_call(
        edge_head_kernel,
        grid=(e_pad // te,),
        in_specs=[pl.BlockSpec((te, 128), lambda e: (e, 0)),
                  pl.BlockSpec((npad, cp2), lambda e: (0, 0)),
                  pl.BlockSpec((1, cp), lambda e: (0, 0))],
        out_specs=pl.BlockSpec((te, cp), lambda e: (e, 0)),
        out_shape=jax.ShapeDtypeStruct((e_pad, cp), jnp.float32),
        compiler_params=pltpu.CompilerParams(
            dimension_semantics=("parallel",),
            vmem_limit_bytes=vmem_limit),
    )(idx, z_nodes, b_head)


# ----------------------------------------------------------------------------
# Glue: graph normalization, parameter init, full forward, pure-JAX reference
# ----------------------------------------------------------------------------
def directed_norm(adj):
    """D_out^{-1/2} A D_in^{-1/2} (Dir-GNN 'dir' norm)."""
    out_deg = adj.sum(axis=1)
    in_deg = adj.sum(axis=0)
    out_inv = jnp.where(out_deg > 0, out_deg ** -0.5, 0.0)
    in_inv = jnp.where(in_deg > 0, in_deg ** -0.5, 0.0)
    return out_inv[:, None] * adj * in_inv[None, :]


def init_linear(key, fin, fout, scale=0.1):
    kw, kb = jax.random.split(key)
    w = scale * jax.random.normal(kw, (fin, fout), jnp.float32)
    b = scale * jax.random.normal(kb, (1, fout), jnp.float32)
    return w, b


def init_layer_params(key, fin, fout, max_in_deg, max_out_deg):
    keys = jax.random.split(key, 7)
    p = {}
    p["w_sd"], p["b_sd"] = init_linear(keys[0], fin, fout)
    p["w_ds"], p["b_ds"] = init_linear(keys[1], fin, fout)
    p["w_fc"], p["b_fc"] = init_linear(keys[2], fin, fout)
    p["w_inf"], p["b_inf"] = init_linear(keys[3], fin, 1)
    p["w_outf"], p["b_outf"] = init_linear(keys[4], fin, 1)
    emb_in = 0.1 * jax.random.normal(keys[5], (max_in_deg + 1, fin), jnp.float32)
    emb_out = 0.1 * jax.random.normal(keys[6], (max_out_deg + 1, fin), jnp.float32)
    p["emb_in_table"] = emb_in.at[0].set(0.0)     # nn.Embedding padding_idx=0
    p["emb_out_table"] = emb_out.at[0].set(0.0)
    return p


def gnn_forward(x, adj_n, adjt_n, in_deg, out_deg, masks, layer_params,
                lin_w, lin_b, ind_edge, alpha):
    num_layers = len(layer_params)
    n = x.shape[0]
    tm, tk, npad, vmem_limit = _pick_tiles(n)
    nt = npad // tm
    nk = npad // tk

    hid = layer_params[0]["w_sd"].shape[1]
    fp0 = _round_up(x.shape[1], 128)
    fph = _round_up(hid, 128)

    # ---- stacked directed adjacency, int8 with per-row scale (once per graph)
    adj_p = _pad2(adj_n, npad, npad)
    adjt_p = _pad2(adjt_n, npad, npad)
    adj_stack = jnp.concatenate(
        [adj_p.reshape(nt, tm, npad), adjt_p.reshape(nt, tm, npad)],
        axis=1).reshape(2 * npad, npad)
    row_max = jnp.max(jnp.abs(adj_stack), axis=1)
    rscale = jnp.where(row_max > 0, row_max / 127.0, 1.0).astype(jnp.float32)
    adj_q = jnp.round(adj_stack / rscale[:, None]).astype(jnp.int8)
    rscale = rscale[:, None]                                        # (2*npad, 1)

    # ---- compacted per-row-tile list of non-empty column tiles (sparse skip)
    occ = jnp.abs(adj_stack).reshape(nt, 2 * tm, nk, tk).sum(axis=(1, 3)) > 0
    ar = jnp.arange(nk, dtype=jnp.int32)
    order = jnp.argsort(jnp.where(occ, ar[None, :], nk + ar[None, :]), axis=1)
    kcnt = occ.sum(axis=1).astype(jnp.int32)
    pos = jnp.minimum(ar[None, :], jnp.maximum(kcnt[:, None] - 1, 0))
    ktab = jnp.take_along_axis(order.astype(jnp.int32), pos, axis=1).reshape(-1)

    mask_cols = jnp.stack(
        [masks["out_deg_mask"], masks["out_deg_mask_bias"],
         masks["in_deg_mask"], masks["in_deg_mask_bias"]],
        axis=1).astype(jnp.float32)                                 # (n, 4)
    a = alpha[0, 0]

    h = _pad2(x, npad, fp0).astype(jnp.bfloat16)
    x_jk = jnp.zeros((npad, fph), jnp.float32)
    c_acc = jnp.zeros((npad, 128), jnp.float32)

    for p in layer_params:
        fin, fout = p["w_sd"].shape
        fpi = _round_up(fin, 128)
        fpo = _round_up(fout, 128)
        wcat = jnp.concatenate(
            [_pad2(p["w_sd"], fpi, fpo),
             _pad2(p["w_ds"], fpi, fpo),
             _pad2(a * p["w_fc"], fpi, fpo)], axis=0).astype(jnp.bfloat16)
        bcat = jnp.concatenate(
            [_pad2(p["b_sd"], 1, fpo),
             _pad2(p["b_ds"], 1, fpo),
             _pad2(a * p["b_fc"], 1, fpo)], axis=0).astype(jnp.float32)
        wflt = jnp.concatenate(
            [_pad2(p["w_outf"].T, 1, fpi),
             _pad2(p["w_inf"].T, 1, fpi)], axis=0).astype(jnp.float32)
        # exact refactor: filter(v - x + emb) = filter(v - x) + (emb @ w + b);
        # ship two per-node scalars instead of a (2, Npad, F) embedding tensor.
        e_out = p["emb_out_table"][out_deg] @ p["w_outf"] + p["b_outf"]   # (n, 1)
        e_in = p["emb_in_table"][in_deg] @ p["w_inf"] + p["b_inf"]        # (n, 1)
        aux = jnp.concatenate(
            [mask_cols, e_out, e_in, jnp.zeros((n, 2), jnp.float32)], axis=1)
        aux = jnp.pad(aux, ((0, npad - n), (0, 0)))
        h, x_jk, c_acc = adigcn_layer(
            ktab, kcnt, adj_q, rscale, h, aux, wcat, bcat, wflt, x_jk, c_acc,
            tm=tm, tk=tk, nk=nk, vmem_limit=vmem_limit)

    C_outs = c_acc[:n, 0:1] / num_layers
    C_ins = c_acc[:n, 1:2] / num_layers

    # ---- edge-pair classifier head ------------------------------------------
    # cat((x[s], x[d]), -1) @ W + b == (x @ W[:H])[s] + (x @ W[H:])[d] + b
    ncls = lin_w.shape[1]
    cp = _round_up(ncls, 128)
    w_head = jnp.concatenate(
        [_pad2(lin_w[:hid], fph, cp), _pad2(lin_w[hid:], fph, cp)],
        axis=1).astype(jnp.bfloat16)                                 # (fph, 2*cp)
    b_head = jnp.full((1, cp), -1e30, jnp.float32).at[:, :ncls].set(lin_b[0])

    z_nodes = node_proj(x_jk, w_head, tm=tm, vmem_limit=vmem_limit)  # (npad, 2*cp)

    te = 128
    e = ind_edge.shape[1]
    e_pad = _round_up(e, te)
    idx = jnp.zeros((e_pad, 128), jnp.int32)
    idx = idx.at[:e, 0].set(ind_edge[0].astype(jnp.int32))
    idx = idx.at[:e, 1].set(ind_edge[1].astype(jnp.int32))

    logp = edge_head(idx, z_nodes, b_head, te=te, vmem_limit=vmem_limit)
    return logp[:e, :ncls], C_ins, C_outs


def reference_forward(x, adj_n, adjt_n, in_deg, out_deg, masks, layer_params,
                      lin_w, lin_b, ind_edge, alpha):
    """Pure-JAX f32 reference mirroring the PyTorch module (eval mode)."""
    a = alpha[0, 0]
    h = x
    xs = []
    C_ins = C_outs = None
    for i, p in enumerate(layer_params):
        out_nei = adj_n @ h
        in_nei = adjt_n @ h
        lo = (out_nei - h + p["emb_out_table"][out_deg]) @ p["w_outf"] + p["b_outf"]
        li = (in_nei - h + p["emb_in_table"][in_deg]) @ p["w_inf"] + p["b_inf"]
        cc = jax.nn.softmax(jnp.concatenate([lo, li], axis=1), axis=1)
        C_out = cc[:, 0:1] * masks["out_deg_mask"][:, None] + masks["out_deg_mask_bias"][:, None]
        C_in = cc[:, 1:2] * masks["in_deg_mask"][:, None] + masks["in_deg_mask_bias"][:, None]
        h = (C_out * (out_nei @ p["w_sd"] + p["b_sd"])
             + C_in * (in_nei @ p["w_ds"] + p["b_ds"])
             + a * (h @ p["w_fc"] + p["b_fc"]))
        h = jax.nn.relu(h)
        xs.append(h)
        C_ins = C_in if i == 0 else C_ins + C_in
        C_outs = C_out if i == 0 else C_outs + C_out
    L = len(layer_params)
    C_ins = C_ins / L
    C_outs = C_outs / L
    xjk = jnp.stack(xs, axis=0).max(axis=0)
    feat = jnp.concatenate([xjk[ind_edge[0]], xjk[ind_edge[1]]], axis=1)
    logits = feat @ lin_w + lin_b
    return jax.nn.log_softmax(logits, axis=1), C_ins, C_outs


if __name__ == "__main__":
    key = jax.random.PRNGKey(0)
    N, F, HID, NCLS, L = 16, 8, 32, 4, 2          # nodes, features, hidden, classes, layers
    E, E_IND = 40, 8

    k_x, k_e, k_ie, k_p = jax.random.split(key, 4)
    x = jax.random.normal(k_x, (N, F), jnp.float32)
    edge_index = jax.random.randint(k_e, (2, E), 0, N)
    ind_edge = jax.random.randint(k_ie, (2, E_IND), 0, N)

    # dense adjacency + directed normalization (precomputed, static graph)
    adj = jnp.zeros((N, N), jnp.float32).at[edge_index[0], edge_index[1]].add(1.0)
    adj_n = directed_norm(adj)
    adjt_n = directed_norm(adj.T)

    out_deg = adj.sum(axis=1).astype(jnp.int32)
    in_deg = adj.sum(axis=0).astype(jnp.int32)
    max_out_deg = int(out_deg.max())
    max_in_deg = int(in_deg.max())

    masks = {
        "out_deg_mask": (out_deg > 0).astype(jnp.float32),
        "out_deg_mask_bias": (out_deg == 0).astype(jnp.float32),
        "in_deg_mask": (in_deg > 0).astype(jnp.float32),
        "in_deg_mask_bias": (in_deg == 0).astype(jnp.float32),
    }

    # layer dims: F->HID, HID->HID (jumping_knowledge truthy -> output_dim = hidden_dim)
    dims = [(F, HID)] + [(HID, HID)] * (L - 1)
    pkeys = jax.random.split(k_p, L + 1)
    layer_params = [init_layer_params(pkeys[i], fi, fo, max_in_deg, max_out_deg)
                    for i, (fi, fo) in enumerate(dims)]
    lin_w, lin_b = init_linear(pkeys[L], 2 * HID, NCLS)

    alpha = jnp.full((1, 1), 0.5, jnp.float32)

    fwd = jax.jit(gnn_forward)
    logp, C_ins, C_outs = fwd(x, adj_n, adjt_n, in_deg, out_deg, masks,
                              layer_params, lin_w, lin_b, ind_edge, alpha)
    jax.block_until_ready((logp, C_ins, C_outs))

    # pure-JAX reference check (bf16/int8-quantized kernel vs f32 reference)
    logp_ref, cin_ref, cout_ref = reference_forward(
        x, adj_n, adjt_n, in_deg, out_deg, masks, layer_params,
        lin_w, lin_b, ind_edge, alpha)

    assert logp.shape == (E_IND, NCLS)
    assert C_ins.shape == (N, 1) and C_outs.shape == (N, 1)
    assert bool(jnp.allclose(jnp.exp(logp).sum(axis=1), 1.0, atol=1e-3))
    assert bool(jnp.allclose(logp, logp_ref, atol=5e-2, rtol=5e-2))
    assert bool(jnp.allclose(C_ins, cin_ref, atol=3e-2, rtol=3e-2))
    assert bool(jnp.allclose(C_outs, cout_ref, atol=3e-2, rtol=3e-2))
    print("KERNEL_OK")
</pallas_src>

<mosaic_0001>
module attributes {stable_mosaic.version = 11 : i64} {
  func.func @adigcn_layer_kernel(%arg0: i32, %arg1: i32, %arg2: memref<2xi32, #tpu.memory_space<smem>>, %arg3: memref<2xi32, #tpu.memory_space<smem>>, %arg4: memref<128x128xi8, #tpu.memory_space<vmem>>, %arg5: memref<128x128xbf16, #tpu.memory_space<vmem>>, %arg6: memref<64x128xbf16, #tpu.memory_space<vmem>>, %arg7: memref<128x1xf32, #tpu.memory_space<vmem>>, %arg8: memref<64x8xf32, #tpu.memory_space<vmem>>, %arg9: memref<384x128xbf16, #tpu.memory_space<vmem>>, %arg10: memref<3x128xf32, #tpu.memory_space<vmem>>, %arg11: memref<2x128xf32, #tpu.memory_space<vmem>>, %arg12: memref<64x128xf32, #tpu.memory_space<vmem>>, %arg13: memref<64x128xf32, #tpu.memory_space<vmem>>, %arg14: memref<64x128xbf16, #tpu.memory_space<vmem>>, %arg15: memref<64x128xf32, #tpu.memory_space<vmem>>, %arg16: memref<64x128xf32, #tpu.memory_space<vmem>>, %arg17: memref<128x128xf32, #tpu.memory_space<vmem>>) attributes {dimension_semantics = [#tpu.dimension_semantics<parallel>, #tpu.dimension_semantics<arbitrary>], iteration_bounds = array<i64: 2, 1>, scalar_prefetch = 2 : i64, scratch_operands = 1 : i64, tpu.core_type = #tpu.core_type<tc>, window_params = [{transform_indices = @transform_0, window_bounds = array<i64: 128, 128>}, {transform_indices = @transform_1, window_bounds = array<i64: 128, 128>}, {transform_indices = @transform_2, window_bounds = array<i64: 64, 128>}, {transform_indices = @transform_3, window_bounds = array<i64: 128, 1>}, {transform_indices = @transform_4, window_bounds = array<i64: 64, 8>}, {pipeline_mode = #tpu.pipeline_mode<synchronous>, transform_indices = @transform_5, window_bounds = array<i64: 384, 128>}, {pipeline_mode = #tpu.pipeline_mode<synchronous>, transform_indices = @transform_6, window_bounds = array<i64: 3, 128>}, {pipeline_mode = #tpu.pipeline_mode<synchronous>, transform_indices = @transform_7, window_bounds = array<i64: 2, 128>}, {transform_indices = @transform_8, window_bounds = array<i64: 64, 128>}, {transform_indices = @transform_9, window_bounds = array<i64: 64, 128>}, {transform_indices = @transform_10, window_bounds = array<i64: 64, 128>}, {transform_indices = @transform_11, window_bounds = array<i64: 64, 128>}, {transform_indices = @transform_12, window_bounds = array<i64: 64, 128>}]} {
    %c0_i32 = arith.constant 0 : i32
    %0 = arith.cmpi eq, %arg1, %c0_i32 : i32
    %1 = arith.extui %0 : i1 to i32
    %c0_i32_0 = arith.constant 0 : i32
    %2 = arith.cmpi ne, %1, %c0_i32_0 : i32
    scf.if %2 {
      %cst = arith.constant 0.000000e+00 : f32
      %11 = vector.broadcast %cst : f32 to vector<128x128xf32>
      %c0 = arith.constant 0 : index
      %c0_4 = arith.constant 0 : index
      %12 = vector.load %arg17[%c0, %c0_4] : memref<128x128xf32, #tpu.memory_space<vmem>>, vector<128x128xf32>
      tpu.vector_store %arg17[%c0, %c0_4], %11 {strides = array<i32>} : memref<128x128xf32, #tpu.memory_space<vmem>>, vector<128x128xf32>,
    } else {
    }
    %3 = arith.index_cast %arg0 : i32 to index
    %4 = memref.load %arg3[%3] : memref<2xi32, #tpu.memory_space<smem>>
    %5 = arith.cmpi slt, %arg1, %4 : i32
    %6 = arith.extui %5 : i1 to i32
    %c0_i32_1 = arith.constant 0 : i32
    %7 = arith.cmpi ne, %6, %c0_i32_1 : i32
    scf.if %7 {
      %c0 = arith.constant 0 : index
      %c0_4 = arith.constant 0 : index
      %11 = vector.load %arg4[%c0, %c0_4] : memref<128x128xi8, #tpu.memory_space<vmem>>, vector<128x128xi8>
      %12 = arith.sitofp %11 : vector<128x128xi8> to vector<128x128xf32>
      %13 = arith.truncf %12 : vector<128x128xf32> to vector<128x128xbf16>
      %c0_5 = arith.constant 0 : index
      %c0_6 = arith.constant 0 : index
      %14 = vector.load %arg17[%c0_5, %c0_6] : memref<128x128xf32, #tpu.memory_space<vmem>>, vector<128x128xf32>
      %c0_7 = arith.constant 0 : index
      %c0_8 = arith.constant 0 : index
      %15 = vector.load %arg5[%c0_7, %c0_8] : memref<128x128xbf16, #tpu.memory_space<vmem>>, vector<128x128xbf16>
      %cst = arith.constant dense<0.000000e+00> : vector<128x128xf32>
      %16 = tpu.matmul %13, %15, %cst {dimension_numbers = #tpu.dot_dimension_numbers<[1], [0], [0], [1], [0, 0, 1, 1], [], []>} : vector<128x128xbf16>, vector<128x128xbf16>, vector<128x128xf32> -> vector<128x128xf32>
      %17 = arith.addf %14, %16 : vector<128x128xf32>
      %c0_9 = arith.constant 0 : index
      %c0_10 = arith.constant 0 : index
      %18 = vector.load %arg17[%c0_9, %c0_10] : memref<128x128xf32, #tpu.memory_space<vmem>>, vector<128x128xf32>
      tpu.vector_store %arg17[%c0_9, %c0_10], %17 {strides = array<i32>} : memref<128x128xf32, #tpu.memory_space<vmem>>, vector<128x128xf32>,
    } else {
    }
    %c0_i32_2 = arith.constant 0 : i32
    %8 = arith.cmpi eq, %arg1, %c0_i32_2 : i32
    %9 = arith.extui %8 : i1 to i32
    %c0_i32_3 = arith.constant 0 : i32
    %10 = arith.cmpi ne, %9, %c0_i32_3 : i32
    scf.if %10 {
      %c0 = arith.constant 0 : index
      %c0_4 = arith.constant 0 : index
      %11 = vector.load %arg17[%c0, %c0_4] : memref<128x128xf32, #tpu.memory_space<vmem>>, vector<128x128xf32>
      %c0_5 = arith.constant 0 : index
      %c0_6 = arith.constant 0 : index
      %12 = vector.load %arg7[%c0_5, %c0_6] : memref<128x1xf32, #tpu.memory_space<vmem>>, vector<128x1xf32>
      %13 = vector.broadcast %12 : vector<128x1xf32> to vector<128x128xf32>
      %14 = arith.mulf %11, %13 : vector<128x128xf32>
      %15 = vector.extract_strided_slice %14 {offsets = [0, 0], sizes = [64, 128], strides = [1, 1]} : vector<128x128xf32> to vector<64x128xf32>
      %16 = vector.extract_strided_slice %14 {offsets = [64, 0], sizes = [64, 128], strides = [1, 1]} : vector<128x128xf32> to vector<64x128xf32>
      %c0_7 = arith.constant 0 : index
      %c0_8 = arith.constant 0 : index
      %17 = vector.load %arg6[%c0_7, %c0_8] : memref<64x128xbf16, #tpu.memory_space<vmem>>, vector<64x128xbf16>
      %18 = arith.extf %17 : vector<64x128xbf16> to vector<64x128xf32>
      %c0_9 = arith.constant 0 : index
      %c0_10 = arith.constant 0 : index
      %19 = vector.load %arg8[%c0_9, %c0_10] : memref<64x8xf32, #tpu.memory_space<vmem>>, vector<64x8xf32>
      %20 = arith.subf %15, %18 : vector<64x128xf32>
      %c0_11 = arith.constant 0 : index
      %c0_12 = arith.constant 0 : index
      %21 = vector.load %arg11[%c0_11, %c0_12] : memref<2x128xf32, #tpu.memory_space<vmem>>, vector<1x128xf32>
      %22 = vector.broadcast %21 : vector<1x128xf32> to vector<64x128xf32>
      %23 = arith.mulf %20, %22 : vector<64x128xf32>
      %cst = arith.constant dense<0.000000e+00> : vector<64xf32>
      %24 = vector.multi_reduction <add>, %23, %cst [1] : vector<64x128xf32> to vector<64xf32>
      %25 = vector.shape_cast %24 : vector<64xf32> to vector<64x1xf32>
      %26 = vector.extract_strided_slice %19 {offsets = [0, 4], sizes = [64, 1], strides = [1, 1]} : vector<64x8xf32> to vector<64x1xf32>
      %27 = arith.addf %25, %26 : vector<64x1xf32>
      %28 = arith.subf %16, %18 : vector<64x128xf32>
      %c1 = arith.constant 1 : index
      %c0_13 = arith.constant 0 : index
      %29 = vector.load %arg11[%c1, %c0_13] : memref<2x128xf32, #tpu.memory_space<vmem>>, vector<1x128xf32>
      %30 = vector.broadcast %29 : vector<1x128xf32> to vector<64x128xf32>
      %31 = arith.mulf %28, %30 : vector<64x128xf32>
      %cst_14 = arith.constant dense<0.000000e+00> : vector<64xf32>
      %32 = vector.multi_reduction <add>, %31, %cst_14 [1] : vector<64x128xf32> to vector<64xf32>
      %33 = vector.shape_cast %32 : vector<64xf32> to vector<64x1xf32>
      %34 = vector.extract_strided_slice %19 {offsets = [0, 5], sizes = [64, 1], strides = [1, 1]} : vector<64x8xf32> to vector<64x1xf32>
      %35 = arith.addf %33, %34 : vector<64x1xf32>
      %36 = arith.maximumf %27, %35 : vector<64x1xf32>
      %37 = arith.subf %27, %36 : vector<64x1xf32>
      %38 = math.exp %37 : vector<64x1xf32>
      %39 = arith.subf %35, %36 : vector<64x1xf32>
      %40 = math.exp %39 : vector<64x1xf32>
      %41 = arith.addf %38, %40 : vector<64x1xf32>
      %42 = arith.divf %38, %41 : vector<64x1xf32>
      %43 = vector.extract_strided_slice %19 {offsets = [0, 0], sizes = [64, 1], strides = [1, 1]} : vector<64x8xf32> to vector<64x1xf32>
      %44 = arith.mulf %42, %43 : vector<64x1xf32>
      %45 = vector.extract_strided_slice %19 {offsets = [0, 1], sizes = [64, 1], strides = [1, 1]} : vector<64x8xf32> to vector<64x1xf32>
      %46 = arith.addf %44, %45 : vector<64x1xf32>
      %47 = arith.divf %40, %41 : vector<64x1xf32>
      %48 = vector.extract_strided_slice %19 {offsets = [0, 2], sizes = [64, 1], strides = [1, 1]} : vector<64x8xf32> to vector<64x1xf32>
      %49 = arith.mulf %47, %48 : vector<64x1xf32>
      %50 = vector.extract_strided_slice %19 {offsets = [0, 3], sizes = [64, 1], strides = [1, 1]} : vector<64x8xf32> to vector<64x1xf32>
      %51 = arith.addf %49, %50 : vector<64x1xf32>
      %52 = vector.broadcast %46 : vector<64x1xf32> to vector<64x128xf32>
      %53 = arith.mulf %52, %15 : vector<64x128xf32>
      %54 = arith.truncf %53 : vector<64x128xf32> to vector<64x128xbf16>
      %55 = vector.broadcast %51 : vector<64x1xf32> to vector<64x128xf32>
      %56 = arith.mulf %55, %16 : vector<64x128xf32>
      %57 = arith.truncf %56 : vector<64x128xf32> to vector<64x128xbf16>
      %58 = tpu.concatenate %54, %57, %17 in 1 : vector<64x128xbf16>, vector<64x128xbf16>, vector<64x128xbf16> -> vector<64x384xbf16>
      %c0_15 = arith.constant 0 : index
      %c0_16 = arith.constant 0 : index
      %59 = vector.load %arg9[%c0_15, %c0_16] : memref<384x128xbf16, #tpu.memory_space<vmem>>, vector<384x128xbf16>
      %cst_17 = arith.constant dense<0.000000e+00> : vector<64x128xf32>
      %60 = tpu.matmul %58, %59, %cst_17 {dimension_numbers = #tpu.dot_dimension_numbers<[1], [0], [0], [1], [0, 0, 1, 1], [], []>} : vector<64x384xbf16>, vector<384x128xbf16>, vector<64x128xf32> -> vector<64x128xf32>
      %c0_18 = arith.constant 0 : index
      %c0_19 = arith.constant 0 : index
      %61 = vector.load %arg10[%c0_18, %c0_19] : memref<3x128xf32, #tpu.memory_space<vmem>>, vector<1x128xf32>
      %62 = vector.broadcast %46 : vector<64x1xf32> to vector<64x128xf32>
      %63 = vector.broadcast %61 : vector<1x128xf32> to vector<64x128xf32>
      %64 = arith.mulf %62, %63 : vector<64x128xf32>
      %65 = arith.addf %60, %64 : vector<64x128xf32>
      %c1_20 = arith.constant 1 : index
      %c0_21 = arith.constant 0 : index
      %66 = vector.load %arg10[%c1_20, %c0_21] : memref<3x128xf32, #tpu.memory_space<vmem>>, vector<1x128xf32>
      %67 = vector.broadcast %51 : vector<64x1xf32> to vector<64x128xf32>
      %68 = vector.broadcast %66 : vector<1x128xf32> to vector<64x128xf32>
      %69 = arith.mulf %67, %68 : vector<64x128xf32>
      %70 = arith.addf %65, %69 : vector<64x128xf32>
      %c2 = arith.constant 2 : index
      %c0_22 = arith.constant 0 : index
      %71 = vector.load %arg10[%c2, %c0_22] : memref<3x128xf32, #tpu.memory_space<vmem>>, vector<1x128xf32>
      %72 = vector.broadcast %71 : vector<1x128xf32> to vector<64x128xf32>
      %73 = arith.addf %70, %72 : vector<64x128xf32>
      %cst_23 = arith.constant 0.000000e+00 : f32
      %74 = vector.broadcast %cst_23 : f32 to vector<64x128xf32>
      %75 = arith.maximumf %73, %74 : vector<64x128xf32>
      %76 = arith.truncf %75 : vector<64x128xf32> to vector<64x128xbf16>
      %c0_24 = arith.constant 0 : index
      %c0_25 = arith.constant 0 : index
      %77 = vector.load %arg14[%c0_24, %c0_25] : memref<64x128xbf16, #tpu.memory_space<vmem>>, vector<64x128xbf16>
      tpu.vector_store %arg14[%c0_24, %c0_25], %76 {strides = array<i32>} : memref<64x128xbf16, #tpu.memory_space<vmem>>, vector<64x128xbf16>,
      %c0_26 = arith.constant 0 : index
      %c0_27 = arith.constant 0 : index
      %78 = vector.load %arg12[%c0_26, %c0_27] : memref<64x128xf32, #tpu.memory_space<vmem>>, vector<64x128xf32>
      %79 = arith.maximumf %78, %75 : vector<64x128xf32>
      %c0_28 = arith.constant 0 : index
      %c0_29 = arith.constant 0 : index
      %80 = vector.load %arg15[%c0_28, %c0_29] : memref<64x128xf32, #tpu.memory_space<vmem>>, vector<64x128xf32>
      tpu.vector_store %arg15[%c0_28, %c0_29], %79 {strides = array<i32>} : memref<64x128xf32, #tpu.memory_space<vmem>>, vector<64x128xf32>,
      %81 = tpu.iota {dimensions = array<i32: 1>} : vector<64x128xi32>
      %c0_i32_30 = arith.constant 0 : i32
      %82 = vector.broadcast %c0_i32_30 : i32 to vector<64x128xi32>
      %83 = arith.cmpi eq, %81, %82 : vector<64x128xi32>
      %c1_i32 = arith.constant 1 : i32
      %84 = vector.broadcast %c1_i32 : i32 to vector<64x128xi32>
      %85 = arith.cmpi eq, %81, %84 : vector<64x128xi32>
      %cst_31 = arith.constant 0.000000e+00 : f32
      %86 = vector.shape_cast %51 : vector<64x1xf32> to vector<64x1xf32>
      %87 = vector.broadcast %86 : vector<64x1xf32> to vector<64x128xf32>
      %88 = vector.broadcast %cst_31 : f32 to vector<64x128xf32>
      %89 = arith.select %85, %87, %88 : vector<64x128xi1>, vector<64x128xf32>
      %90 = vector.shape_cast %46 : vector<64x1xf32> to vector<64x1xf32>
      %91 = vector.broadcast %90 : vector<64x1xf32> to vector<64x128xf32>
      %92 = arith.select %83, %91, %89 : vector<64x128xi1>, vector<64x128xf32>
      %c0_32 = arith.constant 0 : index
      %c0_33 = arith.constant 0 : index
      %93 = vector.load %arg13[%c0_32, %c0_33] : memref<64x128xf32, #tpu.memory_space<vmem>>, vector<64x128xf32>
      %94 = arith.addf %93, %92 : vector<64x128xf32>
      %c0_34 = arith.constant 0 : index
      %c0_35 = arith.constant 0 : index
      %95 = vector.load %arg16[%c0_34, %c0_35] : memref<64x128xf32, #tpu.memory_space<vmem>>, vector<64x128xf32>
      tpu.vector_store %arg16[%c0_34, %c0_35], %94 {strides = array<i32>} : memref<64x128xf32, #tpu.memory_space<vmem>>, vector<64x128xf32>,
    } else {
    }
    return
  }
  func.func @transform_0(%arg0: i32, %arg1: i32, %arg2: memref<2xi32, #tpu.memory_space<smem>>, %arg3: memref<2xi32, #tpu.memory_space<smem>>) -> (i32, i32) {
    %c1_i32 = arith.constant 1 : i32
    %0 = arith.muli %arg0, %c1_i32 : i32
    %1 = arith.addi %0, %arg1 : i32
    %2 = arith.index_cast %1 : i32 to index
    %3 = memref.load %arg2[%2] : memref<2xi32, #tpu.memory_space<smem>>
    %c0_i32 = arith.constant 0 : i32
    return %arg0, %3 : i32, i32
  }
  func.func @transform_1(%arg0: i32, %arg1: i32, %arg2: memref<2xi32, #tpu.memory_space<smem>>, %arg3: memref<2xi32, #tpu.memory_space<smem>>) -> (i32, i32) {
    %c1_i32 = arith.constant 1 : i32
    %0 = arith.muli %arg0, %c1_i32 : i32
    %1 = arith.addi %0, %arg1 : i32
    %2 = arith.index_cast %1 : i32 to index
    %3 = memref.load %arg2[%2] : memref<2xi32, #tpu.memory_space<smem>>
    %c0_i32 = arith.constant 0 : i32
    %c0_i32_0 = arith.constant 0 : i32
    return %3, %c0_i32 : i32, i32
  }
  func.func @transform_2(%arg0: i32, %arg1: i32, %arg2: memref<2xi32, #tpu.memory_space<smem>>, %arg3: memref<2xi32, #tpu.memory_space<smem>>) -> (i32, i32) {
    %c0_i32 = arith.constant 0 : i32
    %c0_i32_0 = arith.constant 0 : i32
    return %arg0, %c0_i32 : i32, i32
  }
  func.func @transform_3(%arg0: i32, %arg1: i32, %arg2: memref<2xi32, #tpu.memory_space<smem>>, %arg3: memref<2xi32, #tpu.memory_space<smem>>) -> (i32, i32) {
    %c0_i32 = arith.constant 0 : i32
    %c0_i32_0 = arith.constant 0 : i32
    return %arg0, %c0_i32 : i32, i32
  }
  func.func @transform_4(%arg0: i32, %arg1: i32, %arg2: memref<2xi32, #tpu.memory_space<smem>>, %arg3: memref<2xi32, #tpu.memory_space<smem>>) -> (i32, i32) {
    %c0_i32 = arith.constant 0 : i32
    %c0_i32_0 = arith.constant 0 : i32
    return %arg0, %c0_i32 : i32, i32
  }
  func.func @transform_5(%arg0: i32, %arg1: i32, %arg2: memref<2xi32, #tpu.memory_space<smem>>, %arg3: memref<2xi32, #tpu.memory_space<smem>>) -> (i32, i32) {
    %c0_i32 = arith.constant 0 : i32
    %c0_i32_0 = arith.constant 0 : i32
    %c0_i32_1 = arith.constant 0 : i32
    return %c0_i32, %c0_i32_0 : i32, i32
  }
  func.func @transform_6(%arg0: i32, %arg1: i32, %arg2: memref<2xi32, #tpu.memory_space<smem>>, %arg3: memref<2xi32, #tpu.memory_space<smem>>) -> (i32, i32) {
    %c0_i32 = arith.constant 0 : i32
    %c0_i32_0 = arith.constant 0 : i32
    %c0_i32_1 = arith.constant 0 : i32
    return %c0_i32, %c0_i32_0 : i32, i32
  }
  func.func @transform_7(%arg0: i32, %arg1: i32, %arg2: memref<2xi32, #tpu.memory_space<smem>>, %arg3: memref<2xi32, #tpu.memory_space<smem>>) -> (i32, i32) {
    %c0_i32 = arith.constant 0 : i32
    %c0_i32_0 = arith.constant 0 : i32
    %c0_i32_1 = arith.constant 0 : i32
    return %c0_i32, %c0_i32_0 : i32, i32
  }
  func.func @transform_8(%arg0: i32, %arg1: i32, %arg2: memref<2xi32, #tpu.memory_space<smem>>, %arg3: memref<2xi32, #tpu.memory_space<smem>>) -> (i32, i32) {
    %c0_i32 = arith.constant 0 : i32
    %c0_i32_0 = arith.constant 0 : i32
    return %arg0, %c0_i32 : i32, i32
  }
  func.func @transform_9(%arg0: i32, %arg1: i32, %arg2: memref<2xi32, #tpu.memory_space<smem>>, %arg3: memref<2xi32, #tpu.memory_space<smem>>) -> (i32, i32) {
    %c0_i32 = arith.constant 0 : i32
    %c0_i32_0 = arith.constant 0 : i32
    return %arg0, %c0_i32 : i32, i32
  }
  func.func @transform_10(%arg0: i32, %arg1: i32, %arg2: memref<2xi32, #tpu.memory_space<smem>>, %arg3: memref<2xi32, #tpu.memory_space<smem>>) -> (i32, i32) {
    %c0_i32 = arith.constant 0 : i32
    %c0_i32_0 = arith.constant 0 : i32
    return %arg0, %c0_i32 : i32, i32
  }
  func.func @transform_11(%arg0: i32, %arg1: i32, %arg2: memref<2xi32, #tpu.memory_space<smem>>, %arg3: memref<2xi32, #tpu.memory_space<smem>>) -> (i32, i32) {
    %c0_i32 = arith.constant 0 : i32
    %c0_i32_0 = arith.constant 0 : i32
    return %arg0, %c0_i32 : i32, i32
  }
  func.func @transform_12(%arg0: i32, %arg1: i32, %arg2: memref<2xi32, #tpu.memory_space<smem>>, %arg3: memref<2xi32, #tpu.memory_space<smem>>) -> (i32, i32) {
    %c0_i32 = arith.constant 0 : i32
    %c0_i32_0 = arith.constant 0 : i32
    return %arg0, %c0_i32 : i32, i32
  }
}

module attributes {stable_mosaic.version = 11 : i64} {
  func.func @adigcn_layer_kernel(%arg0: i32, %arg1: i32, %arg2: memref<2xi32, #tpu.memory_space<smem>>, %arg3: memref<2xi32, #tpu.memory_space<smem>>, %arg4: memref<128x128xi8, #tpu.memory_space<vmem>>, %arg5: memref<128x128xbf16, #tpu.memory_space<vmem>>, %arg6: memref<64x128xbf16, #tpu.memory_space<vmem>>, %arg7: memref<128x1xf32, #tpu.memory_space<vmem>>, %arg8: memref<64x8xf32, #tpu.memory_space<vmem>>, %arg9: memref<384x128xbf16, #tpu.memory_space<vmem>>, %arg10: memref<3x128xf32, #tpu.memory_space<vmem>>, %arg11: memref<2x128xf32, #tpu.memory_space<vmem>>, %arg12: memref<64x128xf32, #tpu.memory_space<vmem>>, %arg13: memref<64x128xf32, #tpu.memory_space<vmem>>, %arg14: memref<64x128xbf16, #tpu.memory_space<vmem>>, %arg15: memref<64x128xf32, #tpu.memory_space<vmem>>, %arg16: memref<64x128xf32, #tpu.memory_space<vmem>>, %arg17: memref<128x128xf32, #tpu.memory_space<vmem>>) attributes {dimension_semantics = [#tpu.dimension_semantics<parallel>, #tpu.dimension_semantics<arbitrary>], iteration_bounds = array<i64: 2, 1>, scalar_prefetch = 2 : i64, scratch_operands = 1 : i64, tpu.core_type = #tpu.core_type<tc>, window_params = [{transform_indices = @transform_0, window_bounds = array<i64: 128, 128>}, {transform_indices = @transform_1, window_bounds = array<i64: 128, 128>}, {transform_indices = @transform_2, window_bounds = array<i64: 64, 128>}, {transform_indices = @transform_3, window_bounds = array<i64: 128, 1>}, {transform_indices = @transform_4, window_bounds = array<i64: 64, 8>}, {pipeline_mode = #tpu.pipeline_mode<synchronous>, transform_indices = @transform_5, window_bounds = array<i64: 384, 128>}, {pipeline_mode = #tpu.pipeline_mode<synchronous>, transform_indices = @transform_6, window_bounds = array<i64: 3, 128>}, {pipeline_mode = #tpu.pipeline_mode<synchronous>, transform_indices = @transform_7, window_bounds = array<i64: 2, 128>}, {transform_indices = @transform_8, window_bounds = array<i64: 64, 128>}, {transform_indices = @transform_9, window_bounds = array<i64: 64, 128>}, {transform_indices = @transform_10, window_bounds = array<i64: 64, 128>}, {transform_indices = @transform_11, window_bounds = array<i64: 64, 128>}, {transform_indices = @transform_12, window_bounds = array<i64: 64, 128>}]} {
    %c0_i32 = arith.constant 0 : i32
    %0 = arith.cmpi eq, %arg1, %c0_i32 : i32
    %1 = arith.extui %0 : i1 to i32
    %c0_i32_0 = arith.constant 0 : i32
    %2 = arith.cmpi ne, %1, %c0_i32_0 : i32
    scf.if %2 {
      %cst = arith.constant 0.000000e+00 : f32
      %11 = vector.broadcast %cst : f32 to vector<128x128xf32>
      %c0 = arith.constant 0 : index
      %c0_4 = arith.constant 0 : index
      %12 = vector.load %arg17[%c0, %c0_4] : memref<128x128xf32, #tpu.memory_space<vmem>>, vector<128x128xf32>
      tpu.vector_store %arg17[%c0, %c0_4], %11 {strides = array<i32>} : memref<128x128xf32, #tpu.memory_space<vmem>>, vector<128x128xf32>,
    } else {
    }
    %3 = arith.index_cast %arg0 : i32 to index
    %4 = memref.load %arg3[%3] : memref<2xi32, #tpu.memory_space<smem>>
    %5 = arith.cmpi slt, %arg1, %4 : i32
    %6 = arith.extui %5 : i1 to i32
    %c0_i32_1 = arith.constant 0 : i32
    %7 = arith.cmpi ne, %6, %c0_i32_1 : i32
    scf.if %7 {
      %c0 = arith.constant 0 : index
      %c0_4 = arith.constant 0 : index
      %11 = vector.load %arg4[%c0, %c0_4] : memref<128x128xi8, #tpu.memory_space<vmem>>, vector<128x128xi8>
      %12 = arith.sitofp %11 : vector<128x128xi8> to vector<128x128xf32>
      %13 = arith.truncf %12 : vector<128x128xf32> to vector<128x128xbf16>
      %c0_5 = arith.constant 0 : index
      %c0_6 = arith.constant 0 : index
      %14 = vector.load %arg17[%c0_5, %c0_6] : memref<128x128xf32, #tpu.memory_space<vmem>>, vector<128x128xf32>
      %c0_7 = arith.constant 0 : index
      %c0_8 = arith.constant 0 : index
      %15 = vector.load %arg5[%c0_7, %c0_8] : memref<128x128xbf16, #tpu.memory_space<vmem>>, vector<128x128xbf16>
      %cst = arith.constant dense<0.000000e+00> : vector<128x128xf32>
      %16 = tpu.matmul %13, %15, %cst {dimension_numbers = #tpu.dot_dimension_numbers<[1], [0], [0], [1], [0, 0, 1, 1], [], []>} : vector<128x128xbf16>, vector<128x128xbf16>, vector<128x128xf32> -> vector<128x128xf32>
      %17 = arith.addf %14, %16 : vector<128x128xf32>
      %c0_9 = arith.constant 0 : index
      %c0_10 = arith.constant 0 : index
      %18 = vector.load %arg17[%c0_9, %c0_10] : memref<128x128xf32, #tpu.memory_space<vmem>>, vector<128x128xf32>
      tpu.vector_store %arg17[%c0_9, %c0_10], %17 {strides = array<i32>} : memref<128x128xf32, #tpu.memory_space<vmem>>, vector<128x128xf32>,
    } else {
    }
    %c0_i32_2 = arith.constant 0 : i32
    %8 = arith.cmpi eq, %arg1, %c0_i32_2 : i32
    %9 = arith.extui %8 : i1 to i32
    %c0_i32_3 = arith.constant 0 : i32
    %10 = arith.cmpi ne, %9, %c0_i32_3 : i32
    scf.if %10 {
      %c0 = arith.constant 0 : index
      %c0_4 = arith.constant 0 : index
      %11 = vector.load %arg17[%c0, %c0_4] : memref<128x128xf32, #tpu.memory_space<vmem>>, vector<128x128xf32>
      %c0_5 = arith.constant 0 : index
      %c0_6 = arith.constant 0 : index
      %12 = vector.load %arg7[%c0_5, %c0_6] : memref<128x1xf32, #tpu.memory_space<vmem>>, vector<128x1xf32>
      %13 = vector.broadcast %12 : vector<128x1xf32> to vector<128x128xf32>
      %14 = arith.mulf %11, %13 : vector<128x128xf32>
      %15 = vector.extract_strided_slice %14 {offsets = [0, 0], sizes = [64, 128], strides = [1, 1]} : vector<128x128xf32> to vector<64x128xf32>
      %16 = vector.extract_strided_slice %14 {offsets = [64, 0], sizes = [64, 128], strides = [1, 1]} : vector<128x128xf32> to vector<64x128xf32>
      %c0_7 = arith.constant 0 : index
      %c0_8 = arith.constant 0 : index
      %17 = vector.load %arg6[%c0_7, %c0_8] : memref<64x128xbf16, #tpu.memory_space<vmem>>, vector<64x128xbf16>
      %18 = arith.extf %17 : vector<64x128xbf16> to vector<64x128xf32>
      %c0_9 = arith.constant 0 : index
      %c0_10 = arith.constant 0 : index
      %19 = vector.load %arg8[%c0_9, %c0_10] : memref<64x8xf32, #tpu.memory_space<vmem>>, vector<64x8xf32>
      %20 = arith.subf %15, %18 : vector<64x128xf32>
      %c0_11 = arith.constant 0 : index
      %c0_12 = arith.constant 0 : index
      %21 = vector.load %arg11[%c0_11, %c0_12] : memref<2x128xf32, #tpu.memory_space<vmem>>, vector<1x128xf32>
      %22 = vector.broadcast %21 : vector<1x128xf32> to vector<64x128xf32>
      %23 = arith.mulf %20, %22 : vector<64x128xf32>
      %cst = arith.constant dense<0.000000e+00> : vector<64xf32>
      %24 = vector.multi_reduction <add>, %23, %cst [1] : vector<64x128xf32> to vector<64xf32>
      %25 = vector.shape_cast %24 : vector<64xf32> to vector<64x1xf32>
      %26 = vector.extract_strided_slice %19 {offsets = [0, 4], sizes = [64, 1], strides = [1, 1]} : vector<64x8xf32> to vector<64x1xf32>
      %27 = arith.addf %25, %26 : vector<64x1xf32>
      %28 = arith.subf %16, %18 : vector<64x128xf32>
      %c1 = arith.constant 1 : index
      %c0_13 = arith.constant 0 : index
      %29 = vector.load %arg11[%c1, %c0_13] : memref<2x128xf32, #tpu.memory_space<vmem>>, vector<1x128xf32>
      %30 = vector.broadcast %29 : vector<1x128xf32> to vector<64x128xf32>
      %31 = arith.mulf %28, %30 : vector<64x128xf32>
      %cst_14 = arith.constant dense<0.000000e+00> : vector<64xf32>
      %32 = vector.multi_reduction <add>, %31, %cst_14 [1] : vector<64x128xf32> to vector<64xf32>
      %33 = vector.shape_cast %32 : vector<64xf32> to vector<64x1xf32>
      %34 = vector.extract_strided_slice %19 {offsets = [0, 5], sizes = [64, 1], strides = [1, 1]} : vector<64x8xf32> to vector<64x1xf32>
      %35 = arith.addf %33, %34 : vector<64x1xf32>
      %36 = arith.maximumf %27, %35 : vector<64x1xf32>
      %37 = arith.subf %27, %36 : vector<64x1xf32>
      %38 = math.exp %37 : vector<64x1xf32>
      %39 = arith.subf %35, %36 : vector<64x1xf32>
      %40 = math.exp %39 : vector<64x1xf32>
      %41 = arith.addf %38, %40 : vector<64x1xf32>
      %42 = arith.divf %38, %41 : vector<64x1xf32>
      %43 = vector.extract_strided_slice %19 {offsets = [0, 0], sizes = [64, 1], strides = [1, 1]} : vector<64x8xf32> to vector<64x1xf32>
      %44 = arith.mulf %42, %43 : vector<64x1xf32>
      %45 = vector.extract_strided_slice %19 {offsets = [0, 1], sizes = [64, 1], strides = [1, 1]} : vector<64x8xf32> to vector<64x1xf32>
      %46 = arith.addf %44, %45 : vector<64x1xf32>
      %47 = arith.divf %40, %41 : vector<64x1xf32>
      %48 = vector.extract_strided_slice %19 {offsets = [0, 2], sizes = [64, 1], strides = [1, 1]} : vector<64x8xf32> to vector<64x1xf32>
      %49 = arith.mulf %47, %48 : vector<64x1xf32>
      %50 = vector.extract_strided_slice %19 {offsets = [0, 3], sizes = [64, 1], strides = [1, 1]} : vector<64x8xf32> to vector<64x1xf32>
      %51 = arith.addf %49, %50 : vector<64x1xf32>
      %52 = vector.broadcast %46 : vector<64x1xf32> to vector<64x128xf32>
      %53 = arith.mulf %52, %15 : vector<64x128xf32>
      %54 = arith.truncf %53 : vector<64x128xf32> to vector<64x128xbf16>
      %55 = vector.broadcast %51 : vector<64x1xf32> to vector<64x128xf32>
      %56 = arith.mulf %55, %16 : vector<64x128xf32>
      %57 = arith.truncf %56 : vector<64x128xf32> to vector<64x128xbf16>
      %58 = tpu.concatenate %54, %57, %17 in 1 : vector<64x128xbf16>, vector<64x128xbf16>, vector<64x128xbf16> -> vector<64x384xbf16>
      %c0_15 = arith.constant 0 : index
      %c0_16 = arith.constant 0 : index
      %59 = vector.load %arg9[%c0_15, %c0_16] : memref<384x128xbf16, #tpu.memory_space<vmem>>, vector<384x128xbf16>
      %cst_17 = arith.constant dense<0.000000e+00> : vector<64x128xf32>
      %60 = tpu.matmul %58, %59, %cst_17 {dimension_numbers = #tpu.dot_dimension_numbers<[1], [0], [0], [1], [0, 0, 1, 1], [], []>} : vector<64x384xbf16>, vector<384x128xbf16>, vector<64x128xf32> -> vector<64x128xf32>
      %c0_18 = arith.constant 0 : index
      %c0_19 = arith.constant 0 : index
      %61 = vector.load %arg10[%c0_18, %c0_19] : memref<3x128xf32, #tpu.memory_space<vmem>>, vector<1x128xf32>
      %62 = vector.broadcast %46 : vector<64x1xf32> to vector<64x128xf32>
      %63 = vector.broadcast %61 : vector<1x128xf32> to vector<64x128xf32>
      %64 = arith.mulf %62, %63 : vector<64x128xf32>
      %65 = arith.addf %60, %64 : vector<64x128xf32>
      %c1_20 = arith.constant 1 : index
      %c0_21 = arith.constant 0 : index
      %66 = vector.load %arg10[%c1_20, %c0_21] : memref<3x128xf32, #tpu.memory_space<vmem>>, vector<1x128xf32>
      %67 = vector.broadcast %51 : vector<64x1xf32> to vector<64x128xf32>
      %68 = vector.broadcast %66 : vector<1x128xf32> to vector<64x128xf32>
      %69 = arith.mulf %67, %68 : vector<64x128xf32>
      %70 = arith.addf %65, %69 : vector<64x128xf32>
      %c2 = arith.constant 2 : index
      %c0_22 = arith.constant 0 : index
      %71 = vector.load %arg10[%c2, %c0_22] : memref<3x128xf32, #tpu.memory_space<vmem>>, vector<1x128xf32>
      %72 = vector.broadcast %71 : vector<1x128xf32> to vector<64x128xf32>
      %73 = arith.addf %70, %72 : vector<64x128xf32>
      %cst_23 = arith.constant 0.000000e+00 : f32
      %74 = vector.broadcast %cst_23 : f32 to vector<64x128xf32>
      %75 = arith.maximumf %73, %74 : vector<64x128xf32>
      %76 = arith.truncf %75 : vector<64x128xf32> to vector<64x128xbf16>
      %c0_24 = arith.constant 0 : index
      %c0_25 = arith.constant 0 : index
      %77 = vector.load %arg14[%c0_24, %c0_25] : memref<64x128xbf16, #tpu.memory_space<vmem>>, vector<64x128xbf16>
      tpu.vector_store %arg14[%c0_24, %c0_25], %76 {strides = array<i32>} : memref<64x128xbf16, #tpu.memory_space<vmem>>, vector<64x128xbf16>,
      %c0_26 = arith.constant 0 : index
      %c0_27 = arith.constant 0 : index
      %78 = vector.load %arg12[%c0_26, %c0_27] : memref<64x128xf32, #tpu.memory_space<vmem>>, vector<64x128xf32>
      %79 = arith.maximumf %78, %75 : vector<64x128xf32>
      %c0_28 = arith.constant 0 : index
      %c0_29 = arith.constant 0 : index
      %80 = vector.load %arg15[%c0_28, %c0_29] : memref<64x128xf32, #tpu.memory_space<vmem>>, vector<64x128xf32>
      tpu.vector_store %arg15[%c0_28, %c0_29], %79 {strides = array<i32>} : memref<64x128xf32, #tpu.memory_space<vmem>>, vector<64x128xf32>,
      %81 = tpu.iota {dimensions = array<i32: 1>} : vector<64x128xi32>
      %c0_i32_30 = arith.constant 0 : i32
      %82 = vector.broadcast %c0_i32_30 : i32 to vector<64x128xi32>
      %83 = arith.cmpi eq, %81, %82 : vector<64x128xi32>
      %c1_i32 = arith.constant 1 : i32
      %84 = vector.broadcast %c1_i32 : i32 to vector<64x128xi32>
      %85 = arith.cmpi eq, %81, %84 : vector<64x128xi32>
      %cst_31 = arith.constant 0.000000e+00 : f32
      %86 = vector.shape_cast %51 : vector<64x1xf32> to vector<64x1xf32>
      %87 = vector.broadcast %86 : vector<64x1xf32> to vector<64x128xf32>
      %88 = vector.broadcast %cst_31 : f32 to vector<64x128xf32>
      %89 = arith.select %85, %87, %88 : vector<64x128xi1>, vector<64x128xf32>
      %90 = vector.shape_cast %46 : vector<64x1xf32> to vector<64x1xf32>
      %91 = vector.broadcast %90 : vector<64x1xf32> to vector<64x128xf32>
      %92 = arith.select %83, %91, %89 : vector<64x128xi1>, vector<64x128xf32>
      %c0_32 = arith.constant 0 : index
      %c0_33 = arith.constant 0 : index
      %93 = vector.load %arg13[%c0_32, %c0_33] : memref<64x128xf32, #tpu.memory_space<vmem>>, vector<64x128xf32>
      %94 = arith.addf %93, %92 : vector<64x128xf32>
      %c0_34 = arith.constant 0 : index
      %c0_35 = arith.constant 0 : index
      %95 = vector.load %arg16[%c0_34, %c0_35] : memref<64x128xf32, #tpu.memory_space<vmem>>, vector<64x128xf32>
      tpu.vector_store %arg16[%c0_34, %c0_35], %94 {strides = array<i32>} : memref<64x128xf32, #tpu.memory_space<vmem>>, vector<64x128xf32>,
    } else {
    }
    return
  }
  func.func @transform_0(%arg0: i32, %arg1: i32, %arg2: memref<2xi32, #tpu.memory_space<smem>>, %arg3: memref<2xi32, #tpu.memory_space<smem>>) -> (i32, i32) {
    %c1_i32 = arith.constant 1 : i32
    %0 = arith.muli %arg0, %c1_i32 : i32
    %1 = arith.addi %0, %arg1 : i32
    %2 = arith.index_cast %1 : i32 to index
    %3 = memref.load %arg2[%2] : memref<2xi32, #tpu.memory_space<smem>>
    %c0_i32 = arith.constant 0 : i32
    return %arg0, %3 : i32, i32
  }
  func.func @transform_1(%arg0: i32, %arg1: i32, %arg2: memref<2xi32, #tpu.memory_space<smem>>, %arg3: memref<2xi32, #tpu.memory_space<smem>>) -> (i32, i32) {
    %c1_i32 = arith.constant 1 : i32
    %0 = arith.muli %arg0, %c1_i32 : i32
    %1 = arith.addi %0, %arg1 : i32
    %2 = arith.index_cast %1 : i32 to index
    %3 = memref.load %arg2[%2] : memref<2xi32, #tpu.memory_space<smem>>
    %c0_i32 = arith.constant 0 : i32
    %c0_i32_0 = arith.constant 0 : i32
    return %3, %c0_i32 : i32, i32
  }
  func.func @transform_2(%arg0: i32, %arg1: i32, %arg2: memref<2xi32, #tpu.memory_space<smem>>, %arg3: memref<2xi32, #tpu.memory_space<smem>>) -> (i32, i32) {
    %c0_i32 = arith.constant 0 : i32
    %c0_i32_0 = arith.constant 0 : i32
    return %arg0, %c0_i32 : i32, i32
  }
  func.func @transform_3(%arg0: i32, %arg1: i32, %arg2: memref<2xi32, #tpu.memory_space<smem>>, %arg3: memref<2xi32, #tpu.memory_space<smem>>) -> (i32, i32) {
    %c0_i32 = arith.constant 0 : i32
    %c0_i32_0 = arith.constant 0 : i32
    return %arg0, %c0_i32 : i32, i32
  }
  func.func @transform_4(%arg0: i32, %arg1: i32, %arg2: memref<2xi32, #tpu.memory_space<smem>>, %arg3: memref<2xi32, #tpu.memory_space<smem>>) -> (i32, i32) {
    %c0_i32 = arith.constant 0 : i32
    %c0_i32_0 = arith.constant 0 : i32
    return %arg0, %c0_i32 : i32, i32
  }
  func.func @transform_5(%arg0: i32, %arg1: i32, %arg2: memref<2xi32, #tpu.memory_space<smem>>, %arg3: memref<2xi32, #tpu.memory_space<smem>>) -> (i32, i32) {
    %c0_i32 = arith.constant 0 : i32
    %c0_i32_0 = arith.constant 0 : i32
    %c0_i32_1 = arith.constant 0 : i32
    return %c0_i32, %c0_i32_0 : i32, i32
  }
  func.func @transform_6(%arg0: i32, %arg1: i32, %arg2: memref<2xi32, #tpu.memory_space<smem>>, %arg3: memref<2xi32, #tpu.memory_space<smem>>) -> (i32, i32) {
    %c0_i32 = arith.constant 0 : i32
    %c0_i32_0 = arith.constant 0 : i32
    %c0_i32_1 = arith.constant 0 : i32
    return %c0_i32, %c0_i32_0 : i32, i32
  }
  func.func @transform_7(%arg0: i32, %arg1: i32, %arg2: memref<2xi32, #tpu.memory_space<smem>>, %arg3: memref<2xi32, #tpu.memory_space<smem>>) -> (i32, i32) {
    %c0_i32 = arith.constant 0 : i32
    %c0_i32_0 = arith.constant 0 : i32
    %c0_i32_1 = arith.constant 0 : i32
    return %c0_i32, %c0_i32_0 : i32, i32
  }
  func.func @transform_8(%arg0: i32, %arg1: i32, %arg2: memref<2xi32, #tpu.memory_space<smem>>, %arg3: memref<2xi32, #tpu.memory_space<smem>>) -> (i32, i32) {
    %c0_i32 = arith.constant 0 : i32
    %c0_i32_0 = arith.constant 0 : i32
    return %arg0, %c0_i32 : i32, i32
  }
  func.func @transform_9(%arg0: i32, %arg1: i32, %arg2: memref<2xi32, #tpu.memory_space<smem>>, %arg3: memref<2xi32, #tpu.memory_space<smem>>) -> (i32, i32) {
    %c0_i32 = arith.constant 0 : i32
    %c0_i32_0 = arith.constant 0 : i32
    return %arg0, %c0_i32 : i32, i32
  }
  func.func @transform_10(%arg0: i32, %arg1: i32, %arg2: memref<2xi32, #tpu.memory_space<smem>>, %arg3: memref<2xi32, #tpu.memory_space<smem>>) -> (i32, i32) {
    %c0_i32 = arith.constant 0 : i32
    %c0_i32_0 = arith.constant 0 : i32
    return %arg0, %c0_i32 : i32, i32
  }
  func.func @transform_11(%arg0: i32, %arg1: i32, %arg2: memref<2xi32, #tpu.memory_space<smem>>, %arg3: memref<2xi32, #tpu.memory_space<smem>>) -> (i32, i32) {
    %c0_i32 = arith.constant 0 : i32
    %c0_i32_0 = arith.constant 0 : i32
    return %arg0, %c0_i32 : i32, i32
  }
  func.func @transform_12(%arg0: i32, %arg1: i32, %arg2: memref<2xi32, #tpu.memory_space<smem>>, %arg3: memref<2xi32, #tpu.memory_space<smem>>) -> (i32, i32) {
    %c0_i32 = arith.constant 0 : i32
    %c0_i32_0 = arith.constant 0 : i32
    return %arg0, %c0_i32 : i32, i32
  }
}

module attributes {stable_mosaic.version = 11 : i64} {
  func.func @node_proj_kernel(%arg0: i32, %arg1: memref<64x128xf32, #tpu.memory_space<vmem>>, %arg2: memref<128x256xbf16, #tpu.memory_space<vmem>>, %arg3: memref<64x256xbf16, #tpu.memory_space<vmem>>) attributes {dimension_semantics = [#tpu.dimension_semantics<parallel>], iteration_bounds = array<i64: 2>, scalar_prefetch = 0 : i64, scratch_operands = 0 : i64, tpu.core_type = #tpu.core_type<tc>, window_params = [{transform_indices = @transform_0, window_bounds = array<i64: 64, 128>}, {pipeline_mode = #tpu.pipeline_mode<synchronous>, transform_indices = @transform_1, window_bounds = array<i64: 128, 256>}, {transform_indices = @transform_2, window_bounds = array<i64: 64, 256>}]} {
    %c0 = arith.constant 0 : index
    %c0_0 = arith.constant 0 : index
    %0 = vector.load %arg1[%c0, %c0_0] : memref<64x128xf32, #tpu.memory_space<vmem>>, vector<64x128xf32>
    %1 = arith.truncf %0 : vector<64x128xf32> to vector<64x128xbf16>
    %c0_1 = arith.constant 0 : index
    %c0_2 = arith.constant 0 : index
    %2 = vector.load %arg2[%c0_1, %c0_2] : memref<128x256xbf16, #tpu.memory_space<vmem>>, vector<128x256xbf16>
    %cst = arith.constant dense<0.000000e+00> : vector<64x256xf32>
    %3 = tpu.matmul %1, %2, %cst {dimension_numbers = #tpu.dot_dimension_numbers<[1], [0], [0], [1], [0, 0, 1, 1], [], []>} : vector<64x128xbf16>, vector<128x256xbf16>, vector<64x256xf32> -> vector<64x256xf32>
    %4 = arith.truncf %3 : vector<64x256xf32> to vector<64x256xbf16>
    %c0_3 = arith.constant 0 : index
    %c0_4 = arith.constant 0 : index
    %5 = vector.load %arg3[%c0_3, %c0_4] : memref<64x256xbf16, #tpu.memory_space<vmem>>, vector<64x256xbf16>
    tpu.vector_store %arg3[%c0_3, %c0_4], %4 {strides = array<i32>} : memref<64x256xbf16, #tpu.memory_space<vmem>>, vector<64x256xbf16>,
    return
  }
  func.func @transform_0(%arg0: i32) -> (i32, i32) {
    %c0_i32 = arith.constant 0 : i32
    %c0_i32_0 = arith.constant 0 : i32
    return %arg0, %c0_i32 : i32, i32
  }
  func.func @transform_1(%arg0: i32) -> (i32, i32) {
    %c0_i32 = arith.constant 0 : i32
    %c0_i32_0 = arith.constant 0 : i32
    %c0_i32_1 = arith.constant 0 : i32
    return %c0_i32, %c0_i32_0 : i32, i32
  }
  func.func @transform_2(%arg0: i32) -> (i32, i32) {
    %c0_i32 = arith.constant 0 : i32
    %c0_i32_0 = arith.constant 0 : i32
    return %arg0, %c0_i32 : i32, i32
  }
}

module attributes {stable_mosaic.version = 11 : i64} {
  func.func @edge_head_kernel(%arg0: i32, %arg1: memref<128x128xi32, #tpu.memory_space<vmem>>, %arg2: memref<128x256xbf16, #tpu.memory_space<vmem>>, %arg3: memref<1x128xf32, #tpu.memory_space<vmem>>, %arg4: memref<128x128xf32, #tpu.memory_space<vmem>>) attributes {dimension_semantics = [#tpu.dimension_semantics<parallel>], iteration_bounds = array<i64: 1>, scalar_prefetch = 0 : i64, scratch_operands = 0 : i64, tpu.core_type = #tpu.core_type<tc>, window_params = [{transform_indices = @transform_0, window_bounds = array<i64: 128, 128>}, {pipeline_mode = #tpu.pipeline_mode<synchronous>, transform_indices = @transform_1, window_bounds = array<i64: 128, 256>}, {pipeline_mode = #tpu.pipeline_mode<synchronous>, transform_indices = @transform_2, window_bounds = array<i64: 1, 128>}, {transform_indices = @transform_3, window_bounds = array<i64: 128, 128>}]} {
    %c0 = arith.constant 0 : index
    %c0_0 = arith.constant 0 : index
    %0 = vector.load %arg1[%c0, %c0_0] : memref<128x128xi32, #tpu.memory_space<vmem>>, vector<128x128xi32>
    %1 = tpu.iota {dimensions = array<i32: 1>} : vector<128x128xi32>
    %2 = vector.extract_strided_slice %0 {offsets = [0, 0], sizes = [128, 1], strides = [1, 1]} : vector<128x128xi32> to vector<128x1xi32>
    %3 = vector.broadcast %2 : vector<128x1xi32> to vector<128x128xi32>
    %4 = arith.cmpi eq, %1, %3 : vector<128x128xi32>
    %cst = arith.constant 1.000000e+00 : f32
    %cst_1 = arith.constant 0.000000e+00 : f32
    %5 = vector.broadcast %cst : f32 to vector<128x128xf32>
    %6 = vector.broadcast %cst_1 : f32 to vector<128x128xf32>
    %7 = arith.select %4, %5, %6 : vector<128x128xi1>, vector<128x128xf32>
    %8 = arith.truncf %7 : vector<128x128xf32> to vector<128x128xbf16>
    %9 = vector.extract_strided_slice %0 {offsets = [0, 1], sizes = [128, 1], strides = [1, 1]} : vector<128x128xi32> to vector<128x1xi32>
    %10 = vector.broadcast %9 : vector<128x1xi32> to vector<128x128xi32>
    %11 = arith.cmpi eq, %1, %10 : vector<128x128xi32>
    %cst_2 = arith.constant 1.000000e+00 : f32
    %cst_3 = arith.constant 0.000000e+00 : f32
    %12 = vector.broadcast %cst_2 : f32 to vector<128x128xf32>
    %13 = vector.broadcast %cst_3 : f32 to vector<128x128xf32>
    %14 = arith.select %11, %12, %13 : vector<128x128xi1>, vector<128x128xf32>
    %15 = arith.truncf %14 : vector<128x128xf32> to vector<128x128xbf16>
    %c0_4 = arith.constant 0 : index
    %c0_5 = arith.constant 0 : index
    %16 = vector.load %arg2[%c0_4, %c0_5] : memref<128x256xbf16, #tpu.memory_space<vmem>>, vector<128x256xbf16>
    %17 = vector.extract_strided_slice %16 {offsets = [0, 0], sizes = [128, 128], strides = [1, 1]} : vector<128x256xbf16> to vector<128x128xbf16>
    %cst_6 = arith.constant dense<0.000000e+00> : vector<128x128xf32>
    %18 = tpu.matmul %8, %17, %cst_6 {dimension_numbers = #tpu.dot_dimension_numbers<[1], [0], [0], [1], [0, 0, 1, 1], [], []>} : vector<128x128xbf16>, vector<128x128xbf16>, vector<128x128xf32> -> vector<128x128xf32>
    %19 = vector.extract_strided_slice %16 {offsets = [0, 128], sizes = [128, 128], strides = [1, 1]} : vector<128x256xbf16> to vector<128x128xbf16>
    %cst_7 = arith.constant dense<0.000000e+00> : vector<128x128xf32>
    %20 = tpu.matmul %15, %19, %cst_7 {dimension_numbers = #tpu.dot_dimension_numbers<[1], [0], [0], [1], [0, 0, 1, 1], [], []>} : vector<128x128xbf16>, vector<128x128xbf16>, vector<128x128xf32> -> vector<128x128xf32>
    %21 = arith.addf %18, %20 : vector<128x128xf32>
    %c0_8 = arith.constant 0 : index
    %c0_9 = arith.constant 0 : index
    %22 = vector.load %arg3[%c0_8, %c0_9] : memref<1x128xf32, #tpu.memory_space<vmem>>, vector<1x128xf32>
    %23 = vector.broadcast %22 : vector<1x128xf32> to vector<128x128xf32>
    %24 = arith.addf %21, %23 : vector<128x128xf32>
    %cst_10 = arith.constant dense<0xFF800000> : vector<128xf32>
    %25 = vector.multi_reduction <maximumf>, %24, %cst_10 [1] : vector<128x128xf32> to vector<128xf32>
    %26 = vector.shape_cast %25 : vector<128xf32> to vector<128x1xf32>
    %27 = vector.broadcast %26 : vector<128x1xf32> to vector<128x128xf32>
    %28 = arith.subf %24, %27 : vector<128x128xf32>
    %29 = math.exp %28 : vector<128x128xf32>
    %cst_11 = arith.constant dense<0.000000e+00> : vector<128xf32>
    %30 = vector.multi_reduction <add>, %29, %cst_11 [1] : vector<128x128xf32> to vector<128xf32>
    %31 = vector.shape_cast %30 : vector<128xf32> to vector<128x1xf32>
    %32 = math.log %31 : vector<128x1xf32>
    %33 = arith.addf %32, %26 : vector<128x1xf32>
    %34 = vector.broadcast %33 : vector<128x1xf32> to vector<128x128xf32>
    %35 = arith.subf %24, %34 : vector<128x128xf32>
    %c0_12 = arith.constant 0 : index
    %c0_13 = arith.constant 0 : index
    %36 = vector.load %arg4[%c0_12, %c0_13] : memref<128x128xf32, #tpu.memory_space<vmem>>, vector<128x128xf32>
    tpu.vector_store %arg4[%c0_12, %c0_13], %35 {strides = array<i32>} : memref<128x128xf32, #tpu.memory_space<vmem>>, vector<128x128xf32>,
    return
  }
  func.func @transform_0(%arg0: i32) -> (i32, i32) {
    %c0_i32 = arith.constant 0 : i32
    %c0_i32_0 = arith.constant 0 : i32
    return %arg0, %c0_i32 : i32, i32
  }
  func.func @transform_1(%arg0: i32) -> (i32, i32) {
    %c0_i32 = arith.constant 0 : i32
    %c0_i32_0 = arith.constant 0 : i32
    %c0_i32_1 = arith.constant 0 : i32
    return %c0_i32, %c0_i32_0 : i32, i32
  }
  func.func @transform_2(%arg0: i32) -> (i32, i32) {
    %c0_i32 = arith.constant 0 : i32
    %c0_i32_0 = arith.constant 0 : i32
    %c0_i32_1 = arith.constant 0 : i32
    return %c0_i32, %c0_i32_0 : i32, i32
  }
  func.func @transform_3(%arg0: i32) -> (i32, i32) {
    %c0_i32 = arith.constant 0 : i32
    %c0_i32_0 = arith.constant 0 : i32
    return %arg0, %c0_i32 : i32, i32
  }
}

</mosaic_0001>

<bundles_post_ra>
// kernel: gnn_forward.6
= control target key start
LH: loop header
LB: loop body
LE: loop exit
PB: predicated region body
PF: predicated region fallthrough
CT: control target
= control target key end

     0   :  { %s563_s9 = smov 0   ;;  %s639_s0 = inlined_call_operand.vmem [shape: f32[128,128], index: 0, kind: input, shape index: {}]   ;;  %s640_s1 = inlined_call_operand.vmem [shape: bf16[128,256], index: 1, kind: input, shape index: {}]   ;;  %s641_s2 = inlined_call_operand.vmem [shape: bf16[128,256], index: 2, kind: output, shape index: {}]  }
   0x1 LB: > { %s445_s10 = sadd.s32 4294967295, %s545_s9   ;;  %p449_p0 = scmp.ge.s32.totalorder %s545_s9, 1  ;;  %s545_s9 = sphi %s563_s9, %s12_s9  }
   0x2   : > { %p113_p1 = scmp.lt.s32.totalorder %s545_s9, 3 }
   0x4   : > { %p114_p2 = pnand %p449_p0, %p113_p1 }
   0x5   : > { %v515_v0 = vld [vmem:[%s640_s1 + $0x4] ss:$8 sps:$4 sm:$0xff] (!%p114_p2)   ;;  %v517_v1 = vld [vmem:[%s640_s1] ss:$8 sps:$4 sm:$0xff] (!%p114_p2)   ;;  %v547_v2 = vmov (!%p114_p2), 0   ;;  %s450_s25 = sshll.u32 (!%p114_p2), %s445_s10, 3 }
   0x6   : > { %117 = sbr.rel (%p114_p2) target bundleno = 265 (0x109), region = 28  ;;  %290 = vmatprep.mubr.bf16.mxu0 (!%p114_p2), %v547_v2  ;;  %310 = vmatprep.mubr.bf16.mxu1 (!%p114_p2), %v547_v2  ;;  %v518_v3 = vld [vmem:[%s640_s1 + $0x14] ss:$8 sps:$4 sm:$0xff] (!%p114_p2)   ;;  %v520_v4 = vld [vmem:[%s640_s1 + $0x10] ss:$8 sps:$4 sm:$0xff] (!%p114_p2)   ;;  %p137_p3 = scmp.lt.s32.totalorder (!%p114_p2), %s450_s25, 15 }
   0x7   : > { %258 = vmatprep.subr.bf16.mxu0 (!%p114_p2), %v515_v0  ;;  %490 = vmatprep.subr.bf16.mxu1 (!%p114_p2), %v515_v0  ;;  %v521_v5 = vld [vmem:[%s640_s1 + $0x24] ss:$8 sps:$4 sm:$0xff] (!%p114_p2)   ;;  %v523_v6 = vld [vmem:[%s640_s1 + $0x20] ss:$8 sps:$4 sm:$0xff] (!%p114_p2)   ;;  %v524_v7 = vld [vmem:[%s640_s1 + $0x34] ss:$8 sps:$4 sm:$0xff] (!%p114_p2)  }
   0x8   : > { %259 = vmatpush1.bf16.msra.mxu0 (!%p114_p2), %v517_v1  ;;  %498 = vmatpush1.bf16.msra.mxu1 (!%p114_p2), %v517_v1  ;;  %v526_v8 = vld [vmem:[%s640_s1 + $0x30] ss:$8 sps:$4 sm:$0xff] (!%p114_p2)   ;;  %v527_v9 = vld [vmem:[%s640_s1 + $0x44] ss:$8 sps:$4 sm:$0xff] (!%p114_p2)   ;;  %v529_v10 = vld [vmem:[%s640_s1 + $0x40] ss:$8 sps:$4 sm:$0xff] (!%p114_p2)  }
   0x9   : > { %260 = vmatprep.subr.bf16.mxu0 (!%p114_p2), %v518_v3  ;;  %491 = vmatprep.subr.bf16.mxu1 (!%p114_p2), %v518_v3  ;;  %v530_v11 = vld [vmem:[%s640_s1 + $0x54] ss:$8 sps:$4 sm:$0xff] (!%p114_p2)   ;;  %v532_v12 = vld [vmem:[%s640_s1 + $0x50] ss:$8 sps:$4 sm:$0xff] (!%p114_p2)   ;;  %v533_v13 = vld [vmem:[%s640_s1 + $0x64] ss:$8 sps:$4 sm:$0xff] (!%p114_p2)  }
   0xa   : > { %v535_v14 = vld [vmem:[%s640_s1 + $0x60] ss:$8 sps:$4 sm:$0xff] (!%p114_p2)   ;;  %v536_v15 = vld [vmem:[%s640_s1 + $0x74] ss:$8 sps:$4 sm:$0xff] (!%p114_p2)   ;;  %v538_v16 = vld [vmem:[%s640_s1 + $0x70] ss:$8 sps:$4 sm:$0xff] (!%p114_p2)  }
   0xc   : > { %261 = vmatpush1.bf16.msra.mxu0 (!%p114_p2), %v520_v4  ;;  %499 = vmatpush1.bf16.msra.mxu1 (!%p114_p2), %v520_v4 }
   0xd   : > { %262 = vmatprep.subr.bf16.mxu0 %v521_v5  ;;  %492 = vmatprep.subr.bf16.mxu1 %v521_v5  ;;  %s643_s25 = smov (!%p137_p3, %s450_s25), 15 }
   0xe   : > { %s451_s11 = sshll.u32 %s643_s25, 3 }
   0xf   : > { %s140_s16 = scalar_lea.vmem %s639_s0, %s451_s11  ;;  %s147_s23 = scalar_lea.vmem %s641_s2, %s451_s11 }
  0x10   : > { %263 = vmatpush1.bf16.msra.mxu0 %v523_v6  ;;  %500 = vmatpush1.bf16.msra.mxu1 %v523_v6  ;;  %v150_v17 = vld [vmem:[%s140_s16] sm:$0xff]  ;;  %v151_v18 = vld [vmem:[%s140_s16 + $0x8] sm:$0xff]  ;;  %v152_v23 = vld [vmem:[%s140_s16 + $0x10] sm:$0xff] }
  0x11   : > { %264 = vmatprep.subr.bf16.mxu0 %v524_v7  ;;  %493 = vmatprep.subr.bf16.mxu1 %v524_v7  ;;  %v154_v19 = vld [vmem:[%s140_s16 + $0x20] sm:$0xff]  ;;  %v155_v20 = vld [vmem:[%s140_s16 + $0x28] sm:$0xff]  ;;  %v158_v21 = vpack.c.bf16 %v151_v18, %v150_v17  ;;  %v153_v24 = vld [vmem:[%s140_s16 + $0x18] sm:$0xff] }
  0x12   : > { %v160_v22 = vpack.c.bf16 %v155_v20, %v154_v19  ;;  %v156_v25 = vld [vmem:[%s140_s16 + $0x30] sm:$0xff]  ;;  %v157_v26 = vld [vmem:[%s140_s16 + $0x38] sm:$0xff]  ;;  %v159_v27 = vpack.c.bf16 %v153_v24, %v152_v23 }
  0x13   : > { %v161_v28 = vpack.c.bf16 %v157_v26, %v156_v25 }
  0x14   : > { %265 = vmatpush1.bf16.msra.mxu0 %v526_v8  ;;  %501 = vmatpush1.bf16.msra.mxu1 %v526_v8 }
  0x15   : > { %266 = vmatprep.subr.bf16.mxu0 %v527_v9  ;;  %494 = vmatprep.subr.bf16.mxu1 %v527_v9 }
  0x18   : > { %267 = vmatpush1.bf16.msra.mxu0 %v529_v10  ;;  %502 = vmatpush1.bf16.msra.mxu1 %v529_v10 }
  0x19   : > { %268 = vmatprep.subr.bf16.mxu0 %v530_v11  ;;  %495 = vmatprep.subr.bf16.mxu1 %v530_v11 }
  0x1c   : > { %269 = vmatpush1.bf16.msra.mxu0 %v532_v12  ;;  %503 = vmatpush1.bf16.msra.mxu1 %v532_v12 }
  0x1d   : > { %270 = vmatprep.subr.bf16.mxu0 %v533_v13  ;;  %496 = vmatprep.subr.bf16.mxu1 %v533_v13 }
  0x20   : > { %271 = vmatpush1.bf16.msra.mxu0 %v535_v14  ;;  %504 = vmatpush1.bf16.msra.mxu1 %v535_v14 }
  0x21   : > { %272 = vmatprep.subr.bf16.mxu0 %v536_v15  ;;  %497 = vmatprep.subr.bf16.mxu1 %v536_v15 }
  0x24   : > { %273 = vmatpush1.bf16.msra.mxu0 %v538_v16  ;;  %505 = vmatpush1.bf16.msra.mxu1 %v538_v16 }
  0x27   : > { %291 = vmatmul.mubr.bf16.vlgmr.msra.gmra.mrb[0].mxu0 %v158_v21  ;;  %311 = vmatmul.mubr.bf16.vlgmr.msra.gmra.mrb[0].mxu1 %v160_v22 }
  0x28   : > { %300 = vmatprep.mubr.bf16.mxu0 %v547_v2  ;;  %320 = vmatprep.mubr.bf16.mxu1 %v547_v2 }
  0x2f   : > { %301 = vmatmul.mubr.bf16.gmra.mrb[4].mxu0 %v159_v27  ;;  %321 = vmatmul.mubr.bf16.gmra.mrb[4].mxu1 %v161_v28 }
  0xfa   : > { %v292_v29 = vpop.f32.mrb[0].mxu0  ;;  %v312_v30 = vpop.f32.mrb[0].mxu1 }
  0xfb   : > { %v294_v31 = vpop.f32.mrb[1].mxu0  ;;  %v314_v32 = vpop.f32.mrb[1].mxu1 }
  0xfc   : > { %v482_v33 = vpack.c.bf16 %v294_v31, %v292_v29  ;;  %v486_v34 = vpack.c.bf16 %v314_v32, %v312_v30  ;;  %v296_v35 = vpop.f32.mrb[2].mxu0  ;;  %v316_v36 = vpop.f32.mrb[2].mxu1 }
  0xfd   : > { %v298_v37 = vpop.f32.mrb[3].mxu0  ;;  %v318_v38 = vpop.f32.mrb[3].mxu1 }
  0xfe   : > { %379 = vst [vmem:[%s147_s23] sm:$0xff] %v482_v33  ;;  %383 = vst [vmem:[%s147_s23 + $0x20] sm:$0xff] %v486_v34  ;;  %v483_v39 = vpack.c.bf16 %v298_v37, %v296_v35  ;;  %v487_v40 = vpack.c.bf16 %v318_v38, %v316_v36 }
 0x100   : > { %380 = vst [vmem:[%s147_s23 + $0x8] sm:$0xff] %v483_v39  ;;  %384 = vst [vmem:[%s147_s23 + $0x28] sm:$0xff] %v487_v40 }
 0x102   : > { %v302_v41 = vpop.f32.mrb[4].mxu0  ;;  %v322_v42 = vpop.f32.mrb[4].mxu1 }
 0x103   : > { %v304_v43 = vpop.f32.mrb[5].mxu0  ;;  %v324_v44 = vpop.f32.mrb[5].mxu1 }
 0x104   : > { %v484_v45 = vpack.c.bf16 %v304_v43, %v302_v41  ;;  %v488_v46 = vpack.c.bf16 %v324_v44, %v322_v42  ;;  %v306_v47 = vpop.f32.mrb[6].mxu0  ;;  %v326_v48 = vpop.f32.mrb[6].mxu1 }
 0x105   : > { %v308_v49 = vpop.f32.mrb[7].mxu0  ;;  %v328_v50 = vpop.f32.mrb[7].mxu1 }
 0x106   : > { %381 = vst [vmem:[%s147_s23 + $0x10] sm:$0xff] %v484_v45  ;;  %385 = vst [vmem:[%s147_s23 + $0x30] sm:$0xff] %v488_v46  ;;  %v485_v51 = vpack.c.bf16 %v308_v49, %v306_v47  ;;  %v489_v52 = vpack.c.bf16 %v328_v50, %v326_v48 }
 0x108   : > { %382 = vst [vmem:[%s147_s23 + $0x18] sm:$0xff] %v485_v51  ;;  %386 = vst [vmem:[%s147_s23 + $0x38] sm:$0xff] %v489_v52 }
 0x109 PF: > { %s12_s9 = sadd.s32 1, %s545_s9  }
 0x10a   : > { %p9_p4 = scmp.ge.s32.totalorder %s12_s9, 4  }
 0x10c   :  { %11 = sbr.rel (!%p9_p4) target bundleno = 1 (0x1), region = 58 }

// kernel: gnn_forward.4
= control target key start
LH: loop header
LB: loop body
LE: loop exit
PB: predicated region body
PF: predicated region fallthrough
CT: control target
= control target key end

     0   :  { %s3668_s0 = inlined_call_operand.vmem [shape: s32[2], index: 0, kind: input, shape index: {}]   ;;  %s3669_s2 = inlined_call_operand.vmem [shape: s8[256,128], index: 2, kind: input, shape index: {}]   ;;  %s3670_s3 = inlined_call_operand.vmem [shape: bf16[128,128], index: 3, kind: input, shape index: {}, may-alias: {3,4}]   ;;  %s3671_s4 = inlined_call_operand.vmem [shape: bf16[128,128], index: 4, kind: input, shape index: {}, may-alias: {3,4}]   ;;  %s3672_s5 = inlined_call_operand.vmem [shape: f32[256,1], index: 5, kind: input, shape index: {}]   ;;  %s3673_s6 = inlined_call_operand.vmem [shape: f32[128,8], index: 6, kind: input, shape index: {}]   ;;  %s3674_s7 = inlined_call_operand.vmem [shape: bf16[384,128], index: 7, kind: input, shape index: {}]   ;;  %s3675_s8 = inlined_call_operand.vmem [shape: f32[3,128], index: 8, kind: input, shape index: {}]   ;;  %s3676_s9 = inlined_call_operand.vmem [shape: f32[2,128], index: 9, kind: input, shape index: {}]   ;;  %s3677_s10 = inlined_call_operand.vmem [shape: f32[128,128], index: 10, kind: input, shape index: {}, may-alias: {10,11}]   ;;  %s3678_s11 = inlined_call_operand.vmem [shape: f32[128,128], index: 11, kind: input, shape index: {}, may-alias: {10,11}]   ;;  %s3679_s12 = inlined_call_operand.vmem [shape: bf16[128,128], index: 12, kind: output, shape index: {0}]   ;;  %s3680_s13 = inlined_call_operand.vmem [shape: f32[128,128], index: 13, kind: output, shape index: {1}]   ;;  %s3681_s14 = inlined_call_operand.vmem [shape: f32[128,128], index: 14, kind: output, shape index: {2}]   ;;  %s3682_s1 = inlined_call_operand.vmem [shape: s32[2], index: 1, kind: input, shape index: {}]  }
   0x1   :  { %3687 = sst [smem:[#allocation12_spill]] %s3669_s2  ;;  %s20_s15 = sshll.u32 %s3668_s0, 4  ;;  %s21_s15 = int_to_ptr.vmem [resolvable:$true] %s20_s15 }
   0x2   :  { %3688 = sst [smem:[#allocation13_spill]] %s3670_s3  ;;  %s24_s18 = sshll.u32 %s3682_s1, 4  ;;  %s25_s18 = int_to_ptr.vmem [resolvable:$true] %s24_s18 }
   0x3   :  { %3689 = sst [smem:[#allocation14_spill]] %s3671_s4  ;;  %s2689_s19 = scalar_lea.vmem %s21_s15, 16 }
   0x4   :  { %3690 = sst [smem:[#allocation15_spill]] %s3673_s6  ;;  %p2690_p0 = scmp.ne.s32.totalorder %s21_s15, %s2689_s19 }
   0x5   :  { %3691 = sst [smem:[#allocation16_spill]] %s3677_s10  ;;  %p2694_p1 = scmp.lt.s32.totalorder %s21_s15, %s21_s15 }
   0x6   :  { %p2695_p2 = scmp.lt.s32.totalorder %s2689_s19, %s2689_s19 }
   0x8   :  { %p2696_p3 = por %p2695_p2, %p2694_p1 }
   0xa   :  { %p2697_p4 = pnand %p2696_p3, %p2690_p0 }
   0xc   :  { %2700 = shalt.err (!%p2697_p4)  }
   0xd   :  { %s2739_s20 = smov [#allocation4]   ;;  %s2701_s21 = scalar_lea.vmem %s25_s18, 16 }
   0xe   :  { %23 = dma.vmem_to_smem %s21_s15, 16, %s2739_s20, [#allocation3] }
   0xf   :  { %p2702_p5 = scmp.ne.s32.totalorder %s25_s18, %s2701_s21  ;;  %p2706_p6 = scmp.lt.s32.totalorder %s25_s18, %s25_s18 }
  0x10   :  { %p2707_p7 = scmp.lt.s32.totalorder %s2701_s21, %s2701_s21 }
  0x12   :  { %p2708_p8 = por %p2707_p7, %p2706_p6 }
  0x14   :  { %p2709_p9 = pnand %p2708_p8, %p2702_p5 }
  0x16   :  { %2712 = shalt.err (!%p2709_p9)  }
  0x17   :  { %s2740_s0 = smov [#allocation5]  }
  0x18   :  { %27 = dma.vmem_to_smem %s25_s18, 16, %s2740_s0, [#allocation3] }
  0x19   :  { %2725 = dma.done.wait [#allocation3], 32 }
  0x1a   :  { %2726 = vsyncadd [#allocation3], 4294967264 }
  0x1b   :  { %29 = sfence }
  0x1c   :  { %s2831_s1 = smov 0   ;;  %s2833_s22 = smov 0  }
  0x1d   :  { %s2835_s23 = smov 0  }
  0x1e LB: > { %3692 = sst [smem:[#allocation7_spill]] %s2733_s22  ;;  %s47_s24 = sadd.s32 1, %s2733_s22  ;;  %s2737_s23 = sphi %s2835_s23, %s35_s23   ;;  %s2733_s22 = sphi %s2833_s22, %s3715_s22   ;;  %s2729_s1 = sphi %s2831_s1, %s3714_s1  }
  0x1f   : > { %3693 = sst [smem:[#allocation8_spill]] %s2737_s23  ;;  %p2292_p10 = scmp.ge.s32.totalorder %s2737_s23, 1 }
  0x20   : > { %p49_p11 = scmp.ge.s32.totalorder %s47_s24, 2  ;;  %p479_p12 = scmp.lt.s32.totalorder %s2737_s23, 3 }
  0x22   : > { %s3717_s24 = smov (%p49_p11, %s47_s24), 0  ;;  %p480_p13 = pnand %p2292_p10, %p479_p12 }
  0x23   : > { %3694 = sst [smem:[#allocation9_spill]] %s3717_s24 }
  0x24   : > { %483 = sbr.rel (%p480_p13) target bundleno = 1553 (0x611), region = 60 }
  0x2b   : > { %s569_s25 = sld [smem:[#allocation4 + %s2729_s1]]  ;;  %s2293_s26 = sshll.u32 %s2729_s1, 2  ;;  %v2741_v0 = vmov 0.0  }
  0x2c   : > { %p2853_p0 = scmp.lt.s32.totalorder %s2293_s26, 7  ;;  %s2858_s28 = sld [smem:[#allocation4 + %s2729_s1]]  ;;  %644 = vst [vmem:[#allocation2] sm:$0xff] %v2741_v0  ;;  %645 = vst [vmem:[#allocation2 + $0x8] sm:$0xff] %v2741_v0 }
  0x2d   : > { %646 = vst [vmem:[#allocation2 + $0x10] sm:$0xff] %v2741_v0  ;;  %647 = vst [vmem:[#allocation2 + $0x18] sm:$0xff] %v2741_v0  ;;  %s660_s29 = sld [smem:[#allocation5 + %s2729_s1]]  ;;  %s2297_s15 = sshll.u32 %s2729_s1, 3 }
  0x2e   : > { %648 = vst [vmem:[#allocation2 + $0x20] sm:$0xff] %v2741_v0  ;;  %649 = vst [vmem:[#allocation2 + $0x28] sm:$0xff] %v2741_v0  ;;  %s3719_s26 = smov (!%p2853_p0, %s2293_s26), 7  ;;  %s2299_s16 = sshll.u32 %s2729_s1, 4 }
  0x2f   : > { %650 = vst [vmem:[#allocation2 + $0x30] sm:$0xff] %v2741_v0  ;;  %651 = vst [vmem:[#allocation2 + $0x38] sm:$0xff] %v2741_v0  ;;  %p592_p3 = scmp.lt.s32.totalorder %s2297_s15, 15  ;;  %s3696_s2 = sld [smem:[#allocation12_spill]] }
  0x30   : > { %652 = vst [vmem:[#allocation2 + $0x40] sm:$0xff] %v2741_v0  ;;  %653 = vst [vmem:[#allocation2 + $0x48] sm:$0xff] %v2741_v0  ;;  %p598_p4 = scmp.lt.s32.totalorder %s2299_s16, 31  ;;  %s3697_s3 = sld [smem:[#allocation13_spill]] }
  0x31   : > { %654 = vst [vmem:[#allocation2 + $0x50] sm:$0xff] %v2741_v0  ;;  %655 = vst [vmem:[#allocation2 + $0x58] sm:$0xff] %v2741_v0  ;;  %p573_p1 = scmp.lt.s32.totalorder %s569_s25, 0  ;;  %s3725_s15 = smov (!%p592_p3, %s2297_s15), 15 }
  0x32   : > { %656 = vst [vmem:[#allocation2 + $0x60] sm:$0xff] %v2741_v0  ;;  %657 = vst [vmem:[#allocation2 + $0x68] sm:$0xff] %v2741_v0  ;;  %s2295_s30 = sshll.u32 %s2858_s28, 4  ;;  %s2298_s22 = sshll.u32 %s3725_s15, 2 }
  0x33   : > { %658 = vst [vmem:[#allocation2 + $0x70] sm:$0xff] %v2741_v0  ;;  %659 = vst [vmem:[#allocation2 + $0x78] sm:$0xff] %v2741_v0  ;;  %s3721_s25 = smov (!%p573_p1, %s569_s25), 0  ;;  %p584_p2 = scmp.lt.s32.totalorder %s2295_s30, 15 }
  0x34   : > { %s575_s17 = sadd.s32 %s3721_s25, %s3719_s26  ;;  %s3698_s4 = sld [smem:[#allocation14_spill]] }
  0x35   : > { %s2294_s18 = sshll.u32 %s575_s17, 3  ;;  %s3723_s30 = smov (!%p584_p2, %s2295_s30), 15 }
  0x36   : > { %s2869_s21 = scalar_lea.vmem %s3696_s2, %s2294_s18  ;;  %s2296_s0 = sshll.u32 %s3723_s30, 2 }
  0x37   : > { %s2874_s28 = scalar_lea.vmem %s3697_s3, %s2296_s0  ;;  %s2302_s26 = sshll.u32 %s3725_s15, 3 }
  0x38   : > { %s3727_s16 = smov (!%p598_p4, %s2299_s16), 31  ;;  %s3699_s6 = sld [smem:[#allocation15_spill]] }
  0x39   : > { %s3700_s10 = sld [smem:[#allocation16_spill]]  ;;  %s2300_s24 = sshll.u32 %s3727_s16, 3 }
  0x3a   : > { %s2879_s25 = scalar_lea.vmem %s3698_s4, %s2298_s22  ;;  %s2894_s3 = scalar_lea.vmem %s3678_s11, %s2302_s26 }
  0x3b   : > { %s2899_s15 = scalar_lea.vmem %s3672_s5, %s2300_s24  ;;  %s2904_s18 = scalar_lea.vmem %s3679_s12, %s2298_s22 }
  0x3c   : > { %s2909_s30 = scalar_lea.vmem %s3680_s13, %s2302_s26  ;;  %s2914_s0 = scalar_lea.vmem %s3681_s14, %s2302_s26 }
  0x3d   : > { %p2314_p5 = scmp.le.s32.totalorder %s660_s29, 0 }
  0x3e   : > { %s2884_s19 = scalar_lea.vmem %s3699_s6, %s2302_s26  ;;  %v2572_v1 = vld [vmem:[%s2874_s28] sm:$0xff] (!%p2314_p5)   ;;  %v2573_v2 = vld [vmem:[%s2874_s28 + $0x8] sm:$0xff] (!%p2314_p5)   ;;  %v2574_v3 = vld [vmem:[%s2874_s28 + $0x10] sm:$0xff] (!%p2314_p5)  }
  0x3f   : > { %s2889_s2 = scalar_lea.vmem %s3700_s10, %s2302_s26  ;;  %664 = sbr.rel (%p2314_p5) target bundleno = 321 (0x141), region = 68  ;;  %2465 = vmatprep.subr.bf16.mxu0 (!%p2314_p5), %v2572_v1  ;;  %2521 = vmatprep.subr.bf16.mxu1 (!%p2314_p5), %v2572_v1  ;;  %v2575_v4 = vld [vmem:[%s2874_s28 + $0x18] sm:$0xff] (!%p2314_p5)   ;;  %v665_v5 = vld [vmem:[%s2869_s21] sm:$0xff] (!%p2314_p5)  ;;  %v667_v6 = vld [vmem:[%s2869_s21 + $0x10] sm:$0xff] (!%p2314_p5) }
  0x40   : > { %2466 = vmatpush3.bf16.msra.mxu0 (!%p2314_p5), %v2572_v1  ;;  %2529 = vmatpush3.bf16.msra.mxu1 (!%p2314_p5), %v2572_v1  ;;  %v669_v7 = vunpack.c.l.s8.bf16 (!%p2314_p5), %v665_v5  ;;  %v673_v8 = vunpack.c.l.s8.bf16 (!%p2314_p5), %v667_v6  ;;  %v2576_v9 = vld [vmem:[%s2874_s28 + $0x20] sm:$0xff] (!%p2314_p5)   ;;  %v2577_v10 = vld [vmem:[%s2874_s28 + $0x28] sm:$0xff] (!%p2314_p5)   ;;  %v2578_v11 = vld [vmem:[%s2874_s28 + $0x30] sm:$0xff] (!%p2314_p5)   ;;  %v670_v15 = vunpack.c.h.s8.bf16 (!%p2314_p5), %v665_v5  ;;  %v674_v16 = vunpack.c.h.s8.bf16 (!%p2314_p5), %v667_v6 }
  0x41   : > { %2467 = vmatprep.subr.bf16.mxu0 (!%p2314_p5), %v2573_v2  ;;  %2522 = vmatprep.subr.bf16.mxu1 (!%p2314_p5), %v2573_v2  ;;  %v2579_v12 = vld [vmem:[%s2874_s28 + $0x38] sm:$0xff] (!%p2314_p5)   ;;  %v666_v13 = vld [vmem:[%s2869_s21 + $0x8] sm:$0xff] (!%p2314_p5)  ;;  %v679_v21 = vld [vmem:[#allocation2 + $0x10] sm:$0xff] (!%p2314_p5) }
  0x42   : > { %2481 = vmatprep.mubr.bf16.mxu0 (!%p2314_p5), %v669_v7  ;;  %2489 = vmatprep.mubr.bf16.mxu1 (!%p2314_p5), %v673_v8  ;;  %v668_v14 = vld [vmem:[%s2869_s21 + $0x18] sm:$0xff] (!%p2314_p5)  ;;  %v671_v17 = vunpack.c.l.s8.bf16 (!%p2314_p5), %v666_v13  ;;  %v672_v19 = vunpack.c.h.s8.bf16 (!%p2314_p5), %v666_v13  ;;  %v687_v22 = vld [vmem:[#allocation2 + $0x50] sm:$0xff] (!%p2314_p5)  ;;  %v677_v23 = vld [vmem:[#allocation2] sm:$0xff] (!%p2314_p5) }
  0x43   : > { %v675_v18 = vunpack.c.l.s8.bf16 (!%p2314_p5), %v668_v14  ;;  %v676_v20 = vunpack.c.h.s8.bf16 (!%p2314_p5), %v668_v14  ;;  %v685_v24 = vld [vmem:[#allocation2 + $0x40] sm:$0xff] (!%p2314_p5)  ;;  %v680_v27 = vld [vmem:[#allocation2 + $0x18] sm:$0xff] (!%p2314_p5)  ;;  %v678_v33 = vld [vmem:[#allocation2 + $0x8] sm:$0xff] (!%p2314_p5) }
  0x44   : > { %2468 = vmatpush3.bf16.msra.mxu0 (!%p2314_p5), %v2573_v2  ;;  %2530 = vmatpush3.bf16.msra.mxu1 (!%p2314_p5), %v2573_v2  ;;  %v688_v28 = vld [vmem:[#allocation2 + $0x58] sm:$0xff] (!%p2314_p5)  ;;  %v686_v34 = vld [vmem:[#allocation2 + $0x48] sm:$0xff] (!%p2314_p5)  ;;  %v683_v45 = vld [vmem:[#allocation2 + $0x30] sm:$0xff] (!%p2314_p5) }
  0x45   : > { %2469 = vmatprep.subr.bf16.mxu0 (!%p2314_p5), %v2574_v3  ;;  %2523 = vmatprep.subr.bf16.mxu1 (!%p2314_p5), %v2574_v3  ;;  %v691_v46 = vld [vmem:[#allocation2 + $0x70] sm:$0xff] (!%p2314_p5)  ;;  %v681_v47 = vld [vmem:[#allocation2 + $0x20] sm:$0xff] (!%p2314_p5)  ;;  %v684_v51 = vld [vmem:[#allocation2 + $0x38] sm:$0xff] (!%p2314_p5) }
  0x46   : > { %v689_v48 = vld [vmem:[#allocation2 + $0x60] sm:$0xff]  ;;  %v692_v52 = vld [vmem:[#allocation2 + $0x78] sm:$0xff]  ;;  %v682_v57 = vld [vmem:[#allocation2 + $0x28] sm:$0xff] }
  0x47   : > { %v690_v58 = vld [vmem:[#allocation2 + $0x68] sm:$0xff] }
  0x48   : > { %2470 = vmatpush3.bf16.msra.mxu0 %v2574_v3  ;;  %2531 = vmatpush3.bf16.msra.mxu1 %v2574_v3 }
  0x49   : > { %2471 = vmatprep.subr.bf16.mxu0 %v2575_v4  ;;  %2524 = vmatprep.subr.bf16.mxu1 %v2575_v4 }
  0x4c   : > { %2472 = vmatpush3.bf16.msra.mxu0 %v2575_v4  ;;  %2532 = vmatpush3.bf16.msra.mxu1 %v2575_v4 }
  0x4d   : > { %2473 = vmatprep.subr.bf16.mxu0 %v2576_v9  ;;  %2525 = vmatprep.subr.bf16.mxu1 %v2576_v9 }
  0x50   : > { %2474 = vmatpush3.bf16.msra.mxu0 %v2576_v9  ;;  %2533 = vmatpush3.bf16.msra.mxu1 %v2576_v9 }
  0x51   : > { %2475 = vmatprep.subr.bf16.mxu0 %v2577_v10  ;;  %2526 = vmatprep.subr.bf16.mxu1 %v2577_v10 }
  0x54   : > { %2476 = vmatpush3.bf16.msra.mxu0 %v2577_v10  ;;  %2534 = vmatpush3.bf16.msra.mxu1 %v2577_v10 }
  0x55   : > { %2477 = vmatprep.subr.bf16.mxu0 %v2578_v11  ;;  %2527 = vmatprep.subr.bf16.mxu1 %v2578_v11 }
  0x58   : > { %2478 = vmatpush3.bf16.msra.mxu0 %v2578_v11  ;;  %2535 = vmatpush3.bf16.msra.mxu1 %v2578_v11 }
  0x59   : > { %2479 = vmatprep.subr.bf16.mxu0 %v2579_v12  ;;  %2528 = vmatprep.subr.bf16.mxu1 %v2579_v12 }
  0x5c   : > { %2480 = vmatpush3.bf16.msra.mxu0 %v2579_v12  ;;  %2536 = vmatpush3.bf16.msra.mxu1 %v2579_v12 }
  0x5f   : > { %2482 = vmatmul.mubr.bf16.vlgmr.msra.gmra.mrb[0].mxu0 %v670_v15  ;;  %2490 = vmatmul.mubr.bf16.vlgmr.msra.gmra.mrb[0].mxu1 %v674_v16 }
  0x60   : > { %2485 = vmatprep.mubr.bf16.mxu0 %v671_v17  ;;  %2493 = vmatprep.mubr.bf16.mxu1 %v675_v18 }
  0x67   : > { %2486 = vmatmul.mubr.bf16.gmra.mrb[4].mxu0 %v672_v19  ;;  %2494 = vmatmul.mubr.bf16.gmra.mrb[4].mxu1 %v676_v20 }
 0x132   : > { %v2483_v25 = vpop.f32.mrb[0].mxu0  ;;  %v2491_v26 = vpop.f32.mrb[0].mxu1 }
 0x133   : > { %v856_v29 = vadd.f32 %v2483_v25, %v679_v21  ;;  %v864_v30 = vadd.f32 %v2491_v26, %v687_v22  ;;  %v791_v31 = vpop.f32.mrb[1].mxu0  ;;  %v823_v32 = vpop.f32.mrb[1].mxu1 }
 0x134   : > { %v854_v35 = vadd.f32 %v791_v31, %v677_v23  ;;  %v862_v36 = vadd.f32 %v823_v32, %v685_v24  ;;  %v2484_v37 = vpop.f32.mrb[2].mxu0  ;;  %v2492_v38 = vpop.f32.mrb[2].mxu1 }
 0x135   : > { %872 = vst [vmem:[#allocation2 + $0x10] sm:$0xff] %v856_v29  ;;  %880 = vst [vmem:[#allocation2 + $0x50] sm:$0xff] %v864_v30  ;;  %v857_v39 = vadd.f32 %v2484_v37, %v680_v27  ;;  %v865_v40 = vadd.f32 %v2492_v38, %v688_v28  ;;  %v794_v41 = vpop.f32.mrb[3].mxu0  ;;  %v826_v42 = vpop.f32.mrb[3].mxu1 }
 0x136   : > { %870 = vst [vmem:[#allocation2] sm:$0xff] %v854_v35  ;;  %878 = vst [vmem:[#allocation2 + $0x40] sm:$0xff] %v862_v36  ;;  %v855_v43 = vadd.f32 %v794_v41, %v678_v33  ;;  %v863_v44 = vadd.f32 %v826_v42, %v686_v34 }
 0x137   : > { %873 = vst [vmem:[#allocation2 + $0x18] sm:$0xff] %v857_v39  ;;  %881 = vst [vmem:[#allocation2 + $0x58] sm:$0xff] %v865_v40 }
 0x138   : > { %871 = vst [vmem:[#allocation2 + $0x8] sm:$0xff] %v855_v43  ;;  %879 = vst [vmem:[#allocation2 + $0x48] sm:$0xff] %v863_v44 }
 0x13a   : > { %v2487_v49 = vpop.f32.mrb[4].mxu0  ;;  %v2495_v50 = vpop.f32.mrb[4].mxu1 }
 0x13b   : > { %v860_v53 = vadd.f32 %v2487_v49, %v683_v45  ;;  %v868_v54 = vadd.f32 %v2495_v50, %v691_v46  ;;  %v807_v55 = vpop.f32.mrb[5].mxu0  ;;  %v839_v56 = vpop.f32.mrb[5].mxu1 }
 0x13c   : > { %v858_v59 = vadd.f32 %v807_v55, %v681_v47  ;;  %v866_v60 = vadd.f32 %v839_v56, %v689_v48  ;;  %v2488_v61 = vpop.f32.mrb[6].mxu0  ;;  %v2496_v62 = vpop.f32.mrb[6].mxu1 }
 0x13d   : > { %876 = vst [vmem:[#allocation2 + $0x30] sm:$0xff] %v860_v53  ;;  %884 = vst [vmem:[#allocation2 + $0x70] sm:$0xff] %v868_v54  ;;  %v861_v63 = vadd.f32 %v2488_v61, %v684_v51  ;;  %v869_v0 = vadd.f32 %v2496_v62, %v692_v52  ;;  %v810_v1 = vpop.f32.mrb[7].mxu0  ;;  %v842_v2 = vpop.f32.mrb[7].mxu1 }
 0x13e   : > { %874 = vst [vmem:[#allocation2 + $0x20] sm:$0xff] %v858_v59  ;;  %882 = vst [vmem:[#allocation2 + $0x60] sm:$0xff] %v866_v60  ;;  %v859_v3 = vadd.f32 %v810_v1, %v682_v57  ;;  %v867_v4 = vadd.f32 %v842_v2, %v690_v58 }
 0x13f   : > { %877 = vst [vmem:[#allocation2 + $0x38] sm:$0xff] %v861_v63  ;;  %885 = vst [vmem:[#allocation2 + $0x78] sm:$0xff] %v869_v0 }
 0x140   : > { %875 = vst [vmem:[#allocation2 + $0x28] sm:$0xff] %v859_v3  ;;  %883 = vst [vmem:[#allocation2 + $0x68] sm:$0xff] %v867_v4 }
 0x141 PF: > { %v913_v5 = vld [vmem:[%s2899_s15 + $0x40] sm:$0xff]  ;;  %v915_v6 = vld [vmem:[%s2899_s15 + $0x50] sm:$0xff]  ;;  %v2742_v7 = vmov 0   ;;  %v914_v8 = vld [vmem:[%s2899_s15 + $0x48] sm:$0xff]  ;;  %s2743_s29 = smov 127   ;;  %s2744_s21 = smov 1  }
 0x142   : > { %2580 = vset.pattern.permute.xlu0 %v2742_v7  ;;  %2581 = vset.pattern.permute.xlu1 %v2742_v7  ;;  %v916_v9 = vld [vmem:[%s2899_s15 + $0x58] sm:$0xff]  ;;  %v917_v10 = vld [vmem:[%s2899_s15 + $0x60] sm:$0xff]  ;;  %v918_v11 = vld [vmem:[%s2899_s15 + $0x68] sm:$0xff]  ;;  %s2745_s28 = smov 3   ;;  %s2747_s26 = smov 2  }
 0x143   : > { %963 = vperm.xlu0 %2580, %v913_v5   ;;  %973 = vperm.xlu1 %2581, %v915_v6   ;;  %v919_v12 = vld [vmem:[%s2899_s15 + $0x70] sm:$0xff]  ;;  %v920_v13 = vld [vmem:[%s2899_s15 + $0x78] sm:$0xff]  ;;  %v905_v14 = vld [vmem:[%s2899_s15] sm:$0xff] }
 0x144   : > { %v906_v15 = vld [vmem:[%s2899_s15 + $0x8] sm:$0xff]  ;;  %v907_v16 = vld [vmem:[%s2899_s15 + $0x10] sm:$0xff]  ;;  %v908_v17 = vld [vmem:[%s2899_s15 + $0x18] sm:$0xff] }
 0x145   : > { %v909_v18 = vld [vmem:[%s2899_s15 + $0x20] sm:$0xff]  ;;  %v910_v19 = vld [vmem:[%s2899_s15 + $0x28] sm:$0xff]  ;;  %v911_v20 = vld [vmem:[%s2899_s15 + $0x30] sm:$0xff] }
 0x146   : > { %v912_v21 = vld [vmem:[%s2899_s15 + $0x38] sm:$0xff]  ;;  %v2945_v22 = vld [vmem:[%s2879_s25] sm:$0xff]   ;;  %v2948_v23 = vld [vmem:[%s2879_s25 + $0x8] sm:$0xff]  }
 0x147   : > { %968 = vperm.xlu0 %2580, %v914_v8   ;;  %978 = vperm.xlu1 %2581, %v916_v9   ;;  %v897_v24 = vld [vmem:[#allocation2 + $0x40] sm:$0xff]  ;;  %v899_v25 = vld [vmem:[#allocation2 + $0x50] sm:$0xff]  ;;  %v1025_v26 = vunpack.c.l.bf16 %v2945_v22  ;;  %v1027_v27 = vunpack.c.l.bf16 %v2948_v23  ;;  %v898_v32 = vld [vmem:[#allocation2 + $0x48] sm:$0xff]  ;;  %v1026_v35 = vunpack.c.h.bf16 %v2945_v22  ;;  %v1028_v39 = vunpack.c.h.bf16 %v2948_v23 }
 0x148   : > { %v2324_v33 = vld [vmem:[%s3676_s9 + $0x1] ss:$0 sm:$0xff]  ;;  %v900_v34 = vld [vmem:[#allocation2 + $0x58] sm:$0xff]  ;;  %v2962_v37 = vld [vmem:[%s2879_s25 + $0x10] sm:$0xff]   ;;  %2513 = vmatprep.mubr.bf16.mxu1 %v2945_v22 }
 0x149   : > { %v1029_v45 = vunpack.c.l.bf16 %v2962_v37  ;;  %v901_v46 = vld [vmem:[#allocation2 + $0x60] sm:$0xff]  ;;  %v902_v47 = vld [vmem:[#allocation2 + $0x68] sm:$0xff]  ;;  %v2975_v50 = vld [vmem:[%s2879_s25 + $0x18] sm:$0xff]   ;;  %v1030_v52 = vunpack.c.h.bf16 %v2962_v37  ;;  %s2746_s25 = smov 4  }
 0x14a   : > { %v1031_v58 = vunpack.c.l.bf16 %v2975_v50  ;;  %v903_v59 = vld [vmem:[#allocation2 + $0x70] sm:$0xff]  ;;  %v904_v60 = vld [vmem:[#allocation2 + $0x78] sm:$0xff]  ;;  %v1032_v0 = vunpack.c.h.bf16 %v2975_v50  ;;  %v889_v6 = vld [vmem:[#allocation2] sm:$0xff] }
 0x14b   : > { %983 = vperm.xlu0 %2580, %v917_v10   ;;  %988 = vperm.xlu1 %2581, %v918_v11   ;;  %v890_v7 = vld [vmem:[#allocation2 + $0x8] sm:$0xff] }
 0x14f   : > { %993 = vperm.xlu0 %2580, %v919_v12   ;;  %998 = vperm.xlu1 %2581, %v920_v13  }
 0x153   : > { %923 = vperm.xlu0 %2580, %v905_v14   ;;  %928 = vperm.xlu1 %2581, %v906_v15  }
 0x157   : > { %933 = vperm.xlu0 %2580, %v907_v16   ;;  %938 = vperm.xlu1 %2581, %v908_v17   ;;  %v891_v16 = vld [vmem:[#allocation2 + $0x10] sm:$0xff]  ;;  %v2323_v17 = vld [vmem:[%s3676_s9] ss:$0 sm:$0xff] }
 0x15b   : > { %943 = vperm.xlu0 %2580, %v909_v18   ;;  %948 = vperm.xlu1 %2581, %v910_v19   ;;  %v892_v18 = vld [vmem:[#allocation2 + $0x18] sm:$0xff] }
 0x15f   : > { %953 = vperm.xlu0 %2580, %v911_v20   ;;  %958 = vperm.xlu1 %2581, %v912_v21  }
 0x1c2   : > { %v964_v28 = vpop.permute.xlu0 %963  ;;  %v974_v29 = vpop.permute.xlu1 %973 }
 0x1c3   : > { %v2952_v30 = vmul.f32 %v964_v28, %v897_v24  ;;  %v2954_v31 = vmul.f32 %v974_v29, %v899_v25 }
 0x1c5   : > { %v1086_v36 = vsub.f32 %v2952_v30, %v1025_v26  ;;  %v1088_v38 = vsub.f32 %v2954_v31, %v1027_v27 }
 0x1c6   : > { %v969_v40 = vpop.permute.xlu0 %968  ;;  %v979_v41 = vpop.permute.xlu1 %978 }
 0x1c7   : > { %v2968_v42 = vmul.f32 %v969_v40, %v898_v32  ;;  %v1099_v43 = vmul.f32 %v2324_v33, %v1086_v36  ;;  %v2970_v44 = vmul.f32 %v979_v41, %v900_v34  ;;  %v1101_v49 = vmul.f32 %v2324_v33, %v1088_v38  ;;  %v893_v34 = vld [vmem:[#allocation2 + $0x20] sm:$0xff]  ;;  %v894_v36 = vld [vmem:[#allocation2 + $0x28] sm:$0xff] }
 0x1c9   : > { %v1087_v48 = vsub.f32 %v2968_v42, %v1026_v35  ;;  %1107 = vadd.xlane.f32.xlu0 %v1099_v43  ;;  %v1089_v51 = vsub.f32 %v2970_v44, %v1028_v39 }
 0x1ca   : > { %v984_v53 = vpop.permute.xlu0 %983  ;;  %v989_v54 = vpop.permute.xlu1 %988 }
 0x1cb   : > { %v2981_v55 = vmul.f32 %v984_v53, %v901_v46  ;;  %v1100_v56 = vmul.f32 %v2324_v33, %v1087_v48  ;;  %v2983_v57 = vmul.f32 %v989_v54, %v902_v47  ;;  %v1102_v62 = vmul.f32 %v2324_v33, %v1089_v51  ;;  %v895_v47 = vld [vmem:[#allocation2 + $0x30] sm:$0xff]  ;;  %v896_v48 = vld [vmem:[#allocation2 + $0x38] sm:$0xff] }
 0x1cd   : > { %v1090_v61 = vsub.f32 %v2981_v55, %v1029_v45  ;;  %1109 = vadd.xlane.f32.xlu1 %v1100_v56  ;;  %1111 = vadd.xlane.f32.xlu0 %v1101_v49  ;;  %v1091_v63 = vsub.f32 %v2983_v57, %v1030_v52 }
 0x1ce   : > { %v994_v1 = vpop.permute.xlu0 %993  ;;  %v999_v2 = vpop.permute.xlu1 %998 }
 0x1cf   : > { %v2991_v3 = vmul.f32 %v994_v1, %v903_v59  ;;  %v1103_v4 = vmul.f32 %v2324_v33, %v1090_v61  ;;  %v2993_v5 = vmul.f32 %v999_v2, %v904_v60  ;;  %v1104_v9 = vmul.f32 %v2324_v33, %v1091_v63  ;;  %v3035_v63 = vld [vmem:[%s2884_s19] sm:$0xff] }
 0x1d1   : > { %v1092_v8 = vsub.f32 %v2991_v3, %v1031_v58  ;;  %1113 = vadd.xlane.f32.xlu1 %v1102_v62  ;;  %1115 = vadd.xlane.f32.xlu0 %v1103_v4  ;;  %v1093_v10 = vsub.f32 %v2993_v5, %v1032_v0  ;;  %v3041_v4 = vld [vmem:[%s2884_s19 + $0x8] sm:$0xff] }
 0x1d2   : > { %v924_v11 = vpop.permute.xlu0 %923  ;;  %v929_v12 = vpop.permute.xlu1 %928 }
 0x1d3   : > { %v2999_v13 = vmul.f32 %v924_v11, %v889_v6  ;;  %v1105_v14 = vmul.f32 %v2324_v33, %v1092_v8  ;;  %v3001_v15 = vmul.f32 %v929_v12, %v890_v7  ;;  %v1106_v20 = vmul.f32 %v2324_v33, %v1093_v10  ;;  %v3051_v7 = vld [vmem:[%s2884_s19 + $0x10] sm:$0xff]  ;;  %v3060_v12 = vld [vmem:[%s2884_s19 + $0x20] sm:$0xff] }
 0x1d5   : > { %v1041_v19 = vsub.f32 %v2999_v13, %v1025_v26  ;;  %1117 = vadd.xlane.f32.xlu1 %v1104_v9  ;;  %1119 = vadd.xlane.f32.xlu0 %v1105_v14  ;;  %v1042_v21 = vsub.f32 %v3001_v15, %v1026_v35  ;;  %v3057_v9 = vld [vmem:[%s2884_s19 + $0x18] sm:$0xff] }
 0x1d6   : > { %v934_v24 = vpop.permute.xlu0 %933  ;;  %v939_v25 = vpop.permute.xlu1 %938 }
 0x1d7   : > { %v3008_v28 = vmul.f32 %v934_v24, %v891_v16  ;;  %v1054_v29 = vmul.f32 %v2323_v17, %v1041_v19  ;;  %v3010_v32 = vmul.f32 %v939_v25, %v892_v18  ;;  %v1055_v33 = vmul.f32 %v2323_v17, %v1042_v21  ;;  %v3068_v16 = vld [vmem:[%s2884_s19 + $0x28] sm:$0xff]  ;;  %v3074_v19 = vld [vmem:[%s2884_s19 + $0x30] sm:$0xff]  ;;  %v3084_v24 = vld [vmem:[%s2884_s19 + $0x38] sm:$0xff] }
 0x1d9   : > { %v1043_v38 = vsub.f32 %v3008_v28, %v1027_v27  ;;  %1062 = vadd.xlane.f32.xlu1 %v1054_v29  ;;  %v1044_v26 = vsub.f32 %v3010_v32, %v1028_v39  ;;  %1121 = vadd.xlane.f32.xlu0 %v1106_v20 }
 0x1da   : > { %v944_v35 = vpop.permute.xlu0 %943  ;;  %v949_v40 = vpop.permute.xlu1 %948 }
 0x1db   : > { %v3018_v41 = vmul.f32 %v944_v35, %v893_v34  ;;  %v1056_v43 = vmul.f32 %v2323_v17, %v1043_v38  ;;  %v3020_v46 = vmul.f32 %v949_v40, %v894_v36  ;;  %v1057_v39 = vmul.f32 %v2323_v17, %v1044_v26 }
 0x1dd   : > { %v1045_v27 = vsub.f32 %v3018_v41, %v1029_v45  ;;  %1066 = vadd.xlane.f32.xlu1 %v1056_v43  ;;  %v1046_v49 = vsub.f32 %v3020_v46, %v1030_v52  ;;  %1064 = vadd.xlane.f32.xlu0 %v1055_v33 }
 0x1de   : > { %v954_v51 = vpop.permute.xlu0 %953  ;;  %v959_v53 = vpop.permute.xlu1 %958 }
 0x1df   : > { %v3026_v54 = vmul.f32 %v954_v51, %v895_v47  ;;  %v1058_v56 = vmul.f32 %v2323_v17, %v1045_v27  ;;  %v3028_v59 = vmul.f32 %v959_v53, %v896_v48  ;;  %v1059_v52 = vmul.f32 %v2323_v17, %v1046_v49 }
 0x1e1   : > { %3701 = vst [vmem:[#allocation10_spill] sm:$0xff] %v3026_v54  ;;  %3702 = vst [vmem:[#allocation11_spill] sm:$0xff] %v3028_v59  ;;  %v1047_v60 = vsub.f32 %v3026_v54, %v1031_v58  ;;  %1070 = vadd.xlane.f32.xlu1 %v1058_v56  ;;  %v1048_v45 = vsub.f32 %v3028_v59, %v1032_v0  ;;  %1068 = vadd.xlane.f32.xlu0 %v1057_v39 }
 0x1e3   : > { %v1061_v61 = vmul.f32 %v2323_v17, %v1048_v45  ;;  %v1060_v62 = vmul.f32 %v2323_v17, %v1047_v60 }
 0x1e5   : > { %1072 = vadd.xlane.f32.xlu0 %v1059_v52 }
 0x256   : > { %v1108_v1 = vpop.xlane.xlu0 %1107 }
 0x257   : > { %v3038_v2 = vadd.f32 %v1108_v1, %v3035_v63 }
 0x259   : > { %1139 = vrot.lane.b32.xlu1 %v3038_v2, %s2743_s29 }
 0x25a   : > { %v1110_v58 = vpop.xlane.xlu1 %1109  ;;  %v1112_v6 = vpop.xlane.xlu0 %1111 }
 0x25b   : > { %v3046_v0 = vadd.f32 %v1110_v58, %v3041_v4  ;;  %v3054_v8 = vadd.f32 %v1112_v6, %v3051_v7 }
 0x25d   : > { %1141 = vrot.lane.b32.xlu0 %v3046_v0, %s2743_s29 }
 0x25e   : > { %v1114_v10 = vpop.xlane.xlu1 %1113  ;;  %v1116_v11 = vpop.xlane.xlu0 %1115 }
 0x25f   : > { %v3063_v14 = vadd.f32 %v1114_v10, %v3057_v9  ;;  %v3071_v17 = vadd.f32 %v1116_v11, %v3060_v12 }
 0x262   : > { %v1118_v18 = vpop.xlane.xlu1 %1117  ;;  %v1120_v20 = vpop.xlane.xlu0 %1119 }
 0x263   : > { %v3077_v21 = vadd.f32 %v1118_v18, %v3068_v16  ;;  %v3087_v25 = vadd.f32 %v1120_v20, %v3074_v19 }
 0x266   : > { %v1122_v29 = vpop.xlane.xlu0 %1121  ;;  %v1063_v36 = vpop.xlane.xlu1 %1062 }
 0x267   : > { %v3090_v34 = vadd.f32 %v1122_v29, %v3084_v24  ;;  %v3099_v40 = vadd.f32 %v1063_v36, %v3035_v63 }
 0x26a   : > { %v1065_v38 = vpop.xlane.xlu0 %1064  ;;  %v1067_v26 = vpop.xlane.xlu1 %1066 }
 0x26b   : > { %v3105_v27 = vadd.f32 %v1065_v38, %v3041_v4  ;;  %v3122_v52 = vadd.f32 %v1067_v26, %v3051_v7 }
 0x26e   : > { %v1069_v33 = vpop.xlane.xlu0 %1068  ;;  %v1071_v35 = vpop.xlane.xlu1 %1070 }
 0x26f   : > { %v3119_v45 = vadd.f32 %v1069_v33, %v3057_v9  ;;  %v3138_v11 = vadd.f32 %v1071_v35, %v3060_v12 }
 0x272   : > { %v1073_v43 = vpop.xlane.xlu0 %1072 }
 0x273   : > { %v3153_v33 = vadd.f32 %v1073_v43, %v3068_v16 }
 0x27c   : > { %1076 = vadd.xlane.f32.xlu0 %v1061_v61 }
 0x27d   : > { %1074 = vadd.xlane.f32.xlu1 %v1060_v62 }
 0x28e   : > { %1143 = vrot.lane.b32.xlu1 %v3054_v8, %s2743_s29 }
 0x292   : > { %1145 = vrot.lane.b32.xlu0 %v3063_v14, %s2743_s29  ;;  %1147 = vrot.lane.b32.xlu1 %v3071_v17, %s2743_s29 }
 0x296   : > { %1151 = vrot.lane.b32.xlu0 %v3087_v25, %s2743_s29  ;;  %1149 = vrot.lane.b32.xlu1 %v3077_v21, %s2743_s29 }
 0x29a   : > { %1153 = vrot.lane.b32.xlu1 %v3090_v34, %s2743_s29 }
 0x2cb   : > { %v1140_v47 = vpop.permute.xlu1 %1139 }
 0x2cc   : > { %v3102_v48 = vmax.f32 %v3099_v40, %v1140_v47 }
 0x2ce   : > { %1203 = vrot.lane.b32.xlu0 %v3102_v48, %s2744_s21 }
 0x2cf   : > { %v1142_v39 = vpop.permute.xlu0 %1141 }
 0x2d0   : > { %v3112_v51 = vmax.f32 %v3105_v27, %v1142_v39 }
 0x2d2   : > { %1205 = vrot.lane.b32.xlu1 %v3112_v51, %s2744_s21 }
 0x309   : > { %v1077_v56 = vpop.xlane.xlu0 %1076 }
 0x30a   : > { %v1075_v60 = vpop.xlane.xlu1 %1074 }
 0x30b   : > { %v3131_v6 = vadd.f32 %v1075_v60, %v3074_v19  ;;  %v3163_v60 = vadd.f32 %v1077_v56, %v3084_v24 }
 0x30d   : > { %v1146_v61 = vpop.permute.xlu0 %1145 }
 0x30e   : > { %v3125_v62 = vmax.f32 %v3119_v45, %v1146_v61  ;;  %v1144_v1 = vpop.permute.xlu1 %1143 }
 0x30f   : > { %v3128_v58 = vmax.f32 %v3122_v52, %v1144_v1 }
 0x310   : > { %1209 = vrot.lane.b32.xlu1 %v3125_v62, %s2744_s21 }
 0x311   : > { %v1152_v20 = vpop.permute.xlu0 %1151  ;;  %1207 = vrot.lane.b32.xlu0 %v3128_v58, %s2744_s21 }
 0x312   : > { %v3145_v29 = vmax.f32 %v3131_v6, %v1152_v20  ;;  %v1148_v36 = vpop.permute.xlu1 %1147 }
 0x313   : > { %v3148_v38 = vmax.f32 %v3138_v11, %v1148_v36 }
 0x315   : > { %1211 = vrot.lane.b32.xlu0 %v3148_v38, %s2744_s21 }
 0x316   : > { %v1150_v47 = vpop.permute.xlu1 %1149 }
 0x317   : > { %v3160_v39 = vmax.f32 %v3153_v33, %v1150_v47 }
 0x319   : > { %1215 = vrot.lane.b32.xlu0 %v3145_v29, %s2744_s21  ;;  %1213 = vrot.lane.b32.xlu1 %v3160_v39, %s2744_s21 }
 0x31a   : > { %v1154_v43 = vpop.permute.xlu1 %1153 }
 0x31b   : > { %v3172_v1 = vmax.f32 %v3163_v60, %v1154_v43 }
 0x31d   : > { %1217 = vrot.lane.b32.xlu1 %v3172_v1, %s2744_s21 }
 0x340   : > { %v1204_v56 = vpop.permute.xlu0 %1203 }
 0x341   : > { %v1227_v36 = vsub.f32 %v3038_v2, %v1204_v56 }
 0x343   : > { %v1235_v47 = vmul.f32 1.442695, %v1227_v36 }
 0x344   : > { %v1206_v61 = vpop.permute.xlu1 %1205 }
 0x345   : > { %2625 = vpow2.f32 %v1235_v47  ;;  %v1228_v26 = vsub.f32 %v3046_v0, %v1206_v61 }
 0x347   : > { %v1237_v35 = vmul.f32 1.442695, %v1228_v26 }
 0x349   : > { %2627 = vpow2.f32 %v1237_v35 }
 0x34f   : > { %v3180_v18 = vpop.eup %2625 }
 0x350   : > { %1259 = vrot.lane.b32.xlu0 %v3180_v18, %s2743_s29 }
 0x353   : > { %v3184_v43 = vpop.eup %2627 }
 0x354   : > { %1261 = vrot.lane.b32.xlu1 %v3184_v43, %s2743_s29 }
 0x382   : > { %v1210_v20 = vpop.permute.xlu1 %1209 }
 0x383   : > { %v1230_v2 = vsub.f32 %v3063_v14, %v1210_v20  ;;  %v1208_v56 = vpop.permute.xlu0 %1207 }
 0x384   : > { %v1229_v36 = vsub.f32 %v3054_v8, %v1208_v56 }
 0x385   : > { %v1241_v47 = vmul.f32 1.442695, %v1230_v2 }
 0x386   : > { %v1239_v0 = vmul.f32 1.442695, %v1229_v36 }
 0x387   : > { %2629 = vpow2.f32 %v1241_v47  ;;  %v1212_v26 = vpop.permute.xlu0 %1211 }
 0x388   : > { %2631 = vpow2.f32 %v1239_v0  ;;  %v1231_v35 = vsub.f32 %v3071_v17, %v1212_v26 }
 0x38a   : > { %v1243_v61 = vmul.f32 1.442695, %v1231_v35 }
 0x38b   : > { %v1216_v10 = vpop.permute.xlu0 %1215  ;;  %v1214_v53 = vpop.permute.xlu1 %1213 }
 0x38c   : > { %2633 = vpow2.f32 %v1243_v61  ;;  %v1233_v49 = vsub.f32 %v3087_v25, %v1216_v10  ;;  %v1232_v59 = vsub.f32 %v3077_v21, %v1214_v53  ;;  %v3704_v53 = vsub.f32 %v3105_v27, %v3112_v51 }
 0x38d   : > { %v3705_v61 = vsub.f32 %v3119_v45, %v3125_v62 }
 0x38e   : > { %v1247_v54 = vmul.f32 1.442695, %v1233_v49  ;;  %v1245_v14 = vmul.f32 1.442695, %v1232_v59  ;;  %v1181_v10 = vmul.f32 1.442695, %v3704_v53 }
 0x38f   : > { %v1218_v20 = vpop.permute.xlu1 %1217 }
 0x390   : > { %2635 = vpow2.f32 %v1247_v54  ;;  %v1234_v8 = vsub.f32 %v3090_v34, %v1218_v20  ;;  %v2748_v34 = vmov 4   ;;  %v3706_v20 = vsub.f32 %v3122_v52, %v3128_v58 }
 0x391   : > { %v3194_v2 = vpop.eup %2629  ;;  %2637 = vpow2.f32 %v1245_v14  ;;  %2582 = vset.pattern.permute.xlu1 %v2748_v34  ;;  %2583 = vset.pattern.permute.xlu0 %v2748_v34  ;;  %v1185_v14 = vmul.f32 1.442695, %v3705_v61  ;;  %v3710_v52 = vsub.f32 %v3163_v60, %v3172_v1 }
 0x392   : > { %v3196_v56 = vpop.eup %2631  ;;  %v1249_v17 = vmul.f32 1.442695, %v1234_v8  ;;  %1265 = vrot.lane.b32.xlu1 %v3194_v2, %s2743_s29  ;;  %v1183_v8 = vmul.f32 1.442695, %v3706_v20 }
 0x393   : > { %1263 = vrot.lane.b32.xlu0 %v3196_v56, %s2743_s29  ;;  %v1193_v62 = vmul.f32 1.442695, %v3710_v52 }
 0x394   : > { %2639 = vpow2.f32 %v1249_v17  ;;  %v3708_v17 = vsub.f32 %v3131_v6, %v3145_v29 }
 0x396   : > { %v3202_v21 = vpop.eup %2633 }
 0x397   : > { %1267 = vrot.lane.b32.xlu0 %v3202_v21, %s2743_s29 }
 0x39a   : > { %v3206_v54 = vpop.eup %2635 }
 0x39b   : > { %v3208_v59 = vpop.eup %2637  ;;  %1271 = vrot.lane.b32.xlu0 %v3206_v54, %s2743_s29 }
 0x39c   : > { %1269 = vrot.lane.b32.xlu1 %v3208_v59, %s2743_s29 }
 0x39e   : > { %v3214_v25 = vpop.eup %2639 }
 0x39f   : > { %1347 = vrot.lane.b32.xlu0 %v3035_v63, %s2745_s28 }
 0x3a0   : > { %1273 = vrot.lane.b32.xlu1 %v3214_v25, %s2743_s29 }
 0x3a3   : > { %1315 = vrot.lane.b32.xlu0 %v3035_v63, %s2746_s25 }
 0x3a4   : > { %1349 = vrot.lane.b32.xlu1 %v3041_v4, %s2745_s28 }
 0x3a7   : > { %1435 = vrot.lane.b32.xlu0 %v3035_v63, %s2747_s26  ;;  %v3703_v63 = vsub.f32 %v3099_v40, %v3102_v48 }
 0x3a8   : > { %1317 = vrot.lane.b32.xlu1 %v3041_v4, %s2746_s25 }
 0x3a9   : > { %v1179_v49 = vmul.f32 1.442695, %v3703_v63  ;;  %v1191_v63 = vmul.f32 1.442695, %v3708_v17 }
 0x3ab   : > { %1351 = vrot.lane.b32.xlu0 %v3051_v7, %s2745_s28  ;;  %2641 = vpow2.f32 %v1179_v49  ;;  %v3709_v49 = vsub.f32 %v3153_v33, %v3160_v39 }
 0x3ac   : > { %1437 = vrot.lane.b32.xlu1 %v3041_v4, %s2747_s26  ;;  %2643 = vpow2.f32 %v1181_v10 }
 0x3ad   : > { %v1189_v45 = vmul.f32 1.442695, %v3709_v49 }
 0x3af   : > { %1319 = vrot.lane.b32.xlu0 %v3051_v7, %s2746_s25 }
 0x3b0   : > { %1353 = vrot.lane.b32.xlu1 %v3057_v9, %s2745_s28 }
 0x3b4   : > { %1321 = vrot.lane.b32.xlu1 %v3057_v9, %s2746_s25 }
 0x3b5   : > { %v2642_v4 = vpop.eup %2641 }
 0x3b6   : > { %v2644_v0 = vpop.eup %2643 }
 0x3c2   : > { %v1260_v36 = vpop.permute.xlu0 %1259 }
 0x3c3   : > { %v1283_v47 = vadd.f32 %v2642_v4, %v1260_v36 }
 0x3c5   : > { %2645 = vrcp.f32 %v1283_v47  ;;  %1387 = vrot.lane.b32.xlu0 %v1283_v47, %s2744_s21 }
 0x3c6   : > { %v1262_v26 = vpop.permute.xlu1 %1261 }
 0x3c7   : > { %v1284_v35 = vadd.f32 %v2644_v0, %v1262_v26 }
 0x3c9   : > { %2647 = vrcp.f32 %v1284_v35  ;;  %1389 = vrot.lane.b32.xlu1 %v1284_v35, %s2744_s21  ;;  %1439 = vrot.lane.b32.xlu0 %v3051_v7, %s2747_s26  ;;  %v3707_v7 = vsub.f32 %v3138_v11, %v3148_v38 }
 0x3ca   : > { %2649 = vpow2.f32 %v1185_v14 }
 0x3cb   : > { %2651 = vpow2.f32 %v1183_v8 }
 0x3cd   : > { %1441 = vrot.lane.b32.xlu1 %v3057_v9, %s2747_s26  ;;  %v1187_v9 = vmul.f32 1.442695, %v3707_v7 }
 0x3cf   : > { %v2646_v40 = vpop.eup %2645  ;;  %2653 = vpow2.f32 %v1187_v9 }
 0x3d0   : > { %v3252_v48 = vmul.f32 %v2646_v40, %v2642_v4  ;;  %2655 = vpow2.f32 %v1191_v63 }
 0x3d1   : > { %2657 = vpow2.f32 %v1189_v45 }
 0x3d2   : > { %2659 = vpow2.f32 %v1193_v62 }
 0x3d3   : > { %v2648_v27 = vpop.eup %2647 }
 0x3d4   : > { %v3254_v51 = vmul.f32 %v2648_v27, %v2644_v0  ;;  %v3274_v58 = vpop.eup %2649 }
 0x3d5   : > { %v2652_v11 = vpop.eup %2651 }
 0x3d9   : > { %v2654_v29 = vpop.eup %2653 }
 0x3da   : > { %v2656_v60 = vpop.eup %2655 }
 0x3db   : > { %v2658_v4 = vpop.eup %2657 }
 0x3dc   : > { %v2660_v26 = vpop.eup %2659 }
 0x404   : > { %v1266_v53 = vpop.permute.xlu1 %1265 }
 0x405   : > { %v1286_v38 = vadd.f32 %v3274_v58, %v1266_v53  ;;  %v1264_v10 = vpop.permute.xlu0 %1263 }
 0x406   : > { %v1285_v6 = vadd.f32 %v2652_v11, %v1264_v10 }
 0x407   : > { %1393 = vrot.lane.b32.xlu1 %v1286_v38, %s2744_s21 }
 0x408   : > { %2661 = vrcp.f32 %v1285_v6  ;;  %1391 = vrot.lane.b32.xlu0 %v1285_v6, %s2744_s21 }
 0x409   : > { %v1268_v33 = vpop.permute.xlu0 %1267 }
 0x40a   : > { %v1287_v39 = vadd.f32 %v2654_v29, %v1268_v33 }
 0x40b   : > { %1357 = vrot.lane.b32.xlu1 %v3068_v16, %s2745_s28 }
 0x40c   : > { %2663 = vrcp.f32 %v1287_v39  ;;  %1355 = vrot.lane.b32.xlu0 %v3060_v12, %s2745_s28 }
 0x40d   : > { %v1272_v1 = vpop.permute.xlu0 %1271 }
 0x40e   : > { %v1289_v36 = vadd.f32 %v2656_v60, %v1272_v1  ;;  %v1270_v47 = vpop.permute.xlu1 %1269 }
 0x40f   : > { %v1288_v0 = vadd.f32 %v2658_v4, %v1270_v47 }
 0x410   : > { %2665 = vrcp.f32 %v1289_v36  ;;  %1395 = vrot.lane.b32.xlu0 %v1287_v39, %s2744_s21 }
 0x411   : > { %2667 = vrcp.f32 %v1288_v0  ;;  %1397 = vrot.lane.b32.xlu1 %v1288_v0, %s2744_s21  ;;  %v3297_v63 = vpop.permute.xlu0 %1347  ;;  %v2599_v0 = vld [vmem:[%s3674_s7 + $0x88] sm:$0xff]  }
 0x412   : > { %v2662_v35 = vpop.eup %2661  ;;  %v1274_v40 = vpop.permute.xlu1 %1273 }
 0x413   : > { %v1290_v27 = vadd.f32 %v2660_v26, %v1274_v40  ;;  %v3285_v61 = vmul.f32 %v2662_v35, %v2652_v11  ;;  %v2598_v35 = vld [vmem:[%s3674_s7 + $0x50] sm:$0xff]  }
 0x414   : > { %1323 = vrot.lane.b32.xlu0 %v3060_v12, %s2746_s25 }
 0x415   : > { %2669 = vrcp.f32 %v1290_v27  ;;  %1325 = vrot.lane.b32.xlu1 %v3068_v16, %s2746_s25  ;;  %v1316_v11 = vpop.permute.xlu0 %1315 }
 0x416   : > { %v2664_v14 = vpop.eup %2663  ;;  %v3291_v20 = vpop.permute.xlu1 %1349  ;;  %2671 = vrcp.f32 %v1286_v38  ;;  %v1339_v10 = vmul.f32 %v1316_v11, %v3252_v48  ;;  %v2604_v11 = vld [vmem:[%s3674_s7 + $0x60] sm:$0xff]  }
 0x417   : > { %v3293_v8 = vmul.f32 %v2664_v14, %v2654_v29  ;;  %v2600_v14 = vld [vmem:[%s3674_s7 + $0x10] sm:$0xff]  }
 0x418   : > { %1399 = vrot.lane.b32.xlu0 %v1289_v36, %s2744_s21  ;;  %v2596_v36 = vld [vmem:[%s3674_s7 + $0x80] sm:$0xff]  }
 0x419   : > { %1401 = vrot.lane.b32.xlu1 %v1290_v27, %s2744_s21  ;;  %v3323_v6 = vpop.permute.xlu0 %1435  ;;  %2497 = vmatprep.subr.bf16.mxu1 %v2596_v36  ;;  %v2602_v27 = vld [vmem:[%s3674_s7 + $0x90] sm:$0xff]  }
 0x41a   : > { %v2666_v7 = vpop.eup %2665  ;;  %v1318_v9 = vpop.permute.xlu1 %1317  ;;  %2498 = vmatpush3.bf16.msra.mxu1 %v2596_v36  ;;  %v2614_v36 = vld [vmem:[%s3674_s7 + $0xb0] sm:$0xff]  }
 0x41b   : > { %v2668_v17 = vpop.eup %2667  ;;  %v3299_v49 = vmul.f32 %v2666_v7, %v2656_v60  ;;  %v1371_v60 = vadd.f32 %v3297_v63, %v1339_v10  ;;  %2499 = vmatprep.subr.bf16.mxu1 %v2599_v0  ;;  %v2601_v7 = vld [vmem:[%s3674_s7 + $0x58] sm:$0xff]   ;;  %v2607_v10 = vld [vmem:[%s3674_s7 + $0x68] sm:$0xff]  }
 0x41c   : > { %1443 = vrot.lane.b32.xlu0 %v3060_v12, %s2747_s26  ;;  %v3303_v45 = vmul.f32 %v2668_v17, %v2658_v4  ;;  %v2749_v4 = vmov 5   ;;  %v2605_v17 = vld [vmem:[%s3674_s7 + $0x98] sm:$0xff]  }
 0x41d   : > { %1445 = vrot.lane.b32.xlu1 %v3068_v16, %s2747_s26  ;;  %v1340_v16 = vmul.f32 %v1318_v9, %v3254_v51  ;;  %v3332_v51 = vpop.permute.xlu0 %1351 }
 0x41e   : > { %v3307_v52 = vpop.permute.xlu1 %1437  ;;  %2500 = vmatpush3.bf16.msra.mxu1 %v2599_v0 }
 0x41f   : > { %v2670_v62 = vpop.eup %2669  ;;  %v1372_v39 = vadd.f32 %v3291_v20, %v1340_v16  ;;  %2501 = vmatprep.subr.bf16.mxu1 %v2602_v27  ;;  %v2606_v16 = vld [vmem:[%s3674_s7 + $0x20] sm:$0xff]  }
 0x420   : > { %1359 = vrot.lane.b32.xlu0 %v3074_v19, %s2745_s28  ;;  %v3311_v53 = vmul.f32 %v2670_v62, %v2660_v26  ;;  %v2672_v12 = vpop.eup %2671  ;;  %v2597_v26 = vld [vmem:[%s3674_s7 + $0x8] sm:$0xff]   ;;  %v2603_v62 = vld [vmem:[%s3674_s7 + $0x18] sm:$0xff]  }
 0x421   : > { %1361 = vrot.lane.b32.xlu1 %v3084_v24, %s2745_s28  ;;  %v1298_v33 = vmul.f32 %v2672_v12, %v3274_v58  ;;  %v2595_v58 = vld [vmem:[%s3674_s7 + $0x48] sm:$0xff]   ;;  %v1320_v47 = vpop.permute.xlu0 %1319  ;;  %v2608_v12 = vld [vmem:[%s3674_s7 + $0xa0] sm:$0xff]  }
 0x422   : > { %v3315_v38 = vpop.permute.xlu1 %1353  ;;  %2502 = vmatpush3.bf16.msra.mxu1 %v2602_v27 }
 0x423   : > { %2503 = vmatprep.subr.bf16.mxu1 %v2605_v17 }
 0x424   : > { %1327 = vrot.lane.b32.xlu0 %v3074_v19, %s2746_s25 }
 0x425   : > { %1329 = vrot.lane.b32.xlu1 %v3084_v24, %s2746_s25 }
 0x426   : > { %v1322_v29 = vpop.permute.xlu1 %1321  ;;  %2504 = vmatpush3.bf16.msra.mxu1 %v2605_v17 }
 0x427   : > { %v1342_v1 = vmul.f32 %v1322_v29, %v1298_v33  ;;  %2505 = vmatprep.subr.bf16.mxu1 %v2608_v12 }
 0x428   : > { %1447 = vrot.lane.b32.xlu0 %v3074_v19, %s2747_s26  ;;  %v2593_v19 = vld [vmem:[%s3674_s7 + $0x40] sm:$0xff]  }
 0x429   : > { %1449 = vrot.lane.b32.xlu1 %v3084_v24, %s2747_s26  ;;  %v1374_v48 = vadd.f32 %v3315_v38, %v1342_v1  ;;  %v2594_v24 = vld [vmem:[%s3674_s7] sm:$0xff]   ;;  %2413 = vmatprep.subr.bf16.mxu0 %v2593_v19 }
 0x42a   : > { %2414 = vmatpush3.bf16.msra.mxu0 %v2594_v24  ;;  %2506 = vmatpush3.bf16.msra.mxu1 %v2608_v12  ;;  %v1341_v24 = vmul.f32 %v1320_v47, %v3285_v61  ;;  %v2616_v47 = vld [vmem:[%s3674_s7 + $0xb8] sm:$0xff]  }
 0x42b   : > { %2415 = vmatprep.subr.bf16.mxu0 %v2595_v58  ;;  %v2610_v58 = vld [vmem:[%s3674_s7 + $0x70] sm:$0xff]  }
 0x42c   : > { %1474 = vperm.xlu0 %2583, %v1372_v39   ;;  %v2609_v39 = vld [vmem:[%s3674_s7 + $0x28] sm:$0xff]   ;;  %v1373_v61 = vadd.f32 %v3332_v51, %v1341_v24 }
 0x42d   : > { %1469 = vperm.xlu1 %2582, %v1371_v60  }
 0x42e   : > { %2416 = vmatpush3.bf16.msra.mxu0 %v2597_v26 }
 0x42f   : > { %2417 = vmatprep.subr.bf16.mxu0 %v2598_v35 }
 0x430   : > { %2584 = vset.pattern.permute.xlu0 %v2749_v4 }
 0x431   : > { %1484 = vperm.xlu1 %2582, %v1374_v48  }
 0x432   : > { %2418 = vmatpush3.bf16.msra.mxu0 %v2600_v14 }
 0x433   : > { %2419 = vmatprep.subr.bf16.mxu0 %v2601_v7 }
 0x435   : > { %2586 = vset.pattern.permute.xlu1 %v2749_v4 }
 0x436   : > { %2420 = vmatpush3.bf16.msra.mxu0 %v2603_v62 }
 0x437   : > { %v1388_v40 = vpop.permute.xlu0 %1387  ;;  %2421 = vmatprep.subr.bf16.mxu0 %v2604_v11 }
 0x438   : > { %2673 = vrcp.f32 %v1388_v40 }
 0x43a   : > { %2422 = vmatpush3.bf16.msra.mxu0 %v2606_v16 }
 0x43b   : > { %v1390_v9 = vpop.permute.xlu1 %1389  ;;  %2423 = vmatprep.subr.bf16.mxu0 %v2607_v10  ;;  %v1440_v26 = vpop.permute.xlu0 %1439 }
 0x43c   : > { %2675 = vrcp.f32 %v1390_v9 }
 0x43e   : > { %2424 = vmatpush3.bf16.msra.mxu0 %v2609_v39 }
 0x43f   : > { %2425 = vmatprep.subr.bf16.mxu0 %v2610_v58  ;;  %v1442_v0 = vpop.permute.xlu1 %1441 }
 0x442   : > { %v2674_v29 = vpop.eup %2673 }
 0x443   : > { %v1412_v33 = vmul.f32 %v2674_v29, %v3180_v18 }
 0x445   : > { %v1427_v60 = vmul.f32 %v1412_v33, %v3297_v63  ;;  %v2611_v63 = vld [vmem:[%s3674_s7 + $0xa8] sm:$0xff]  }
 0x446   : > { %v2676_v1 = vpop.eup %2675  ;;  %2507 = vmatprep.subr.bf16.mxu1 %v2611_v63 }
 0x447   : > { %v1459_v48 = vadd.f32 %v3323_v6, %v1427_v60  ;;  %v1414_v19 = vmul.f32 %v2676_v1, %v3184_v43  ;;  %v2612_v6 = vld [vmem:[%s3674_s7 + $0x30] sm:$0xff]   ;;  %2508 = vmatpush3.bf16.msra.mxu1 %v2611_v63 }
 0x448   : > { %2426 = vmatpush3.bf16.msra.mxu0 %v2612_v6  ;;  %2509 = vmatprep.subr.bf16.mxu1 %v2614_v36 }
 0x449   : > { %1521 = vperm.xlu0 %2584, %v1459_v48   ;;  %v1428_v18 = vmul.f32 %v1414_v19, %v3291_v20  ;;  %v2613_v20 = vld [vmem:[%s3674_s7 + $0x78] sm:$0xff]  }
 0x44a   : > { %2427 = vmatprep.subr.bf16.mxu0 %v2613_v20 }
 0x44b   : > { %v1460_v43 = vadd.f32 %v3307_v52, %v1428_v18  ;;  %v2615_v52 = vld [vmem:[%s3674_s7 + $0x38] sm:$0xff]   ;;  %2510 = vmatpush3.bf16.msra.mxu1 %v2614_v36 }
 0x44c   : > { %2428 = vmatpush3.bf16.msra.mxu0 %v2615_v52  ;;  %2511 = vmatprep.subr.bf16.mxu1 %v2616_v47 }
 0x44d   : > { %2585 = vset.pattern.permute.xlu0 %v2748_v34  ;;  %1526 = vperm.xlu1 %2586, %v1460_v43  }
 0x44e   : > { %1479 = vperm.xlu0 %2585, %v1373_v61  }
 0x44f   : > { %2512 = vmatpush3.bf16.msra.mxu1 %v2616_v47 }
 0x452   : > { %2588 = vset.pattern.permute.xlu0 %v2749_v4  ;;  %2514 = vmatmul.mubr.bf16.vlgmr.msra.gmra.mrb[0].mxu1 %v2948_v23 }
 0x453   : > { %2517 = vmatprep.mubr.bf16.mxu1 %v2962_v37 }
 0x45a   : > { %2518 = vmatmul.mubr.bf16.gmra.mrb[4].mxu1 %v2975_v50  ;;  %v2056_v50 = vld [vmem:[%s2894_s3] sm:$0xff] }
 0x479   : > { %v1394_v35 = vpop.permute.xlu1 %1393 }
 0x47a   : > { %2677 = vrcp.f32 %v1394_v35  ;;  %v1392_v40 = vpop.permute.xlu0 %1391 }
 0x47b   : > { %2679 = vrcp.f32 %v1392_v40 }
 0x47d   : > { %v1358_v27 = vpop.permute.xlu1 %1357 }
 0x47e   : > { %v1356_v14 = vpop.permute.xlu0 %1355 }
 0x482   : > { %v1396_v7 = vpop.permute.xlu0 %1395 }
 0x483   : > { %2681 = vrcp.f32 %v1396_v7  ;;  %v1398_v9 = vpop.permute.xlu1 %1397 }
 0x484   : > { %v2678_v17 = vpop.eup %2677  ;;  %2683 = vrcp.f32 %v1398_v9  ;;  %v2036_v9 = vlaneseq }
 0x485   : > { %v2680_v62 = vpop.eup %2679  ;;  %v1418_v22 = vmul.f32 %v2678_v17, %v3194_v2 }
 0x486   : > { %v1324_v11 = vpop.permute.xlu0 %1323  ;;  %v1416_v12 = vmul.f32 %v2680_v62, %v3196_v56  ;;  %v3442_v62 = vand.u32 127, %v2036_v9 }
 0x487   : > { %v1326_v23 = vpop.permute.xlu1 %1325  ;;  %v1430_v33 = vmul.f32 %v1418_v22, %v3315_v38  ;;  %v1343_v56 = vmul.f32 %v1324_v11, %v3293_v8 }
 0x488   : > { %v1429_v16 = vmul.f32 %v1416_v12, %v3332_v51  ;;  %v1344_v6 = vmul.f32 %v1326_v23, %v3303_v45  ;;  %vm2039_vm0 = vcmp.eq.s32.totalorder %v3442_v62, 1  ;;  %vm2038_vm1 = vcmp.eq.s32.totalorder %v3442_v62, 0  ;;  %v3583_v62 = vld [vmem:[%s3675_s8] ss:$0 sm:$0xff] }
 0x489   : > { %v1462_v24 = vadd.f32 %v1442_v0, %v1430_v33  ;;  %v1375_v38 = vadd.f32 %v1356_v14, %v1343_v56 }
 0x48a   : > { %v1400_v10 = vpop.permute.xlu0 %1399  ;;  %v1461_v29 = vadd.f32 %v1440_v26, %v1429_v16  ;;  %v1376_v52 = vadd.f32 %v1358_v27, %v1344_v6  ;;  %v2057_v16 = vld [vmem:[%s2894_s3 + $0x8] sm:$0xff] }
 0x48b   : > { %2685 = vrcp.f32 %v1400_v10  ;;  %v1402_v39 = vpop.permute.xlu1 %1401 }
 0x48c   : > { %2687 = vrcp.f32 %v1402_v39  ;;  %1531 = vperm.xlu1 %2586, %v1461_v29  }
 0x48d   : > { %v2682_v60 = vpop.eup %2681 }
 0x48e   : > { %v2684_v1 = vpop.eup %2683  ;;  %v1420_v48 = vmul.f32 %v2682_v60, %v3202_v21  ;;  %v1444_v19 = vpop.permute.xlu0 %1443 }
 0x48f   : > { %v1446_v2 = vpop.permute.xlu1 %1445  ;;  %v1422_v51 = vmul.f32 %v2684_v1, %v3208_v59 }
 0x490   : > { %v1431_v18 = vmul.f32 %v1420_v48, %v1356_v14  ;;  %1536 = vperm.xlu1 %2586, %v1462_v24   ;;  %v2058_v48 = vld [vmem:[%s2894_s3 + $0x10] sm:$0xff] }
 0x491   : > { %v1432_v61 = vmul.f32 %v1422_v51, %v1358_v27 }
 0x492   : > { %v1463_v58 = vadd.f32 %v1444_v19, %v1431_v18  ;;  %v1360_v63 = vpop.permute.xlu0 %1359  ;;  %v2059_v18 = vld [vmem:[%s2894_s3 + $0x18] sm:$0xff] }
 0x493   : > { %v1362_v43 = vpop.permute.xlu1 %1361  ;;  %v1464_v0 = vadd.f32 %v1446_v2, %v1432_v61 }
 0x494   : > { %1541 = vperm.xlu0 %2588, %v1463_v58   ;;  %2587 = vset.pattern.permute.xlu1 %v2748_v34 }
 0x495   : > { %v2686_v21 = vpop.eup %2685  ;;  %1489 = vperm.xlu1 %2587, %v1375_v38  }
 0x496   : > { %v2688_v20 = vpop.eup %2687  ;;  %v1424_v8 = vmul.f32 %v2686_v21, %v3206_v54  ;;  %v1328_v36 = vpop.permute.xlu0 %1327  ;;  %v2060_v21 = vld [vmem:[%s2894_s3 + $0x20] sm:$0xff] }
 0x497   : > { %v1345_v59 = vmul.f32 %v1328_v36, %v3299_v49  ;;  %v1330_v47 = vpop.permute.xlu1 %1329  ;;  %v1426_v35 = vmul.f32 %v2688_v20, %v3214_v25 }
 0x498   : > { %v1433_v26 = vmul.f32 %v1424_v8, %v1360_v63  ;;  %2589 = vset.pattern.permute.xlu0 %v2748_v34  ;;  %v1346_v49 = vmul.f32 %v1330_v47, %v3311_v53  ;;  %v2061_v47 = vld [vmem:[%s2894_s3 + $0x28] sm:$0xff] }
 0x499   : > { %2590 = vset.pattern.permute.xlu1 %v2749_v4  ;;  %1494 = vperm.xlu0 %2589, %v1376_v52   ;;  %v1377_v40 = vadd.f32 %v1360_v63, %v1345_v59  ;;  %v1434_v7 = vmul.f32 %v1426_v35, %v1362_v43 }
 0x49a   : > { %v1448_v45 = vpop.permute.xlu0 %1447  ;;  %1546 = vperm.xlu1 %2590, %v1464_v0   ;;  %v1378_v25 = vadd.f32 %v1362_v43, %v1346_v49 }
 0x49b   : > { %v1465_v14 = vadd.f32 %v1448_v45, %v1433_v26  ;;  %v1450_v54 = vpop.permute.xlu1 %1449 }
 0x49c   : > { %v1466_v27 = vadd.f32 %v1450_v54, %v1434_v7  ;;  %v2062_v54 = vld [vmem:[%s2894_s3 + $0x30] sm:$0xff] }
 0x49d   : > { %1499 = vperm.xlu0 %2589, %v1377_v40  }
 0x49e   : > { %1551 = vperm.xlu1 %2590, %v1465_v14  }
 0x4a1   : > { %2592 = vset.pattern.permute.xlu0 %v2749_v4 }
 0x4a2   : > { %1556 = vperm.xlu1 %2590, %v1466_v27  }
 0x4a6   : > { %2591 = vset.pattern.permute.xlu1 %v2748_v34 }
 0x4a7   : > { %1504 = vperm.xlu1 %2591, %v1378_v25  }
 0x4ab   : > { %v3444_v11 = vpop.permute.xlu0 %1474 }
 0x4ac   : > { %v3440_v17 = vpop.permute.xlu1 %1469  ;;  %v1508_v22 = vmul.f32 %v3444_v11, %v3001_v15 }
 0x4ad   : > { %v1507_v23 = vmul.f32 %v3440_v17, %v2999_v13 }
 0x4af   : > { %v1515_v1 = vpack.c.bf16 %v1508_v22, %v1507_v23 }
 0x4b0   : > { %v3448_v37 = vpop.permute.xlu1 %1484 }
 0x4b1   : > { %v1510_v6 = vmul.f32 %v3448_v37, %v3010_v32 }
 0x4c8   : > { %v3451_v53 = vpop.permute.xlu0 %1521 }
 0x4c9   : > { %v2040_v34 = vsel %vm2039_vm0, %v3451_v53, 0.0  ;;  %v1559_v33 = vmul.f32 %v3451_v53, %v2952_v30 }
 0x4ca   : > { %v2048_v4 = vsel %vm2038_vm1, %v3440_v17, %v2040_v34 }
 0x4cb   : > { %v2064_v12 = vadd.f32 %v2056_v50, %v2048_v4 }
 0x4cc   : > { %v3464_v10 = vpop.permute.xlu1 %1526 }
 0x4cd   : > { %2072 = vst [vmem:[%s2914_s0] sm:$0xff] %v2064_v12  ;;  %v2041_v29 = vsel %vm2039_vm0, %v3464_v10, 0.0  ;;  %v1560_v39 = vmul.f32 %v3464_v10, %v2968_v42  ;;  %v3481_v24 = vpop.permute.xlu0 %1479  ;;  %v2063_v12 = vld [vmem:[%s2894_s3 + $0x38] sm:$0xff] }
 0x4ce   : > { %v2049_v15 = vsel %vm2038_vm1, %v3444_v11, %v2041_v29  ;;  %v1509_v2 = vmul.f32 %v3481_v24, %v3008_v28 }
 0x4cf   : > { %v2065_v13 = vadd.f32 %v2057_v16, %v2049_v15  ;;  %v1567_v60 = vpack.c.bf16 %v1560_v39, %v1559_v33  ;;  %v3711_v16 = vld [vmem:[#allocation10_spill] sm:$0xff]  ;;  %v3712_v33 = vld [vmem:[#allocation11_spill] sm:$0xff] }
 0x4d0   : > { %v1516_v20 = vpack.c.bf16 %v1510_v6, %v1509_v2 }
 0x4d1   : > { %2073 = vst [vmem:[%s2914_s0 + $0x8] sm:$0xff] %v2065_v13  ;;  %1832 = vmatprep.mubr.bf16.mxu0 %v1567_v60 }
 0x4d2   : > { %1833 = vmatmul.mubr.bf16.vlgmr.msra.gmra.mrb[0].mxu0 %v1515_v1 }
 0x50b   : > { %v3479_v19 = vpop.permute.xlu1 %1531 }
 0x50c   : > { %v2042_v30 = vsel %vm2039_vm0, %v3479_v19, 0.0  ;;  %v1561_v58 = vmul.f32 %v3479_v19, %v2954_v31 }
 0x50d   : > { %v2050_v42 = vsel %vm2038_vm1, %v3481_v24, %v2042_v30 }
 0x50e   : > { %v2066_v56 = vadd.f32 %v2058_v48, %v2050_v42 }
 0x50f   : > { %v3492_v51 = vpop.permute.xlu1 %1536 }
 0x510   : > { %2074 = vst [vmem:[%s2914_s0 + $0x10] sm:$0xff] %v2066_v56  ;;  %v1562_v63 = vmul.f32 %v3492_v51, %v2970_v44  ;;  %v2043_v38 = vsel %vm2039_vm0, %v3492_v51, 0.0 }
 0x511   : > { %v2051_v28 = vsel %vm2038_vm1, %v3448_v37, %v2043_v38 }
 0x512   : > { %v2067_v43 = vadd.f32 %v2059_v18, %v2051_v28  ;;  %v1568_v61 = vpack.c.bf16 %v1562_v63, %v1561_v58  ;;  %v1648_v63 = vmul.f32 %v3583_v62, %v3440_v17  ;;  %v3590_v28 = vld [vmem:[%s3675_s8 + $0x1] ss:$0 sm:$0xff] }
 0x513   : > { %v3507_v31 = vpop.permute.xlu0 %1541 }
 0x514   : > { %2075 = vst [vmem:[%s2914_s0 + $0x18] sm:$0xff] %v2067_v43  ;;  %v2044_v44 = vsel %vm2039_vm0, %v3507_v31, 0.0  ;;  %1840 = vmatprep.mubr.bf16.mxu0 %v1568_v61  ;;  %v3514_v8 = vpop.permute.xlu1 %1489  ;;  %v1563_v26 = vmul.f32 %v3507_v31, %v2981_v55  ;;  %v1649_v61 = vmul.f32 %v3583_v62, %v3444_v11 }
 0x515   : > { %v2052_v32 = vsel %vm2038_vm1, %v3514_v8, %v2044_v44  ;;  %1841 = vmatmul.mubr.bf16.gmra.mrb[4].mxu0 %v1516_v20  ;;  %v1511_v40 = vmul.f32 %v3514_v8, %v3018_v41  ;;  %v1935_v44 = vmul.f32 %v3590_v28, %v3451_v53 }
 0x516   : > { %v2068_v36 = vadd.f32 %v2060_v21, %v2052_v32 }
 0x518   : > { %2076 = vst [vmem:[%s2914_s0 + $0x20] sm:$0xff] %v2068_v36  ;;  %v3520_v52 = vpop.permute.xlu0 %1494  ;;  %v3599_v36 = vld [vmem:[%s3675_s8 + $0x2] ss:$0 sm:$0xff] }
 0x519   : > { %v1512_v59 = vmul.f32 %v3520_v52, %v3020_v46  ;;  %v3525_v0 = vpop.permute.xlu1 %1546 }
 0x51a   : > { %v1564_v35 = vmul.f32 %v3525_v0, %v2983_v57  ;;  %v2045_v45 = vsel %vm2039_vm0, %v3525_v0, 0.0 }
 0x51b   : > { %v2053_v46 = vsel %vm2038_vm1, %v3520_v52, %v2045_v45  ;;  %v1517_v27 = vpack.c.bf16 %v1512_v59, %v1511_v40  ;;  %v1936_v59 = vmul.f32 %v3590_v28, %v3464_v10  ;;  %v2012_v45 = vld [vmem:[%s2889_s2] sm:$0xff]  ;;  %v1650_v10 = vmul.f32 %v3583_v62, %v3481_v24 }
 0x51c   : > { %v2069_v14 = vadd.f32 %v2061_v47, %v2053_v46  ;;  %v1569_v7 = vpack.c.bf16 %v1564_v35, %v1563_v26  ;;  %v3543_v57 = vpop.permute.xlu0 %1499  ;;  %v2013_v46 = vld [vmem:[%s2889_s2 + $0x8] sm:$0xff] }
 0x51d   : > { %v3540_v55 = vpop.permute.xlu1 %1551  ;;  %v1513_v29 = vmul.f32 %v3543_v57, %v3711_v16  ;;  %v1937_v16 = vmul.f32 %v3590_v28, %v3479_v19 }
 0x51e   : > { %2077 = vst [vmem:[%s2914_s0 + $0x28] sm:$0xff] %v2069_v14  ;;  %v2046_v49 = vsel %vm2039_vm0, %v3540_v55, 0.0  ;;  %1848 = vmatprep.mubr.bf16.mxu0 %v1569_v7  ;;  %v1565_v50 = vmul.f32 %v3540_v55, %v2991_v3 }
 0x51f   : > { %v2054_v41 = vsel %vm2038_vm1, %v3543_v57, %v2046_v49  ;;  %1849 = vmatmul.mubr.bf16.gmra.mrb[8].mxu0 %v1517_v27 }
 0x520   : > { %v2070_v25 = vadd.f32 %v2062_v54, %v2054_v41 }
 0x521   : > { %v3551_v9 = vpop.permute.xlu1 %1556 }
 0x522   : > { %2078 = vst [vmem:[%s2914_s0 + $0x30] sm:$0xff] %v2070_v25  ;;  %v1566_v34 = vmul.f32 %v3551_v9, %v2993_v5  ;;  %v2047_v22 = vsel %vm2039_vm0, %v3551_v9, 0.0 }
 0x524   : > { %v1570_v4 = vpack.c.bf16 %v1566_v34, %v1565_v50 }
 0x525   : > { %v2515_v13 = vpop.f32.mrb[0].mxu1 }
 0x526   : > { %1856 = vmatprep.mubr.bf16.mxu0 %v1570_v4  ;;  %v3562_v23 = vpop.permute.xlu1 %1504  ;;  %v1899_v60 = vpop.f32.mrb[1].mxu1  ;;  %v1651_v4 = vmul.f32 %v3583_v62, %v3448_v37 }
 0x527   : > { %v1514_v39 = vmul.f32 %v3562_v23, %v3712_v33  ;;  %v2055_v3 = vsel %vm2038_vm1, %v3562_v23, %v2047_v22  ;;  %v2516_v1 = vpop.f32.mrb[2].mxu1 }
 0x528   : > { %v2071_v5 = vadd.f32 %v2063_v12, %v2055_v3  ;;  %v1902_v48 = vpop.f32.mrb[3].mxu1 }
 0x529   : > { %v1518_v15 = vpack.c.bf16 %v1514_v39, %v1513_v29  ;;  %v1938_v39 = vmul.f32 %v3590_v28, %v3492_v51  ;;  %v1653_v51 = vmul.f32 %v3583_v62, %v3520_v52  ;;  %v1940_v52 = vmul.f32 %v3590_v28, %v3525_v0 }
 0x52a   : > { %2079 = vst [vmem:[%s2914_s0 + $0x38] sm:$0xff] %v2071_v5  ;;  %v1654_v0 = vmul.f32 %v3583_v62, %v3543_v57 }
 0x52b   : > { %1857 = vmatmul.mubr.bf16.gmra.mrb[12].mxu0 %v1518_v15 }
 0x52d   : > { %v3572_v30 = vpop.f32.mrb[4].mxu1 }
 0x52e   : > { %v3574_v42 = vpop.f32.mrb[5].mxu1 }
 0x52f   : > { %v3576_v56 = vpop.f32.mrb[6].mxu1 }
 0x530   : > { %v3578_v2 = vpop.f32.mrb[7].mxu1 }
 0x5a5   : > { %v2429_v18 = vpop.f32.mrb[0].mxu0 }
 0x5a6   : > { %v2430_v58 = vpop.f32.mrb[1].mxu0 }
 0x5a7   : > { %v2431_v38 = vadd.f32 %v2430_v58, %v2429_v18  ;;  %v2432_v6 = vpop.f32.mrb[2].mxu0  ;;  %v1652_v18 = vmul.f32 %v3583_v62, %v3514_v8  ;;  %v1939_v8 = vmul.f32 %v3590_v28, %v3507_v31  ;;  %v2016_v31 = vld [vmem:[%s2889_s2 + $0x20] sm:$0xff] }
 0x5a8   : > { %v2433_v43 = vpop.f32.mrb[3].mxu0 }
 0x5a9   : > { %v2434_v21 = vadd.f32 %v2433_v43, %v2432_v6  ;;  %v1835_v20 = vadd.f32 %v2431_v38, %v1648_v63 }
 0x5ab   : > { %v1900_v17 = vadd.f32 %v1899_v60, %v1835_v20  ;;  %v1838_v32 = vadd.f32 %v2434_v21, %v1649_v61 }
 0x5ad   : > { %v1943_v47 = vadd.f32 %v1935_v44, %v1900_v17  ;;  %v1903_v11 = vadd.f32 %v1902_v48, %v1838_v32  ;;  %v2014_v48 = vld [vmem:[%s2889_s2 + $0x10] sm:$0xff] }
 0x5af   : > { %v1956_v26 = vadd.f32 %v3599_v36, %v1943_v47  ;;  %v1944_v35 = vadd.f32 %v1936_v59, %v1903_v11 }
 0x5b1   : > { %v1964_v40 = vmax.f32 %v1956_v26, 0.0  ;;  %v1957_v53 = vadd.f32 %v3599_v36, %v1944_v35 }
 0x5b3   : > { %v2020_v14 = vmax.f32 %v2012_v45, %v1964_v40  ;;  %v1965_v7 = vmax.f32 %v1957_v53, 0.0 }
 0x5b5   : > { %2028 = vst [vmem:[%s2909_s30] sm:$0xff] %v2020_v14  ;;  %v2377_v54 = vpack.c.bf16 %v1965_v7, %v1964_v40  ;;  %v2021_v27 = vmax.f32 %v2013_v46, %v1965_v7 }
 0x5b7   : > { %2378 = vst [vmem:[%s2904_s18] sm:$0xff] %v2377_v54   ;;  %2029 = vst [vmem:[%s2909_s30 + $0x8] sm:$0xff] %v2021_v27  ;;  %v1655_v54 = vmul.f32 %v3583_v62, %v3562_v23  ;;  %v1942_v23 = vmul.f32 %v3590_v28, %v3551_v9 }
 0x5e8   : > { %v2435_v49 = vpop.f32.mrb[4].mxu0 }
 0x5e9   : > { %v2436_v41 = vpop.f32.mrb[5].mxu0 }
 0x5ea   : > { %v2437_v25 = vadd.f32 %v2436_v41, %v2435_v49  ;;  %v2438_v50 = vpop.f32.mrb[6].mxu0 }
 0x5eb   : > { %v2439_v34 = vpop.f32.mrb[7].mxu0 }
 0x5ec   : > { %v1843_v12 = vadd.f32 %v2437_v25, %v1650_v10  ;;  %v2440_v22 = vadd.f32 %v2439_v34, %v2438_v50  ;;  %v1941_v50 = vmul.f32 %v3590_v28, %v3540_v55 }
 0x5ee   : > { %v1908_v29 = vadd.f32 %v2515_v13, %v1843_v12  ;;  %v1846_v33 = vadd.f32 %v2440_v22, %v1651_v4 }
 0x5f0   : > { %v1945_v3 = vadd.f32 %v1937_v16, %v1908_v29  ;;  %v1911_v24 = vadd.f32 %v2516_v1, %v1846_v33  ;;  %v2015_v1 = vld [vmem:[%s2889_s2 + $0x18] sm:$0xff]  ;;  %v2018_v16 = vld [vmem:[%s2889_s2 + $0x30] sm:$0xff] }
 0x5f1   : > { %v2019_v33 = vld [vmem:[%s2889_s2 + $0x38] sm:$0xff] }
 0x5f2   : > { %v1958_v5 = vadd.f32 %v3599_v36, %v1945_v3  ;;  %v1946_v15 = vadd.f32 %v1938_v39, %v1911_v24  ;;  %v2441_v60 = vpop.f32.mrb[8].mxu0 }
 0x5f3   : > { %v2442_v37 = vpop.f32.mrb[9].mxu0 }
 0x5f4   : > { %v1966_v58 = vmax.f32 %v1958_v5, 0.0  ;;  %v1959_v19 = vadd.f32 %v3599_v36, %v1946_v15  ;;  %v2443_v13 = vadd.f32 %v2442_v37, %v2441_v60  ;;  %v2444_v63 = vpop.f32.mrb[10].mxu0 }
 0x5f5   : > { %v2445_v38 = vpop.f32.mrb[11].mxu0 }
 0x5f6   : > { %v2022_v6 = vmax.f32 %v2014_v48, %v1966_v58  ;;  %v1967_v43 = vmax.f32 %v1959_v19, 0.0  ;;  %v2446_v61 = vadd.f32 %v2445_v38, %v2444_v63  ;;  %v1851_v21 = vadd.f32 %v2443_v13, %v1652_v18 }
 0x5f8   : > { %2030 = vst [vmem:[%s2909_s30 + $0x10] sm:$0xff] %v2022_v6  ;;  %v2382_v20 = vpack.c.bf16 %v1967_v43, %v1966_v58  ;;  %v2023_v44 = vmax.f32 %v2015_v1, %v1967_v43  ;;  %v1916_v17 = vadd.f32 %v3574_v42, %v1851_v21  ;;  %v1854_v32 = vadd.f32 %v2446_v61, %v1653_v51  ;;  %v2017_v42 = vld [vmem:[%s2889_s2 + $0x28] sm:$0xff] }
 0x5fa   : > { %2394 = vst [vmem:[%s2904_s18 + $0x8] sm:$0xff] %v2382_v20   ;;  %2031 = vst [vmem:[%s2909_s30 + $0x18] sm:$0xff] %v2023_v44  ;;  %v1947_v59 = vadd.f32 %v1939_v8, %v1916_v17  ;;  %v1919_v47 = vadd.f32 %v3578_v2, %v1854_v32 }
 0x5fc   : > { %v1960_v11 = vadd.f32 %v3599_v36, %v1947_v59  ;;  %v1948_v26 = vadd.f32 %v1940_v52, %v1919_v47 }
 0x5fe   : > { %v1968_v35 = vmax.f32 %v1960_v11, 0.0  ;;  %v1961_v45 = vadd.f32 %v3599_v36, %v1948_v26  ;;  %v2447_v40 = vpop.f32.mrb[12].mxu0 }
 0x5ff   : > { %v2448_v53 = vpop.f32.mrb[13].mxu0 }
 0x600   : > { %v2024_v46 = vmax.f32 %v2016_v31, %v1968_v35  ;;  %v1969_v14 = vmax.f32 %v1961_v45, 0.0  ;;  %v2449_v7 = vadd.f32 %v2448_v53, %v2447_v40  ;;  %v2450_v2 = vpop.f32.mrb[14].mxu0 }
 0x601   : > { %v2451_v27 = vpop.f32.mrb[15].mxu0 }
 0x602   : > { %2032 = vst [vmem:[%s2909_s30 + $0x20] sm:$0xff] %v2024_v46  ;;  %v2387_v49 = vpack.c.bf16 %v1969_v14, %v1968_v35  ;;  %v2025_v41 = vmax.f32 %v2017_v42, %v1969_v14  ;;  %v1859_v10 = vadd.f32 %v2449_v7, %v1654_v0  ;;  %v2452_v25 = vadd.f32 %v2451_v27, %v2450_v2 }
 0x604   : > { %2395 = vst [vmem:[%s2904_s18 + $0x10] sm:$0xff] %v2387_v49   ;;  %2033 = vst [vmem:[%s2909_s30 + $0x28] sm:$0xff] %v2025_v41  ;;  %v1924_v57 = vadd.f32 %v3572_v30, %v1859_v10  ;;  %v1862_v34 = vadd.f32 %v2452_v25, %v1655_v54 }
 0x606   : > { %v1949_v62 = vadd.f32 %v1941_v50, %v1924_v57  ;;  %v1927_v4 = vadd.f32 %v3576_v56, %v1862_v34 }
 0x608   : > { %v1962_v12 = vadd.f32 %v3599_v36, %v1949_v62  ;;  %v1950_v22 = vadd.f32 %v1942_v23, %v1927_v4 }
 0x60a   : > { %v1970_v29 = vmax.f32 %v1962_v12, 0.0  ;;  %v1963_v55 = vadd.f32 %v3599_v36, %v1950_v22 }
 0x60c   : > { %v2026_v39 = vmax.f32 %v2018_v16, %v1970_v29  ;;  %v1971_v3 = vmax.f32 %v1963_v55, 0.0 }
 0x60e   : > { %2034 = vst [vmem:[%s2909_s30 + $0x30] sm:$0xff] %v2026_v39  ;;  %v2392_v30 = vpack.c.bf16 %v1971_v3, %v1970_v29  ;;  %v2027_v24 = vmax.f32 %v2019_v33, %v1971_v3 }
 0x610   : > { %2396 = vst [vmem:[%s2904_s18 + $0x18] sm:$0xff] %v2392_v30   ;;  %2035 = vst [vmem:[%s2909_s30 + $0x38] sm:$0xff] %v2027_v24 }
 0x611 PF: > { %s3713_s25 = sld [smem:[#allocation8_spill]]  ;;  %s3714_s1 = sld [smem:[#allocation7_spill]] }
 0x612   : > { %s3715_s22 = sld [smem:[#allocation9_spill]] }
 0x617   : > { %s35_s23 = sadd.s32 1, %s3713_s25  }
 0x618   : > { %p32_p6 = scmp.ge.s32.totalorder %s35_s23, 4  }
 0x61a   :  { %34 = sbr.rel (!%p32_p6) target bundleno = 30 (0x1e), region = 144 }

// kernel: gnn_forward.5
= control target key start
LH: loop header
LB: loop body
LE: loop exit
PB: predicated region body
PF: predicated region fallthrough
CT: control target
= control target key end

     0   :  { %s3856_s0 = inlined_call_operand.vmem [shape: s32[2], index: 0, kind: input, shape index: {}]   ;;  %s3857_s2 = inlined_call_operand.vmem [shape: s8[256,128], index: 2, kind: input, shape index: {}]   ;;  %s3858_s3 = inlined_call_operand.vmem [shape: bf16[128,128], index: 3, kind: input, shape index: {}, may-alias: {3,4}]   ;;  %s3859_s4 = inlined_call_operand.vmem [shape: bf16[128,128], index: 4, kind: input, shape index: {}, may-alias: {3,4}]   ;;  %s3860_s5 = inlined_call_operand.vmem [shape: f32[256,1], index: 5, kind: input, shape index: {}]   ;;  %s3861_s6 = inlined_call_operand.vmem [shape: f32[128,8], index: 6, kind: input, shape index: {}]   ;;  %s3862_s7 = inlined_call_operand.vmem [shape: bf16[384,128], index: 7, kind: input, shape index: {}]   ;;  %s3863_s8 = inlined_call_operand.vmem [shape: f32[3,128], index: 8, kind: input, shape index: {}]   ;;  %s3864_s9 = inlined_call_operand.vmem [shape: f32[2,128], index: 9, kind: input, shape index: {}]   ;;  %s3865_s10 = inlined_call_operand.vmem [shape: f32[128,128], index: 10, kind: input, shape index: {}]   ;;  %s3866_s11 = inlined_call_operand.vmem [shape: f32[128,128], index: 11, kind: input, shape index: {}]   ;;  %s3867_s12 = inlined_call_operand.hbm [shape: bf16[128,128], index: 12, kind: output, shape index: {0}]   ;;  %s3868_s13 = inlined_call_operand.vmem [shape: f32[128,128], index: 13, kind: output, shape index: {1}]   ;;  %s3869_s14 = inlined_call_operand.vmem [shape: f32[128,128], index: 14, kind: output, shape index: {2}]   ;;  %s3870_s1 = inlined_call_operand.vmem [shape: s32[2], index: 1, kind: input, shape index: {}]  }
   0x1   :  { %3886 = sst [smem:[#allocation21_spill]] %s3857_s2  ;;  %s20_s15 = sshll.u32 %s3856_s0, 4  ;;  %s21_s15 = int_to_ptr.vmem [resolvable:$true] %s20_s15 }
   0x2   :  { %3887 = sst [smem:[#allocation22_spill]] %s3859_s4  ;;  %s24_s18 = sshll.u32 %s3870_s1, 4  ;;  %s25_s18 = int_to_ptr.vmem [resolvable:$true] %s24_s18 }
   0x3   :  { %3888 = sst [smem:[#allocation23_spill]] %s3863_s8  ;;  %s2741_s19 = scalar_lea.vmem %s21_s15, 16 }
   0x4   :  { %3889 = sst [smem:[#allocation24_spill]] %s3867_s12  ;;  %p2742_p0 = scmp.ne.s32.totalorder %s21_s15, %s2741_s19 }
   0x5   :  { %p2746_p1 = scmp.lt.s32.totalorder %s21_s15, %s21_s15  ;;  %p2747_p2 = scmp.lt.s32.totalorder %s2741_s19, %s2741_s19 }
   0x7   :  { %p2748_p3 = por %p2747_p2, %p2746_p1 }
   0x9   :  { %p2749_p4 = pnand %p2748_p3, %p2742_p0 }
   0xb   :  { %2752 = shalt.err (!%p2749_p4)  }
   0xc   :  { %s2847_s20 = smov [#allocation4]   ;;  %s2753_s21 = scalar_lea.vmem %s25_s18, 16 }
   0xd   :  { %23 = dma.vmem_to_smem %s21_s15, 16, %s2847_s20, [#allocation3] }
   0xe   :  { %p2754_p5 = scmp.ne.s32.totalorder %s25_s18, %s2753_s21  ;;  %p2758_p6 = scmp.lt.s32.totalorder %s25_s18, %s25_s18 }
   0xf   :  { %p2759_p7 = scmp.lt.s32.totalorder %s2753_s21, %s2753_s21 }
  0x11   :  { %p2760_p8 = por %p2759_p7, %p2758_p6 }
  0x13   :  { %p2761_p9 = pnand %p2760_p8, %p2754_p5 }
  0x15   :  { %2764 = shalt.err (!%p2761_p9)  }
  0x16   :  { %s2848_s0 = smov [#allocation5]  }
  0x17   :  { %27 = dma.vmem_to_smem %s25_s18, 16, %s2848_s0, [#allocation3] }
  0x18   :  { %2817 = dma.done.wait [#allocation3], 32 }
  0x19   :  { %2818 = vsyncadd [#allocation3], 4294967264 }
  0x1a   :  { %29 = sfence }
  0x1b   :  { %30 = vsyncpa [#allocation7], 0 }
  0x1c   :  { %32 = vsyncpa [#allocation7 + $0x1], 0  ;;  %s2941_s1 = smov 0   ;;  %s2943_s22 = smov 0  }
  0x1d   :  { %s2945_s23 = smov 0   ;;  %s2947_s24 = smov 0  }
  0x1e   :  { %s2949_s25 = smov 0   ;;  %s2951_s26 = smov 0  }
  0x1f LB: > { %3890 = sst [smem:[#allocation10_spill]] %s2825_s1  ;;  %s2305_s27 = sadd.s32 4294967295, %s2845_s26   ;;  %s2845_s26 = sphi %s2951_s26, %s38_s26   ;;  %s2841_s25 = sphi %s2949_s25, %s3928_s25   ;;  %s2837_s24 = sphi %s2947_s24, %s3927_s24   ;;  %s2833_s23 = sphi %s2945_s23, %s3926_s23   ;;  %s2829_s22 = sphi %s2943_s22, %s3925_s22   ;;  %s2825_s1 = sphi %s2941_s1, %s3924_s1  }
  0x20   : > { %3891 = sst [smem:[#allocation11_spill]] %s2829_s22  ;;  %s2306_s28 = sadd.s32 4294967294, %s2845_s26  }
  0x21   : > { %3892 = sst [smem:[#allocation12_spill]] %s2833_s23  ;;  %s50_s29 = sadd.s32 1, %s2841_s25 }
  0x22   : > { %3893 = sst [smem:[#allocation13_spill]] %s2841_s25  ;;  %s312_s30 = sadd.s32 1, %s2833_s23 }
  0x23   : > { %3894 = sst [smem:[#allocation14_spill]] %s2845_s26  ;;  %p52_p10 = scmp.ge.s32.totalorder %s50_s29, 2 }
  0x24   : > { %p322_p11 = scmp.ne.s32.totalorder %s2833_s23, %s2829_s22  ;;  %p323_p12 = scmp.eq.s32.totalorder %s2305_s27, 1 }
  0x25   : > { %p328_p13 = scmp.ne.s32.totalorder %s2829_s22, %s2825_s1  ;;  %s3930_s29 = smov (%p52_p10, %s50_s29), 0 }
  0x26   : > { %3895 = sst [smem:[#allocation15_spill]] %s3930_s29  ;;  %p2981_p0 = por %p323_p12, %p322_p11 }
  0x27   : > { %p329_p1 = scmp.eq.s32.totalorder %s2306_s28, 1  ;;  %s309_s16 = ssub.s32 %s2841_s25, %s3930_s29 }
  0x28   : > { %s3896_s15 = scalar_select %p2981_p0, 1, 0 }
  0x29   : > { %p2309_p2 = scmp.ge.s32.totalorder %s2845_s26, 1  ;;  %p310_p3 = scmp.eq.s32.totalorder %s309_s16, 0 }
  0x2a   : > { %3897 = sst [smem:[#allocation16_spill]] %s3896_s15  ;;  %p2988_p4 = por %p329_p1, %p328_p13 }
  0x2b   : > { %p482_p5 = scmp.lt.s32.totalorder %s2845_s26, 3 }
  0x2c   : > { %s3898_s17 = scalar_select %p2988_p4, 1, 0 }
  0x2d   : > { %s2994_s18 = scalar_select %p310_p3, %s2833_s23, %s312_s30  }
  0x2e   : > { %3899 = sst [smem:[#allocation17_spill]] %s3898_s17  ;;  %p483_p6 = pnand %p2309_p2, %p482_p5 }
  0x2f   : > { %3900 = sst [smem:[#allocation18_spill]] %s2994_s18 }
  0x30   : > { %486 = sbr.rel (%p483_p6) target bundleno = 1584 (0x630), region = 60 }
  0x37   : > { %s3871_s19 = sand.u32 1, %s2829_s22   ;;  %s572_s20 = sld [smem:[#allocation4 + %s2837_s24]]  ;;  %v2849_v0 = vmov 0.0  }
  0x38   : > { %s3000_s21 = sshll.u32 %s3871_s19, 5  ;;  %s2311_s0 = sshll.u32 %s2837_s24, 2  ;;  %642 = vst [vmem:[#allocation2] sm:$0xff] %v2849_v0  ;;  %643 = vst [vmem:[#allocation2 + $0x8] sm:$0xff] %v2849_v0 }
  0x39   : > { %644 = vst [vmem:[#allocation2 + $0x10] sm:$0xff] %v2849_v0  ;;  %645 = vst [vmem:[#allocation2 + $0x18] sm:$0xff] %v2849_v0  ;;  %p574_p7 = scmp.lt.s32.totalorder %s2311_s0, 7  ;;  %s585_s27 = sld [smem:[#allocation4 + %s2837_s24]] }
  0x3a   : > { %646 = vst [vmem:[#allocation2 + $0x20] sm:$0xff] %v2849_v0  ;;  %647 = vst [vmem:[#allocation2 + $0x28] sm:$0xff] %v2849_v0  ;;  %s2315_s28 = sshll.u32 %s2837_s24, 3  ;;  %s2317_s30 = sshll.u32 %s2837_s24, 4 }
  0x3b   : > { %648 = vst [vmem:[#allocation2 + $0x30] sm:$0xff] %v2849_v0  ;;  %649 = vst [vmem:[#allocation2 + $0x38] sm:$0xff] %v2849_v0  ;;  %s3932_s0 = smov (!%p574_p7, %s2311_s0), 7  ;;  %p595_p8 = scmp.lt.s32.totalorder %s2315_s28, 15 }
  0x3c   : > { %650 = vst [vmem:[#allocation2 + $0x40] sm:$0xff] %v2849_v0  ;;  %651 = vst [vmem:[#allocation2 + $0x48] sm:$0xff] %v2849_v0  ;;  %p601_p10 = scmp.lt.s32.totalorder %s2317_s30, 31  ;;  %s3901_s4 = sld [smem:[#allocation22_spill]] }
  0x3d   : > { %652 = vst [vmem:[#allocation2 + $0x50] sm:$0xff] %v2849_v0  ;;  %653 = vst [vmem:[#allocation2 + $0x58] sm:$0xff] %v2849_v0  ;;  %p576_p9 = scmp.lt.s32.totalorder %s572_s20, 0  ;;  %s3934_s28 = smov (!%p595_p8, %s2315_s28), 15 }
  0x3e   : > { %654 = vst [vmem:[#allocation2 + $0x60] sm:$0xff] %v2849_v0  ;;  %655 = vst [vmem:[#allocation2 + $0x68] sm:$0xff] %v2849_v0  ;;  %s2316_s19 = sshll.u32 %s3934_s28, 2  ;;  %s3902_s2 = sld [smem:[#allocation21_spill]] }
  0x3f   : > { %656 = vst [vmem:[#allocation2 + $0x70] sm:$0xff] %v2849_v0  ;;  %657 = vst [vmem:[#allocation2 + $0x78] sm:$0xff] %v2849_v0  ;;  %s3936_s20 = smov (!%p576_p9, %s572_s20), 0  ;;  %s2313_s16 = sshll.u32 %s585_s27, 4 }
  0x40   : > { %s578_s29 = sadd.s32 %s3936_s20, %s3932_s0  ;;  %p587_p11 = scmp.lt.s32.totalorder %s2313_s16, 15 }
  0x41   : > { %s2312_s25 = sshll.u32 %s578_s29, 3  ;;  %s2320_s15 = sshll.u32 %s3934_s28, 3 }
  0x42   : > { %s3009_s17 = scalar_lea.vmem %s3901_s4, %s2316_s19  ;;  %s3938_s16 = smov (!%p587_p11, %s2313_s16), 15 }
  0x43   : > { %s3940_s30 = smov (!%p601_p10, %s2317_s30), 31  ;;  %s2314_s27 = sshll.u32 %s3938_s16, 2 }
  0x44   : > { %s3014_s12 = scalar_lea.vmem %s3902_s2, %s2312_s25  ;;  %s3019_s0 = scalar_lea.vmem %s3861_s6, %s2320_s15 }
  0x45   : > { %s3024_s23 = scalar_lea.vmem %s3858_s3, %s2314_s27  ;;  %s2318_s18 = sshll.u32 %s3940_s30, 3 }
  0x46   : > { %s3029_s1 = scalar_lea.vmem %s3860_s5, %s2318_s18  ;;  %s3034_s28 = scalar_lea.vmem %s3865_s10, %s2320_s15 }
  0x47   : > { %s3039_s20 = scalar_lea.vmem %s3866_s11, %s2320_s15  ;;  %s3044_s27 = scalar_lea.vmem %s3868_s13, %s2320_s15 }
  0x48   : > { %s3049_s4 = scalar_lea.vmem %s3869_s14, %s2320_s15  ;;  %s658_s18 = sld [smem:[#allocation5 + %s2837_s24]] }
  0x49   : > { %s3053_s19 = scalar_lea.vmem [#allocation6], %s3000_s21 }
  0x4e   : > { %p2330_p12 = scmp.le.s32.totalorder %s658_s18, 0 }
  0x4f   : > { %v2624_v1 = vld [vmem:[%s3024_s23] sm:$0xff] (!%p2330_p12)   ;;  %v2625_v2 = vld [vmem:[%s3024_s23 + $0x8] sm:$0xff] (!%p2330_p12)   ;;  %v2626_v3 = vld [vmem:[%s3024_s23 + $0x10] sm:$0xff] (!%p2330_p12)  }
  0x50   : > { %662 = sbr.rel (%p2330_p12) target bundleno = 338 (0x152), region = 68  ;;  %2485 = vmatprep.subr.bf16.mxu0 (!%p2330_p12), %v2624_v1  ;;  %2541 = vmatprep.subr.bf16.mxu1 (!%p2330_p12), %v2624_v1  ;;  %v2627_v4 = vld [vmem:[%s3024_s23 + $0x18] sm:$0xff] (!%p2330_p12)   ;;  %v663_v5 = vld [vmem:[%s3014_s12] sm:$0xff] (!%p2330_p12)  ;;  %v665_v6 = vld [vmem:[%s3014_s12 + $0x10] sm:$0xff] (!%p2330_p12) }
  0x51   : > { %2486 = vmatpush3.bf16.msra.mxu0 (!%p2330_p12), %v2624_v1  ;;  %2549 = vmatpush3.bf16.msra.mxu1 (!%p2330_p12), %v2624_v1  ;;  %v667_v7 = vunpack.c.l.s8.bf16 (!%p2330_p12), %v663_v5  ;;  %v671_v8 = vunpack.c.l.s8.bf16 (!%p2330_p12), %v665_v6  ;;  %v2628_v9 = vld [vmem:[%s3024_s23 + $0x20] sm:$0xff] (!%p2330_p12)   ;;  %v2629_v10 = vld [vmem:[%s3024_s23 + $0x28] sm:$0xff] (!%p2330_p12)   ;;  %v2630_v11 = vld [vmem:[%s3024_s23 + $0x30] sm:$0xff] (!%p2330_p12)   ;;  %v668_v15 = vunpack.c.h.s8.bf16 (!%p2330_p12), %v663_v5  ;;  %v672_v16 = vunpack.c.h.s8.bf16 (!%p2330_p12), %v665_v6 }
  0x52   : > { %2487 = vmatprep.subr.bf16.mxu0 (!%p2330_p12), %v2625_v2  ;;  %2542 = vmatprep.subr.bf16.mxu1 (!%p2330_p12), %v2625_v2  ;;  %v2631_v12 = vld [vmem:[%s3024_s23 + $0x38] sm:$0xff] (!%p2330_p12)   ;;  %v664_v13 = vld [vmem:[%s3014_s12 + $0x8] sm:$0xff] (!%p2330_p12)  ;;  %v677_v21 = vld [vmem:[#allocation2 + $0x10] sm:$0xff] (!%p2330_p12) }
  0x53   : > { %2501 = vmatprep.mubr.bf16.mxu0 (!%p2330_p12), %v667_v7  ;;  %2509 = vmatprep.mubr.bf16.mxu1 (!%p2330_p12), %v671_v8  ;;  %v666_v14 = vld [vmem:[%s3014_s12 + $0x18] sm:$0xff] (!%p2330_p12)  ;;  %v669_v17 = vunpack.c.l.s8.bf16 (!%p2330_p12), %v664_v13  ;;  %v670_v19 = vunpack.c.h.s8.bf16 (!%p2330_p12), %v664_v13  ;;  %v685_v22 = vld [vmem:[#allocation2 + $0x50] sm:$0xff] (!%p2330_p12)  ;;  %v675_v23 = vld [vmem:[#allocation2] sm:$0xff] (!%p2330_p12) }
  0x54   : > { %v673_v18 = vunpack.c.l.s8.bf16 (!%p2330_p12), %v666_v14  ;;  %v674_v20 = vunpack.c.h.s8.bf16 (!%p2330_p12), %v666_v14  ;;  %v683_v24 = vld [vmem:[#allocation2 + $0x40] sm:$0xff] (!%p2330_p12)  ;;  %v678_v27 = vld [vmem:[#allocation2 + $0x18] sm:$0xff] (!%p2330_p12)  ;;  %v676_v33 = vld [vmem:[#allocation2 + $0x8] sm:$0xff] (!%p2330_p12) }
  0x55   : > { %2488 = vmatpush3.bf16.msra.mxu0 (!%p2330_p12), %v2625_v2  ;;  %2550 = vmatpush3.bf16.msra.mxu1 (!%p2330_p12), %v2625_v2  ;;  %v686_v28 = vld [vmem:[#allocation2 + $0x58] sm:$0xff] (!%p2330_p12)  ;;  %v684_v34 = vld [vmem:[#allocation2 + $0x48] sm:$0xff] (!%p2330_p12)  ;;  %v681_v45 = vld [vmem:[#allocation2 + $0x30] sm:$0xff] (!%p2330_p12) }
  0x56   : > { %2489 = vmatprep.subr.bf16.mxu0 (!%p2330_p12), %v2626_v3  ;;  %2543 = vmatprep.subr.bf16.mxu1 (!%p2330_p12), %v2626_v3  ;;  %v689_v46 = vld [vmem:[#allocation2 + $0x70] sm:$0xff] (!%p2330_p12)  ;;  %v679_v47 = vld [vmem:[#allocation2 + $0x20] sm:$0xff] (!%p2330_p12)  ;;  %v682_v51 = vld [vmem:[#allocation2 + $0x38] sm:$0xff] (!%p2330_p12) }
  0x57   : > { %v687_v48 = vld [vmem:[#allocation2 + $0x60] sm:$0xff]  ;;  %v690_v52 = vld [vmem:[#allocation2 + $0x78] sm:$0xff]  ;;  %v680_v57 = vld [vmem:[#allocation2 + $0x28] sm:$0xff] }
  0x58   : > { %v688_v58 = vld [vmem:[#allocation2 + $0x68] sm:$0xff] }
  0x59   : > { %2490 = vmatpush3.bf16.msra.mxu0 %v2626_v3  ;;  %2551 = vmatpush3.bf16.msra.mxu1 %v2626_v3 }
  0x5a   : > { %2491 = vmatprep.subr.bf16.mxu0 %v2627_v4  ;;  %2544 = vmatprep.subr.bf16.mxu1 %v2627_v4 }
  0x5d   : > { %2492 = vmatpush3.bf16.msra.mxu0 %v2627_v4  ;;  %2552 = vmatpush3.bf16.msra.mxu1 %v2627_v4 }
  0x5e   : > { %2493 = vmatprep.subr.bf16.mxu0 %v2628_v9  ;;  %2545 = vmatprep.subr.bf16.mxu1 %v2628_v9 }
  0x61   : > { %2494 = vmatpush3.bf16.msra.mxu0 %v2628_v9  ;;  %2553 = vmatpush3.bf16.msra.mxu1 %v2628_v9 }
  0x62   : > { %2495 = vmatprep.subr.bf16.mxu0 %v2629_v10  ;;  %2546 = vmatprep.subr.bf16.mxu1 %v2629_v10 }
  0x65   : > { %2496 = vmatpush3.bf16.msra.mxu0 %v2629_v10  ;;  %2554 = vmatpush3.bf16.msra.mxu1 %v2629_v10 }
  0x66   : > { %2497 = vmatprep.subr.bf16.mxu0 %v2630_v11  ;;  %2547 = vmatprep.subr.bf16.mxu1 %v2630_v11 }
  0x69   : > { %2498 = vmatpush3.bf16.msra.mxu0 %v2630_v11  ;;  %2555 = vmatpush3.bf16.msra.mxu1 %v2630_v11 }
  0x6a   : > { %2499 = vmatprep.subr.bf16.mxu0 %v2631_v12  ;;  %2548 = vmatprep.subr.bf16.mxu1 %v2631_v12 }
  0x6d   : > { %2500 = vmatpush3.bf16.msra.mxu0 %v2631_v12  ;;  %2556 = vmatpush3.bf16.msra.mxu1 %v2631_v12 }
  0x70   : > { %2502 = vmatmul.mubr.bf16.vlgmr.msra.gmra.mrb[0].mxu0 %v668_v15  ;;  %2510 = vmatmul.mubr.bf16.vlgmr.msra.gmra.mrb[0].mxu1 %v672_v16 }
  0x71   : > { %2505 = vmatprep.mubr.bf16.mxu0 %v669_v17  ;;  %2513 = vmatprep.mubr.bf16.mxu1 %v673_v18 }
  0x78   : > { %2506 = vmatmul.mubr.bf16.gmra.mrb[4].mxu0 %v670_v19  ;;  %2514 = vmatmul.mubr.bf16.gmra.mrb[4].mxu1 %v674_v20 }
 0x143   : > { %v2503_v25 = vpop.f32.mrb[0].mxu0  ;;  %v2511_v26 = vpop.f32.mrb[0].mxu1 }
 0x144   : > { %v854_v29 = vadd.f32 %v2503_v25, %v677_v21  ;;  %v862_v30 = vadd.f32 %v2511_v26, %v685_v22  ;;  %v789_v31 = vpop.f32.mrb[1].mxu0  ;;  %v821_v32 = vpop.f32.mrb[1].mxu1 }
 0x145   : > { %v852_v35 = vadd.f32 %v789_v31, %v675_v23  ;;  %v860_v36 = vadd.f32 %v821_v32, %v683_v24  ;;  %v2504_v37 = vpop.f32.mrb[2].mxu0  ;;  %v2512_v38 = vpop.f32.mrb[2].mxu1 }
 0x146   : > { %870 = vst [vmem:[#allocation2 + $0x10] sm:$0xff] %v854_v29  ;;  %878 = vst [vmem:[#allocation2 + $0x50] sm:$0xff] %v862_v30  ;;  %v855_v39 = vadd.f32 %v2504_v37, %v678_v27  ;;  %v863_v40 = vadd.f32 %v2512_v38, %v686_v28  ;;  %v792_v41 = vpop.f32.mrb[3].mxu0  ;;  %v824_v42 = vpop.f32.mrb[3].mxu1 }
 0x147   : > { %868 = vst [vmem:[#allocation2] sm:$0xff] %v852_v35  ;;  %876 = vst [vmem:[#allocation2 + $0x40] sm:$0xff] %v860_v36  ;;  %v853_v43 = vadd.f32 %v792_v41, %v676_v33  ;;  %v861_v44 = vadd.f32 %v824_v42, %v684_v34 }
 0x148   : > { %871 = vst [vmem:[#allocation2 + $0x18] sm:$0xff] %v855_v39  ;;  %879 = vst [vmem:[#allocation2 + $0x58] sm:$0xff] %v863_v40 }
 0x149   : > { %869 = vst [vmem:[#allocation2 + $0x8] sm:$0xff] %v853_v43  ;;  %877 = vst [vmem:[#allocation2 + $0x48] sm:$0xff] %v861_v44 }
 0x14b   : > { %v2507_v49 = vpop.f32.mrb[4].mxu0  ;;  %v2515_v50 = vpop.f32.mrb[4].mxu1 }
 0x14c   : > { %v858_v53 = vadd.f32 %v2507_v49, %v681_v45  ;;  %v866_v54 = vadd.f32 %v2515_v50, %v689_v46  ;;  %v805_v55 = vpop.f32.mrb[5].mxu0  ;;  %v837_v56 = vpop.f32.mrb[5].mxu1 }
 0x14d   : > { %v856_v59 = vadd.f32 %v805_v55, %v679_v47  ;;  %v864_v60 = vadd.f32 %v837_v56, %v687_v48  ;;  %v2508_v61 = vpop.f32.mrb[6].mxu0  ;;  %v2516_v62 = vpop.f32.mrb[6].mxu1 }
 0x14e   : > { %874 = vst [vmem:[#allocation2 + $0x30] sm:$0xff] %v858_v53  ;;  %882 = vst [vmem:[#allocation2 + $0x70] sm:$0xff] %v866_v54  ;;  %v859_v63 = vadd.f32 %v2508_v61, %v682_v51  ;;  %v867_v0 = vadd.f32 %v2516_v62, %v690_v52  ;;  %v808_v1 = vpop.f32.mrb[7].mxu0  ;;  %v840_v2 = vpop.f32.mrb[7].mxu1 }
 0x14f   : > { %872 = vst [vmem:[#allocation2 + $0x20] sm:$0xff] %v856_v59  ;;  %880 = vst [vmem:[#allocation2 + $0x60] sm:$0xff] %v864_v60  ;;  %v857_v3 = vadd.f32 %v808_v1, %v680_v57  ;;  %v865_v4 = vadd.f32 %v840_v2, %v688_v58 }
 0x150   : > { %875 = vst [vmem:[#allocation2 + $0x38] sm:$0xff] %v859_v63  ;;  %883 = vst [vmem:[#allocation2 + $0x78] sm:$0xff] %v867_v0 }
 0x151   : > { %873 = vst [vmem:[#allocation2 + $0x28] sm:$0xff] %v857_v3  ;;  %881 = vst [vmem:[#allocation2 + $0x68] sm:$0xff] %v865_v4 }
 0x152 PF: > { %v911_v5 = vld [vmem:[%s3029_s1 + $0x40] sm:$0xff]  ;;  %v913_v6 = vld [vmem:[%s3029_s1 + $0x50] sm:$0xff]  ;;  %v2850_v7 = vmov 0   ;;  %v912_v8 = vld [vmem:[%s3029_s1 + $0x48] sm:$0xff]  ;;  %s2851_s21 = smov 127   ;;  %s2853_s23 = smov 3  }
 0x153   : > { %2632 = vset.pattern.permute.xlu0 %v2850_v7  ;;  %2633 = vset.pattern.permute.xlu1 %v2850_v7  ;;  %v914_v9 = vld [vmem:[%s3029_s1 + $0x58] sm:$0xff]  ;;  %v915_v10 = vld [vmem:[%s3029_s1 + $0x60] sm:$0xff]  ;;  %v916_v11 = vld [vmem:[%s3029_s1 + $0x68] sm:$0xff]  ;;  %s2855_s25 = smov 2   ;;  %s3915_s30 = sld [smem:[#allocation23_spill]] }
 0x154   : > { %961 = vperm.xlu0 %2632, %v911_v5   ;;  %971 = vperm.xlu1 %2633, %v913_v6   ;;  %v917_v12 = vld [vmem:[%s3029_s1 + $0x70] sm:$0xff]  ;;  %v918_v13 = vld [vmem:[%s3029_s1 + $0x78] sm:$0xff]  ;;  %v903_v14 = vld [vmem:[%s3029_s1] sm:$0xff]  ;;  %s3916_s12 = sld [smem:[#allocation11_spill]] }
 0x155   : > { %v904_v15 = vld [vmem:[%s3029_s1 + $0x8] sm:$0xff]  ;;  %v905_v16 = vld [vmem:[%s3029_s1 + $0x10] sm:$0xff]  ;;  %v906_v17 = vld [vmem:[%s3029_s1 + $0x18] sm:$0xff] }
 0x156   : > { %v907_v18 = vld [vmem:[%s3029_s1 + $0x20] sm:$0xff]  ;;  %v908_v19 = vld [vmem:[%s3029_s1 + $0x28] sm:$0xff]  ;;  %v909_v20 = vld [vmem:[%s3029_s1 + $0x30] sm:$0xff] }
 0x157   : > { %v910_v21 = vld [vmem:[%s3029_s1 + $0x38] sm:$0xff]  ;;  %v3084_v22 = vld [vmem:[%s3009_s17] sm:$0xff]   ;;  %v3087_v23 = vld [vmem:[%s3009_s17 + $0x8] sm:$0xff]   ;;  %s2854_s1 = smov 4  }
 0x158   : > { %966 = vperm.xlu0 %2632, %v912_v8   ;;  %976 = vperm.xlu1 %2633, %v914_v9   ;;  %v895_v24 = vld [vmem:[#allocation2 + $0x40] sm:$0xff]  ;;  %v897_v25 = vld [vmem:[#allocation2 + $0x50] sm:$0xff]  ;;  %v1023_v26 = vunpack.c.l.bf16 %v3084_v22  ;;  %v1025_v27 = vunpack.c.l.bf16 %v3087_v23  ;;  %v896_v32 = vld [vmem:[#allocation2 + $0x48] sm:$0xff]  ;;  %v1024_v35 = vunpack.c.h.bf16 %v3084_v22  ;;  %v1026_v39 = vunpack.c.h.bf16 %v3087_v23 }
 0x159   : > { %v2340_v33 = vld [vmem:[%s3864_s9 + $0x1] ss:$0 sm:$0xff]  ;;  %v898_v34 = vld [vmem:[#allocation2 + $0x58] sm:$0xff]  ;;  %v3101_v37 = vld [vmem:[%s3009_s17 + $0x10] sm:$0xff]   ;;  %2533 = vmatprep.mubr.bf16.mxu1 %v3084_v22 }
 0x15a   : > { %v1027_v45 = vunpack.c.l.bf16 %v3101_v37  ;;  %v899_v46 = vld [vmem:[#allocation2 + $0x60] sm:$0xff]  ;;  %v900_v47 = vld [vmem:[#allocation2 + $0x68] sm:$0xff]  ;;  %v3114_v50 = vld [vmem:[%s3009_s17 + $0x18] sm:$0xff]   ;;  %v1028_v52 = vunpack.c.h.bf16 %v3101_v37  ;;  %s2393_s17 = sshll.u32 %s2837_s24, 9  ;;  %s3920_s24 = sand.u32 1, %s3916_s12  }
 0x15b   : > { %v1029_v58 = vunpack.c.l.bf16 %v3114_v50  ;;  %v901_v59 = vld [vmem:[#allocation2 + $0x70] sm:$0xff]  ;;  %v902_v60 = vld [vmem:[#allocation2 + $0x78] sm:$0xff]  ;;  %v1030_v0 = vunpack.c.h.bf16 %v3114_v50  ;;  %v887_v6 = vld [vmem:[#allocation2] sm:$0xff] }
 0x15c   : > { %981 = vperm.xlu0 %2632, %v915_v10   ;;  %986 = vperm.xlu1 %2633, %v916_v11   ;;  %v888_v7 = vld [vmem:[#allocation2 + $0x8] sm:$0xff] }
 0x160   : > { %991 = vperm.xlu0 %2632, %v917_v12   ;;  %996 = vperm.xlu1 %2633, %v918_v13  }
 0x164   : > { %921 = vperm.xlu0 %2632, %v903_v14   ;;  %926 = vperm.xlu1 %2633, %v904_v15  }
 0x168   : > { %931 = vperm.xlu0 %2632, %v905_v16   ;;  %936 = vperm.xlu1 %2633, %v906_v17   ;;  %v889_v16 = vld [vmem:[#allocation2 + $0x10] sm:$0xff]  ;;  %v2339_v17 = vld [vmem:[%s3864_s9] ss:$0 sm:$0xff] }
 0x16c   : > { %941 = vperm.xlu0 %2632, %v907_v18   ;;  %946 = vperm.xlu1 %2633, %v908_v19   ;;  %v890_v18 = vld [vmem:[#allocation2 + $0x18] sm:$0xff] }
 0x170   : > { %951 = vperm.xlu0 %2632, %v909_v20   ;;  %956 = vperm.xlu1 %2633, %v910_v21  }
 0x1d3   : > { %v962_v28 = vpop.permute.xlu0 %961  ;;  %v972_v29 = vpop.permute.xlu1 %971 }
 0x1d4   : > { %v3091_v30 = vmul.f32 %v962_v28, %v895_v24  ;;  %v3093_v31 = vmul.f32 %v972_v29, %v897_v25 }
 0x1d6   : > { %v1084_v36 = vsub.f32 %v3091_v30, %v1023_v26  ;;  %v1086_v38 = vsub.f32 %v3093_v31, %v1025_v27 }
 0x1d7   : > { %v967_v40 = vpop.permute.xlu0 %966  ;;  %v977_v41 = vpop.permute.xlu1 %976 }
 0x1d8   : > { %v3107_v42 = vmul.f32 %v967_v40, %v896_v32  ;;  %v1097_v43 = vmul.f32 %v2340_v33, %v1084_v36  ;;  %v3109_v44 = vmul.f32 %v977_v41, %v898_v34  ;;  %v1099_v49 = vmul.f32 %v2340_v33, %v1086_v38  ;;  %v891_v34 = vld [vmem:[#allocation2 + $0x20] sm:$0xff]  ;;  %v892_v36 = vld [vmem:[#allocation2 + $0x28] sm:$0xff] }
 0x1da   : > { %v1085_v48 = vsub.f32 %v3107_v42, %v1024_v35  ;;  %1105 = vadd.xlane.f32.xlu0 %v1097_v43  ;;  %v1087_v51 = vsub.f32 %v3109_v44, %v1026_v39 }
 0x1db   : > { %v982_v53 = vpop.permute.xlu0 %981  ;;  %v987_v54 = vpop.permute.xlu1 %986 }
 0x1dc   : > { %v3120_v55 = vmul.f32 %v982_v53, %v899_v46  ;;  %v1098_v56 = vmul.f32 %v2340_v33, %v1085_v48  ;;  %v3122_v57 = vmul.f32 %v987_v54, %v900_v47  ;;  %v1100_v62 = vmul.f32 %v2340_v33, %v1087_v51  ;;  %v893_v47 = vld [vmem:[#allocation2 + $0x30] sm:$0xff]  ;;  %v894_v48 = vld [vmem:[#allocation2 + $0x38] sm:$0xff] }
 0x1de   : > { %v1088_v61 = vsub.f32 %v3120_v55, %v1027_v45  ;;  %1107 = vadd.xlane.f32.xlu1 %v1098_v56  ;;  %1109 = vadd.xlane.f32.xlu0 %v1099_v49  ;;  %v1089_v63 = vsub.f32 %v3122_v57, %v1028_v52 }
 0x1df   : > { %v992_v1 = vpop.permute.xlu0 %991  ;;  %v997_v2 = vpop.permute.xlu1 %996 }
 0x1e0   : > { %v3130_v3 = vmul.f32 %v992_v1, %v901_v59  ;;  %v1101_v4 = vmul.f32 %v2340_v33, %v1088_v61  ;;  %v3132_v5 = vmul.f32 %v997_v2, %v902_v60  ;;  %v1102_v9 = vmul.f32 %v2340_v33, %v1089_v63  ;;  %v3174_v63 = vld [vmem:[%s3019_s0] sm:$0xff] }
 0x1e2   : > { %v1090_v8 = vsub.f32 %v3130_v3, %v1029_v58  ;;  %1111 = vadd.xlane.f32.xlu1 %v1100_v62  ;;  %1113 = vadd.xlane.f32.xlu0 %v1101_v4  ;;  %v1091_v10 = vsub.f32 %v3132_v5, %v1030_v0  ;;  %v3180_v4 = vld [vmem:[%s3019_s0 + $0x8] sm:$0xff] }
 0x1e3   : > { %v922_v11 = vpop.permute.xlu0 %921  ;;  %v927_v12 = vpop.permute.xlu1 %926 }
 0x1e4   : > { %v3138_v13 = vmul.f32 %v922_v11, %v887_v6  ;;  %v1103_v14 = vmul.f32 %v2340_v33, %v1090_v8  ;;  %v3140_v15 = vmul.f32 %v927_v12, %v888_v7  ;;  %v1104_v20 = vmul.f32 %v2340_v33, %v1091_v10  ;;  %v3190_v7 = vld [vmem:[%s3019_s0 + $0x10] sm:$0xff]  ;;  %v3199_v12 = vld [vmem:[%s3019_s0 + $0x20] sm:$0xff] }
 0x1e6   : > { %v1039_v19 = vsub.f32 %v3138_v13, %v1023_v26  ;;  %1115 = vadd.xlane.f32.xlu1 %v1102_v9  ;;  %1117 = vadd.xlane.f32.xlu0 %v1103_v14  ;;  %v1040_v21 = vsub.f32 %v3140_v15, %v1024_v35  ;;  %v3196_v9 = vld [vmem:[%s3019_s0 + $0x18] sm:$0xff] }
 0x1e7   : > { %v932_v24 = vpop.permute.xlu0 %931  ;;  %v937_v25 = vpop.permute.xlu1 %936 }
 0x1e8   : > { %v3147_v28 = vmul.f32 %v932_v24, %v889_v16  ;;  %v1052_v29 = vmul.f32 %v2339_v17, %v1039_v19  ;;  %v3149_v32 = vmul.f32 %v937_v25, %v890_v18  ;;  %v1053_v33 = vmul.f32 %v2339_v17, %v1040_v21  ;;  %v3207_v16 = vld [vmem:[%s3019_s0 + $0x28] sm:$0xff]  ;;  %v3213_v19 = vld [vmem:[%s3019_s0 + $0x30] sm:$0xff]  ;;  %v3223_v24 = vld [vmem:[%s3019_s0 + $0x38] sm:$0xff]  ;;  %s2852_s0 = smov 1  }
 0x1ea   : > { %v1041_v38 = vsub.f32 %v3147_v28, %v1025_v27  ;;  %1060 = vadd.xlane.f32.xlu1 %v1052_v29  ;;  %v1042_v26 = vsub.f32 %v3149_v32, %v1026_v39  ;;  %1119 = vadd.xlane.f32.xlu0 %v1104_v20 }
 0x1eb   : > { %v942_v35 = vpop.permute.xlu0 %941  ;;  %v947_v40 = vpop.permute.xlu1 %946 }
 0x1ec   : > { %v3157_v41 = vmul.f32 %v942_v35, %v891_v34  ;;  %v1054_v43 = vmul.f32 %v2339_v17, %v1041_v38  ;;  %v3159_v46 = vmul.f32 %v947_v40, %v892_v36  ;;  %v1055_v39 = vmul.f32 %v2339_v17, %v1042_v26 }
 0x1ee   : > { %v1043_v27 = vsub.f32 %v3157_v41, %v1027_v45  ;;  %1064 = vadd.xlane.f32.xlu1 %v1054_v43  ;;  %v1044_v49 = vsub.f32 %v3159_v46, %v1028_v52  ;;  %1062 = vadd.xlane.f32.xlu0 %v1053_v33 }
 0x1ef   : > { %v952_v51 = vpop.permute.xlu0 %951  ;;  %v957_v53 = vpop.permute.xlu1 %956 }
 0x1f0   : > { %v3165_v54 = vmul.f32 %v952_v51, %v893_v47  ;;  %v1056_v56 = vmul.f32 %v2339_v17, %v1043_v27  ;;  %v3167_v59 = vmul.f32 %v957_v53, %v894_v48  ;;  %v1057_v52 = vmul.f32 %v2339_v17, %v1044_v49 }
 0x1f2   : > { %3903 = vst [vmem:[#allocation19_spill] sm:$0xff] %v3165_v54  ;;  %3904 = vst [vmem:[#allocation20_spill] sm:$0xff] %v3167_v59  ;;  %v1045_v60 = vsub.f32 %v3165_v54, %v1029_v58  ;;  %1068 = vadd.xlane.f32.xlu1 %v1056_v56  ;;  %v1046_v45 = vsub.f32 %v3167_v59, %v1030_v0  ;;  %1066 = vadd.xlane.f32.xlu0 %v1055_v39 }
 0x1f4   : > { %v1059_v61 = vmul.f32 %v2339_v17, %v1046_v45  ;;  %v1058_v62 = vmul.f32 %v2339_v17, %v1045_v60 }
 0x1f6   : > { %1070 = vadd.xlane.f32.xlu0 %v1057_v52 }
 0x267   : > { %v1106_v1 = vpop.xlane.xlu0 %1105 }
 0x268   : > { %v3177_v2 = vadd.f32 %v1106_v1, %v3174_v63 }
 0x26a   : > { %1137 = vrot.lane.b32.xlu1 %v3177_v2, %s2851_s21 }
 0x26b   : > { %v1108_v58 = vpop.xlane.xlu1 %1107  ;;  %v1110_v6 = vpop.xlane.xlu0 %1109 }
 0x26c   : > { %v3185_v0 = vadd.f32 %v1108_v58, %v3180_v4  ;;  %v3193_v8 = vadd.f32 %v1110_v6, %v3190_v7 }
 0x26e   : > { %1139 = vrot.lane.b32.xlu0 %v3185_v0, %s2851_s21 }
 0x26f   : > { %v1112_v10 = vpop.xlane.xlu1 %1111  ;;  %v1114_v11 = vpop.xlane.xlu0 %1113 }
 0x270   : > { %v3202_v14 = vadd.f32 %v1112_v10, %v3196_v9  ;;  %v3210_v17 = vadd.f32 %v1114_v11, %v3199_v12 }
 0x273   : > { %v1116_v18 = vpop.xlane.xlu1 %1115  ;;  %v1118_v20 = vpop.xlane.xlu0 %1117 }
 0x274   : > { %v3216_v21 = vadd.f32 %v1116_v18, %v3207_v16  ;;  %v3226_v25 = vadd.f32 %v1118_v20, %v3213_v19 }
 0x277   : > { %v1120_v29 = vpop.xlane.xlu0 %1119  ;;  %v1061_v36 = vpop.xlane.xlu1 %1060 }
 0x278   : > { %v3229_v34 = vadd.f32 %v1120_v29, %v3223_v24  ;;  %v3238_v40 = vadd.f32 %v1061_v36, %v3174_v63 }
 0x27b   : > { %v1063_v38 = vpop.xlane.xlu0 %1062  ;;  %v1065_v26 = vpop.xlane.xlu1 %1064 }
 0x27c   : > { %v3244_v27 = vadd.f32 %v1063_v38, %v3180_v4  ;;  %v3261_v52 = vadd.f32 %v1065_v26, %v3190_v7 }
 0x27f   : > { %v1067_v33 = vpop.xlane.xlu0 %1066  ;;  %v1069_v35 = vpop.xlane.xlu1 %1068 }
 0x280   : > { %v3258_v45 = vadd.f32 %v1067_v33, %v3196_v9  ;;  %v3277_v11 = vadd.f32 %v1069_v35, %v3199_v12 }
 0x283   : > { %v1071_v43 = vpop.xlane.xlu0 %1070 }
 0x284   : > { %v3292_v33 = vadd.f32 %v1071_v43, %v3207_v16 }
 0x28d   : > { %1074 = vadd.xlane.f32.xlu0 %v1059_v61 }
 0x28e   : > { %1072 = vadd.xlane.f32.xlu1 %v1058_v62 }
 0x29f   : > { %1141 = vrot.lane.b32.xlu1 %v3193_v8, %s2851_s21 }
 0x2a3   : > { %1143 = vrot.lane.b32.xlu0 %v3202_v14, %s2851_s21  ;;  %1145 = vrot.lane.b32.xlu1 %v3210_v17, %s2851_s21 }
 0x2a7   : > { %1149 = vrot.lane.b32.xlu0 %v3226_v25, %s2851_s21  ;;  %1147 = vrot.lane.b32.xlu1 %v3216_v21, %s2851_s21 }
 0x2ab   : > { %1151 = vrot.lane.b32.xlu1 %v3229_v34, %s2851_s21 }
 0x2dc   : > { %v1138_v47 = vpop.permute.xlu1 %1137 }
 0x2dd   : > { %v3241_v48 = vmax.f32 %v3238_v40, %v1138_v47 }
 0x2df   : > { %1201 = vrot.lane.b32.xlu0 %v3241_v48, %s2852_s0 }
 0x2e0   : > { %v1140_v39 = vpop.permute.xlu0 %1139 }
 0x2e1   : > { %v3251_v51 = vmax.f32 %v3244_v27, %v1140_v39 }
 0x2e3   : > { %1203 = vrot.lane.b32.xlu1 %v3251_v51, %s2852_s0 }
 0x31a   : > { %v1075_v56 = vpop.xlane.xlu0 %1074 }
 0x31b   : > { %v1073_v60 = vpop.xlane.xlu1 %1072 }
 0x31c   : > { %v3270_v6 = vadd.f32 %v1073_v60, %v3213_v19  ;;  %v3302_v60 = vadd.f32 %v1075_v56, %v3223_v24 }
 0x31e   : > { %v1144_v61 = vpop.permute.xlu0 %1143 }
 0x31f   : > { %v3264_v62 = vmax.f32 %v3258_v45, %v1144_v61  ;;  %v1142_v1 = vpop.permute.xlu1 %1141 }
 0x320   : > { %v3267_v58 = vmax.f32 %v3261_v52, %v1142_v1 }
 0x321   : > { %1207 = vrot.lane.b32.xlu1 %v3264_v62, %s2852_s0 }
 0x322   : > { %v1150_v20 = vpop.permute.xlu0 %1149  ;;  %1205 = vrot.lane.b32.xlu0 %v3267_v58, %s2852_s0 }
 0x323   : > { %v3284_v29 = vmax.f32 %v3270_v6, %v1150_v20  ;;  %v1146_v36 = vpop.permute.xlu1 %1145 }
 0x324   : > { %v3287_v38 = vmax.f32 %v3277_v11, %v1146_v36 }
 0x326   : > { %1209 = vrot.lane.b32.xlu0 %v3287_v38, %s2852_s0 }
 0x327   : > { %v1148_v47 = vpop.permute.xlu1 %1147 }
 0x328   : > { %v3299_v39 = vmax.f32 %v3292_v33, %v1148_v47 }
 0x32a   : > { %1213 = vrot.lane.b32.xlu0 %v3284_v29, %s2852_s0  ;;  %1211 = vrot.lane.b32.xlu1 %v3299_v39, %s2852_s0 }
 0x32b   : > { %v1152_v43 = vpop.permute.xlu1 %1151 }
 0x32c   : > { %v3311_v1 = vmax.f32 %v3302_v60, %v1152_v43 }
 0x32e   : > { %1215 = vrot.lane.b32.xlu1 %v3311_v1, %s2852_s0 }
 0x351   : > { %v1202_v56 = vpop.permute.xlu0 %1201 }
 0x352   : > { %v1225_v36 = vsub.f32 %v3177_v2, %v1202_v56 }
 0x354   : > { %v1233_v47 = vmul.f32 1.442695, %v1225_v36 }
 0x355   : > { %v1204_v61 = vpop.permute.xlu1 %1203 }
 0x356   : > { %2677 = vpow2.f32 %v1233_v47  ;;  %v1226_v26 = vsub.f32 %v3185_v0, %v1204_v61 }
 0x358   : > { %v1235_v35 = vmul.f32 1.442695, %v1226_v26 }
 0x35a   : > { %2679 = vpow2.f32 %v1235_v35 }
 0x360   : > { %v3319_v18 = vpop.eup %2677 }
 0x361   : > { %1257 = vrot.lane.b32.xlu0 %v3319_v18, %s2851_s21 }
 0x364   : > { %v3323_v43 = vpop.eup %2679 }
 0x365   : > { %1259 = vrot.lane.b32.xlu1 %v3323_v43, %s2851_s21 }
 0x393   : > { %v1208_v20 = vpop.permute.xlu1 %1207 }
 0x394   : > { %v1228_v2 = vsub.f32 %v3202_v14, %v1208_v20  ;;  %v1206_v56 = vpop.permute.xlu0 %1205 }
 0x395   : > { %v1227_v36 = vsub.f32 %v3193_v8, %v1206_v56 }
 0x396   : > { %v1239_v47 = vmul.f32 1.442695, %v1228_v2 }
 0x397   : > { %v1237_v0 = vmul.f32 1.442695, %v1227_v36 }
 0x398   : > { %2681 = vpow2.f32 %v1239_v47  ;;  %v1210_v26 = vpop.permute.xlu0 %1209 }
 0x399   : > { %2683 = vpow2.f32 %v1237_v0  ;;  %v1229_v35 = vsub.f32 %v3210_v17, %v1210_v26 }
 0x39b   : > { %v1241_v61 = vmul.f32 1.442695, %v1229_v35 }
 0x39c   : > { %v1214_v10 = vpop.permute.xlu0 %1213  ;;  %v1212_v53 = vpop.permute.xlu1 %1211 }
 0x39d   : > { %2685 = vpow2.f32 %v1241_v61  ;;  %v1231_v49 = vsub.f32 %v3226_v25, %v1214_v10  ;;  %v1230_v59 = vsub.f32 %v3216_v21, %v1212_v53  ;;  %v3906_v53 = vsub.f32 %v3244_v27, %v3251_v51 }
 0x39e   : > { %v3907_v61 = vsub.f32 %v3258_v45, %v3264_v62 }
 0x39f   : > { %v1245_v54 = vmul.f32 1.442695, %v1231_v49  ;;  %v1243_v14 = vmul.f32 1.442695, %v1230_v59  ;;  %v1179_v10 = vmul.f32 1.442695, %v3906_v53 }
 0x3a0   : > { %v1216_v20 = vpop.permute.xlu1 %1215 }
 0x3a1   : > { %2687 = vpow2.f32 %v1245_v54  ;;  %v1232_v8 = vsub.f32 %v3229_v34, %v1216_v20  ;;  %v2856_v34 = vmov 4   ;;  %v3908_v20 = vsub.f32 %v3261_v52, %v3267_v58 }
 0x3a2   : > { %v3333_v2 = vpop.eup %2681  ;;  %2689 = vpow2.f32 %v1243_v14  ;;  %2634 = vset.pattern.permute.xlu1 %v2856_v34  ;;  %2635 = vset.pattern.permute.xlu0 %v2856_v34  ;;  %v1183_v14 = vmul.f32 1.442695, %v3907_v61  ;;  %v3912_v52 = vsub.f32 %v3302_v60, %v3311_v1 }
 0x3a3   : > { %v3335_v56 = vpop.eup %2683  ;;  %v1247_v17 = vmul.f32 1.442695, %v1232_v8  ;;  %1263 = vrot.lane.b32.xlu1 %v3333_v2, %s2851_s21  ;;  %v1181_v8 = vmul.f32 1.442695, %v3908_v20 }
 0x3a4   : > { %1261 = vrot.lane.b32.xlu0 %v3335_v56, %s2851_s21  ;;  %v1191_v62 = vmul.f32 1.442695, %v3912_v52 }
 0x3a5   : > { %2691 = vpow2.f32 %v1247_v17  ;;  %v3910_v17 = vsub.f32 %v3270_v6, %v3284_v29 }
 0x3a7   : > { %v3341_v21 = vpop.eup %2685 }
 0x3a8   : > { %1265 = vrot.lane.b32.xlu0 %v3341_v21, %s2851_s21 }
 0x3ab   : > { %v3345_v54 = vpop.eup %2687 }
 0x3ac   : > { %v3347_v59 = vpop.eup %2689  ;;  %1269 = vrot.lane.b32.xlu0 %v3345_v54, %s2851_s21 }
 0x3ad   : > { %1267 = vrot.lane.b32.xlu1 %v3347_v59, %s2851_s21 }
 0x3af   : > { %v3353_v25 = vpop.eup %2691 }
 0x3b0   : > { %1345 = vrot.lane.b32.xlu0 %v3174_v63, %s2853_s23 }
 0x3b1   : > { %1271 = vrot.lane.b32.xlu1 %v3353_v25, %s2851_s21  ;;  %s2102_s21 = sshll.u32 %s3053_s19, 4  ;;  %s3803_s21 = int_to_ptr.vmem [resolvable:$true] %s2102_s21 }
 0x3b2   : > { %s2765_s22 = scalar_lea.vmem %s3803_s21, 512 }
 0x3b3   : > { %p2766_p13 = scmp.ne.s32.totalorder %s3803_s21, %s2765_s22 }
 0x3b4   : > { %1313 = vrot.lane.b32.xlu0 %v3174_v63, %s2854_s1 }
 0x3b5   : > { %1347 = vrot.lane.b32.xlu1 %v3180_v4, %s2853_s23  ;;  %p2767_p1 = pnand %p2766_p13, %p2981_p0 }
 0x3b7   : > { %p2768_p2 = pneg %p2767_p1 }
 0x3b8   : > { %1433 = vrot.lane.b32.xlu0 %v3174_v63, %s2855_s25  ;;  %v3905_v63 = vsub.f32 %v3238_v40, %v3241_v48 }
 0x3b9   : > { %1315 = vrot.lane.b32.xlu1 %v3180_v4, %s2854_s1 }
 0x3ba   : > { %v1177_v49 = vmul.f32 1.442695, %v3905_v63  ;;  %v1189_v63 = vmul.f32 1.442695, %v3910_v17 }
 0x3bc   : > { %1349 = vrot.lane.b32.xlu0 %v3190_v7, %s2853_s23  ;;  %2693 = vpow2.f32 %v1177_v49  ;;  %v3911_v49 = vsub.f32 %v3292_v33, %v3299_v39 }
 0x3bd   : > { %1435 = vrot.lane.b32.xlu1 %v3180_v4, %s2855_s25  ;;  %2695 = vpow2.f32 %v1179_v10 }
 0x3be   : > { %v1187_v45 = vmul.f32 1.442695, %v3911_v49 }
 0x3c0   : > { %1317 = vrot.lane.b32.xlu0 %v3190_v7, %s2854_s1 }
 0x3c1   : > { %1351 = vrot.lane.b32.xlu1 %v3196_v9, %s2853_s23 }
 0x3c5   : > { %1319 = vrot.lane.b32.xlu1 %v3196_v9, %s2854_s1 }
 0x3c6   : > { %v2694_v4 = vpop.eup %2693 }
 0x3c7   : > { %v2696_v0 = vpop.eup %2695 }
 0x3d3   : > { %v1258_v36 = vpop.permute.xlu0 %1257 }
 0x3d4   : > { %v1281_v47 = vadd.f32 %v2694_v4, %v1258_v36 }
 0x3d6   : > { %2697 = vrcp.f32 %v1281_v47  ;;  %1385 = vrot.lane.b32.xlu0 %v1281_v47, %s2852_s0 }
 0x3d7   : > { %v1260_v26 = vpop.permute.xlu1 %1259 }
 0x3d8   : > { %v1282_v35 = vadd.f32 %v2696_v0, %v1260_v26 }
 0x3da   : > { %2699 = vrcp.f32 %v1282_v35  ;;  %1387 = vrot.lane.b32.xlu1 %v1282_v35, %s2852_s0  ;;  %1437 = vrot.lane.b32.xlu0 %v3190_v7, %s2855_s25  ;;  %v3909_v7 = vsub.f32 %v3277_v11, %v3287_v38 }
 0x3db   : > { %2701 = vpow2.f32 %v1183_v14 }
 0x3dc   : > { %2703 = vpow2.f32 %v1181_v8 }
 0x3de   : > { %1439 = vrot.lane.b32.xlu1 %v3196_v9, %s2855_s25  ;;  %v1185_v9 = vmul.f32 1.442695, %v3909_v7 }
 0x3e0   : > { %v2698_v40 = vpop.eup %2697  ;;  %2705 = vpow2.f32 %v1185_v9 }
 0x3e1   : > { %v3391_v48 = vmul.f32 %v2698_v40, %v2694_v4  ;;  %2707 = vpow2.f32 %v1189_v63 }
 0x3e2   : > { %2709 = vpow2.f32 %v1187_v45 }
 0x3e3   : > { %2711 = vpow2.f32 %v1191_v62 }
 0x3e4   : > { %v2700_v27 = vpop.eup %2699 }
 0x3e5   : > { %v3393_v51 = vmul.f32 %v2700_v27, %v2696_v0  ;;  %v3413_v58 = vpop.eup %2701 }
 0x3e6   : > { %v2704_v11 = vpop.eup %2703 }
 0x3ea   : > { %v2706_v29 = vpop.eup %2705 }
 0x3eb   : > { %v2708_v60 = vpop.eup %2707 }
 0x3ec   : > { %v2710_v4 = vpop.eup %2709 }
 0x3ed   : > { %v2712_v26 = vpop.eup %2711 }
 0x415   : > { %v1264_v53 = vpop.permute.xlu1 %1263 }
 0x416   : > { %v1284_v38 = vadd.f32 %v3413_v58, %v1264_v53  ;;  %v1262_v10 = vpop.permute.xlu0 %1261 }
 0x417   : > { %v1283_v6 = vadd.f32 %v2704_v11, %v1262_v10 }
 0x418   : > { %1391 = vrot.lane.b32.xlu1 %v1284_v38, %s2852_s0 }
 0x419   : > { %2713 = vrcp.f32 %v1283_v6  ;;  %1389 = vrot.lane.b32.xlu0 %v1283_v6, %s2852_s0 }
 0x41a   : > { %v1266_v33 = vpop.permute.xlu0 %1265 }
 0x41b   : > { %v1285_v39 = vadd.f32 %v2706_v29, %v1266_v33 }
 0x41c   : > { %1355 = vrot.lane.b32.xlu1 %v3207_v16, %s2853_s23 }
 0x41d   : > { %2715 = vrcp.f32 %v1285_v39  ;;  %1353 = vrot.lane.b32.xlu0 %v3199_v12, %s2853_s23 }
 0x41e   : > { %v1270_v1 = vpop.permute.xlu0 %1269 }
 0x41f   : > { %v1287_v36 = vadd.f32 %v2708_v60, %v1270_v1  ;;  %v1268_v47 = vpop.permute.xlu1 %1267 }
 0x420   : > { %v1286_v0 = vadd.f32 %v2710_v4, %v1268_v47 }
 0x421   : > { %2717 = vrcp.f32 %v1287_v36  ;;  %1393 = vrot.lane.b32.xlu0 %v1285_v39, %s2852_s0 }
 0x422   : > { %2719 = vrcp.f32 %v1286_v0  ;;  %1395 = vrot.lane.b32.xlu1 %v1286_v0, %s2852_s0  ;;  %v3436_v63 = vpop.permute.xlu0 %1345  ;;  %v2651_v0 = vld [vmem:[%s3862_s7 + $0x88] sm:$0xff]  }
 0x423   : > { %v2714_v35 = vpop.eup %2713  ;;  %v1272_v40 = vpop.permute.xlu1 %1271 }
 0x424   : > { %v1288_v27 = vadd.f32 %v2712_v26, %v1272_v40  ;;  %v3424_v61 = vmul.f32 %v2714_v35, %v2704_v11  ;;  %v2650_v35 = vld [vmem:[%s3862_s7 + $0x50] sm:$0xff]  }
 0x425   : > { %1321 = vrot.lane.b32.xlu0 %v3199_v12, %s2854_s1 }
 0x426   : > { %2721 = vrcp.f32 %v1288_v27  ;;  %1323 = vrot.lane.b32.xlu1 %v3207_v16, %s2854_s1  ;;  %v1314_v11 = vpop.permute.xlu0 %1313 }
 0x427   : > { %v2716_v14 = vpop.eup %2715  ;;  %v3430_v20 = vpop.permute.xlu1 %1347  ;;  %2723 = vrcp.f32 %v1284_v38  ;;  %v1337_v10 = vmul.f32 %v1314_v11, %v3391_v48  ;;  %v2656_v11 = vld [vmem:[%s3862_s7 + $0x60] sm:$0xff]  }
 0x428   : > { %v3432_v8 = vmul.f32 %v2716_v14, %v2706_v29  ;;  %v2652_v14 = vld [vmem:[%s3862_s7 + $0x10] sm:$0xff]  }
 0x429   : > { %1397 = vrot.lane.b32.xlu0 %v1287_v36, %s2852_s0  ;;  %v2648_v36 = vld [vmem:[%s3862_s7 + $0x80] sm:$0xff]  }
 0x42a   : > { %1399 = vrot.lane.b32.xlu1 %v1288_v27, %s2852_s0  ;;  %v3462_v6 = vpop.permute.xlu0 %1433  ;;  %2517 = vmatprep.subr.bf16.mxu1 %v2648_v36  ;;  %v2654_v27 = vld [vmem:[%s3862_s7 + $0x90] sm:$0xff]  }
 0x42b   : > { %v2718_v7 = vpop.eup %2717  ;;  %v1316_v9 = vpop.permute.xlu1 %1315  ;;  %2518 = vmatpush3.bf16.msra.mxu1 %v2648_v36  ;;  %v2666_v36 = vld [vmem:[%s3862_s7 + $0xb0] sm:$0xff]  }
 0x42c   : > { %v2720_v17 = vpop.eup %2719  ;;  %v3438_v49 = vmul.f32 %v2718_v7, %v2708_v60  ;;  %v1369_v60 = vadd.f32 %v3436_v63, %v1337_v10  ;;  %2519 = vmatprep.subr.bf16.mxu1 %v2651_v0  ;;  %v2653_v7 = vld [vmem:[%s3862_s7 + $0x58] sm:$0xff]   ;;  %v2659_v10 = vld [vmem:[%s3862_s7 + $0x68] sm:$0xff]  }
 0x42d   : > { %1441 = vrot.lane.b32.xlu0 %v3199_v12, %s2855_s25  ;;  %v3442_v45 = vmul.f32 %v2720_v17, %v2710_v4  ;;  %v2857_v4 = vmov 5   ;;  %v2657_v17 = vld [vmem:[%s3862_s7 + $0x98] sm:$0xff]  }
 0x42e   : > { %1443 = vrot.lane.b32.xlu1 %v3207_v16, %s2855_s25  ;;  %v1338_v16 = vmul.f32 %v1316_v9, %v3393_v51  ;;  %v3471_v51 = vpop.permute.xlu0 %1349 }
 0x42f   : > { %v3446_v52 = vpop.permute.xlu1 %1435  ;;  %2520 = vmatpush3.bf16.msra.mxu1 %v2651_v0 }
 0x430   : > { %v2722_v62 = vpop.eup %2721  ;;  %v1370_v39 = vadd.f32 %v3430_v20, %v1338_v16  ;;  %2521 = vmatprep.subr.bf16.mxu1 %v2654_v27  ;;  %v2658_v16 = vld [vmem:[%s3862_s7 + $0x20] sm:$0xff]  }
 0x431   : > { %1357 = vrot.lane.b32.xlu0 %v3213_v19, %s2853_s23  ;;  %v3450_v53 = vmul.f32 %v2722_v62, %v2712_v26  ;;  %v2724_v12 = vpop.eup %2723  ;;  %v2649_v26 = vld [vmem:[%s3862_s7 + $0x8] sm:$0xff]   ;;  %v2655_v62 = vld [vmem:[%s3862_s7 + $0x18] sm:$0xff]  }
 0x432   : > { %1359 = vrot.lane.b32.xlu1 %v3223_v24, %s2853_s23  ;;  %v1296_v33 = vmul.f32 %v2724_v12, %v3413_v58  ;;  %v2647_v58 = vld [vmem:[%s3862_s7 + $0x48] sm:$0xff]   ;;  %v1318_v47 = vpop.permute.xlu0 %1317  ;;  %v2660_v12 = vld [vmem:[%s3862_s7 + $0xa0] sm:$0xff]  }
 0x433   : > { %v3454_v38 = vpop.permute.xlu1 %1351  ;;  %2522 = vmatpush3.bf16.msra.mxu1 %v2654_v27 }
 0x434   : > { %2523 = vmatprep.subr.bf16.mxu1 %v2657_v17 }
 0x435   : > { %1325 = vrot.lane.b32.xlu0 %v3213_v19, %s2854_s1 }
 0x436   : > { %1327 = vrot.lane.b32.xlu1 %v3223_v24, %s2854_s1 }
 0x437   : > { %v1320_v29 = vpop.permute.xlu1 %1319  ;;  %2524 = vmatpush3.bf16.msra.mxu1 %v2657_v17 }
 0x438   : > { %v1340_v1 = vmul.f32 %v1320_v29, %v1296_v33  ;;  %2525 = vmatprep.subr.bf16.mxu1 %v2660_v12 }
 0x439   : > { %1445 = vrot.lane.b32.xlu0 %v3213_v19, %s2855_s25  ;;  %v2645_v19 = vld [vmem:[%s3862_s7 + $0x40] sm:$0xff]  }
 0x43a   : > { %1447 = vrot.lane.b32.xlu1 %v3223_v24, %s2855_s25  ;;  %v1372_v48 = vadd.f32 %v3454_v38, %v1340_v1  ;;  %v2646_v24 = vld [vmem:[%s3862_s7] sm:$0xff]   ;;  %2433 = vmatprep.subr.bf16.mxu0 %v2645_v19  ;;  %s3918_s25 = sld [smem:[#allocation24_spill]] }
 0x43b   : > { %2434 = vmatpush3.bf16.msra.mxu0 %v2646_v24  ;;  %2526 = vmatpush3.bf16.msra.mxu1 %v2660_v12  ;;  %v1339_v24 = vmul.f32 %v1318_v47, %v3424_v61  ;;  %v2668_v47 = vld [vmem:[%s3862_s7 + $0xb8] sm:$0xff]  }
 0x43c   : > { %2435 = vmatprep.subr.bf16.mxu0 %v2647_v58  ;;  %v2662_v58 = vld [vmem:[%s3862_s7 + $0x70] sm:$0xff]  }
 0x43d   : > { %1472 = vperm.xlu0 %2635, %v1370_v39   ;;  %v2661_v39 = vld [vmem:[%s3862_s7 + $0x28] sm:$0xff]   ;;  %v1371_v61 = vadd.f32 %v3471_v51, %v1339_v24 }
 0x43e   : > { %1467 = vperm.xlu1 %2634, %v1369_v60  }
 0x43f   : > { %2436 = vmatpush3.bf16.msra.mxu0 %v2649_v26 }
 0x440   : > { %2437 = vmatprep.subr.bf16.mxu0 %v2650_v35  ;;  %s3919_s16 = smov %s3918_s25  ;;  %s3800_s26 = scalar_lea.hbm %s3918_s25, %s2393_s17 }
 0x441   : > { %2636 = vset.pattern.permute.xlu0 %v2857_v4 }
 0x442   : > { %1482 = vperm.xlu1 %2634, %v1372_v48  }
 0x443   : > { %2438 = vmatpush3.bf16.msra.mxu0 %v2652_v14 }
 0x444   : > { %2439 = vmatprep.subr.bf16.mxu0 %v2653_v7 }
 0x446   : > { %2638 = vset.pattern.permute.xlu1 %v2857_v4 }
 0x447   : > { %2440 = vmatpush3.bf16.msra.mxu0 %v2655_v62 }
 0x448   : > { %v1386_v40 = vpop.permute.xlu0 %1385  ;;  %2441 = vmatprep.subr.bf16.mxu0 %v2656_v11 }
 0x449   : > { %2725 = vrcp.f32 %v1386_v40 }
 0x44b   : > { %2442 = vmatpush3.bf16.msra.mxu0 %v2658_v16 }
 0x44c   : > { %v1388_v9 = vpop.permute.xlu1 %1387  ;;  %2443 = vmatprep.subr.bf16.mxu0 %v2659_v10  ;;  %v1438_v26 = vpop.permute.xlu0 %1437 }
 0x44d   : > { %2727 = vrcp.f32 %v1388_v9 }
 0x44f   : > { %2444 = vmatpush3.bf16.msra.mxu0 %v2661_v39 }
 0x450   : > { %2445 = vmatprep.subr.bf16.mxu0 %v2662_v58  ;;  %v1440_v0 = vpop.permute.xlu1 %1439 }
 0x453   : > { %v2726_v29 = vpop.eup %2725 }
 0x454   : > { %v1410_v33 = vmul.f32 %v2726_v29, %v3319_v18 }
 0x456   : > { %v1425_v60 = vmul.f32 %v1410_v33, %v3436_v63  ;;  %v2663_v63 = vld [vmem:[%s3862_s7 + $0xa8] sm:$0xff]  }
 0x457   : > { %v2728_v1 = vpop.eup %2727  ;;  %2527 = vmatprep.subr.bf16.mxu1 %v2663_v63 }
 0x458   : > { %v1457_v48 = vadd.f32 %v3462_v6, %v1425_v60  ;;  %v1412_v19 = vmul.f32 %v2728_v1, %v3323_v43  ;;  %v2664_v6 = vld [vmem:[%s3862_s7 + $0x30] sm:$0xff]   ;;  %2528 = vmatpush3.bf16.msra.mxu1 %v2663_v63 }
 0x459   : > { %2446 = vmatpush3.bf16.msra.mxu0 %v2664_v6  ;;  %2529 = vmatprep.subr.bf16.mxu1 %v2666_v36 }
 0x45a   : > { %1519 = vperm.xlu0 %2636, %v1457_v48   ;;  %v1426_v18 = vmul.f32 %v1412_v19, %v3430_v20  ;;  %v2665_v20 = vld [vmem:[%s3862_s7 + $0x78] sm:$0xff]  }
 0x45b   : > { %2447 = vmatprep.subr.bf16.mxu0 %v2665_v20 }
 0x45c   : > { %v1458_v43 = vadd.f32 %v3446_v52, %v1426_v18  ;;  %v2667_v52 = vld [vmem:[%s3862_s7 + $0x38] sm:$0xff]   ;;  %2530 = vmatpush3.bf16.msra.mxu1 %v2666_v36 }
 0x45d   : > { %2448 = vmatpush3.bf16.msra.mxu0 %v2667_v52  ;;  %2531 = vmatprep.subr.bf16.mxu1 %v2668_v47 }
 0x45e   : > { %2637 = vset.pattern.permute.xlu0 %v2856_v34  ;;  %1524 = vperm.xlu1 %2638, %v1458_v43  }
 0x45f   : > { %1477 = vperm.xlu0 %2637, %v1371_v61  }
 0x460   : > { %2532 = vmatpush3.bf16.msra.mxu1 %v2668_v47 }
 0x463   : > { %2640 = vset.pattern.permute.xlu0 %v2857_v4  ;;  %2534 = vmatmul.mubr.bf16.vlgmr.msra.gmra.mrb[0].mxu1 %v3087_v23 }
 0x464   : > { %2537 = vmatprep.mubr.bf16.mxu1 %v3101_v37 }
 0x46b   : > { %2538 = vmatmul.mubr.bf16.gmra.mrb[4].mxu1 %v3114_v50  ;;  %v2054_v50 = vld [vmem:[%s3039_s20] sm:$0xff] }
 0x48a   : > { %v1392_v35 = vpop.permute.xlu1 %1391 }
 0x48b   : > { %2729 = vrcp.f32 %v1392_v35  ;;  %v1390_v40 = vpop.permute.xlu0 %1389 }
 0x48c   : > { %2731 = vrcp.f32 %v1390_v40 }
 0x48e   : > { %v1356_v27 = vpop.permute.xlu1 %1355 }
 0x48f   : > { %v1354_v14 = vpop.permute.xlu0 %1353 }
 0x493   : > { %v1394_v7 = vpop.permute.xlu0 %1393 }
 0x494   : > { %2733 = vrcp.f32 %v1394_v7  ;;  %v1396_v9 = vpop.permute.xlu1 %1395 }
 0x495   : > { %v2730_v17 = vpop.eup %2729  ;;  %2735 = vrcp.f32 %v1396_v9  ;;  %v2034_v9 = vlaneseq }
 0x496   : > { %v2732_v62 = vpop.eup %2731  ;;  %v1416_v22 = vmul.f32 %v2730_v17, %v3333_v2 }
 0x497   : > { %v1322_v11 = vpop.permute.xlu0 %1321  ;;  %v1414_v12 = vmul.f32 %v2732_v62, %v3335_v56  ;;  %v3581_v62 = vand.u32 127, %v2034_v9 }
 0x498   : > { %v1324_v23 = vpop.permute.xlu1 %1323  ;;  %v1428_v33 = vmul.f32 %v1416_v22, %v3454_v38  ;;  %v1341_v56 = vmul.f32 %v1322_v11, %v3432_v8 }
 0x499   : > { %v1427_v16 = vmul.f32 %v1414_v12, %v3471_v51  ;;  %v1342_v6 = vmul.f32 %v1324_v23, %v3442_v45  ;;  %vm2037_vm0 = vcmp.eq.s32.totalorder %v3581_v62, 1  ;;  %vm2036_vm1 = vcmp.eq.s32.totalorder %v3581_v62, 0  ;;  %v3722_v62 = vld [vmem:[%s3915_s30] ss:$0 sm:$0xff] }
 0x49a   : > { %v1460_v24 = vadd.f32 %v1440_v0, %v1428_v33  ;;  %v1373_v38 = vadd.f32 %v1354_v14, %v1341_v56 }
 0x49b   : > { %v1398_v10 = vpop.permute.xlu0 %1397  ;;  %v1459_v29 = vadd.f32 %v1438_v26, %v1427_v16  ;;  %v1374_v52 = vadd.f32 %v1356_v27, %v1342_v6  ;;  %v2055_v16 = vld [vmem:[%s3039_s20 + $0x8] sm:$0xff] }
 0x49c   : > { %2737 = vrcp.f32 %v1398_v10  ;;  %v1400_v39 = vpop.permute.xlu1 %1399 }
 0x49d   : > { %2739 = vrcp.f32 %v1400_v39  ;;  %1529 = vperm.xlu1 %2638, %v1459_v29  }
 0x49e   : > { %v2734_v60 = vpop.eup %2733 }
 0x49f   : > { %v2736_v1 = vpop.eup %2735  ;;  %v1418_v48 = vmul.f32 %v2734_v60, %v3341_v21  ;;  %v1442_v19 = vpop.permute.xlu0 %1441 }
 0x4a0   : > { %v1444_v2 = vpop.permute.xlu1 %1443  ;;  %v1420_v51 = vmul.f32 %v2736_v1, %v3347_v59 }
 0x4a1   : > { %v1429_v18 = vmul.f32 %v1418_v48, %v1354_v14  ;;  %1534 = vperm.xlu1 %2638, %v1460_v24   ;;  %v2056_v48 = vld [vmem:[%s3039_s20 + $0x10] sm:$0xff] }
 0x4a2   : > { %v1430_v61 = vmul.f32 %v1420_v51, %v1356_v27 }
 0x4a3   : > { %v1461_v58 = vadd.f32 %v1442_v19, %v1429_v18  ;;  %v1358_v63 = vpop.permute.xlu0 %1357  ;;  %v2057_v18 = vld [vmem:[%s3039_s20 + $0x18] sm:$0xff] }
 0x4a4   : > { %v1360_v43 = vpop.permute.xlu1 %1359  ;;  %v1462_v0 = vadd.f32 %v1444_v2, %v1430_v61 }
 0x4a5   : > { %1539 = vperm.xlu0 %2640, %v1461_v58   ;;  %2639 = vset.pattern.permute.xlu1 %v2856_v34 }
 0x4a6   : > { %v2738_v21 = vpop.eup %2737  ;;  %1487 = vperm.xlu1 %2639, %v1373_v38  }
 0x4a7   : > { %v2740_v20 = vpop.eup %2739  ;;  %v1422_v8 = vmul.f32 %v2738_v21, %v3345_v54  ;;  %v1326_v36 = vpop.permute.xlu0 %1325  ;;  %v2058_v21 = vld [vmem:[%s3039_s20 + $0x20] sm:$0xff] }
 0x4a8   : > { %v1343_v59 = vmul.f32 %v1326_v36, %v3438_v49  ;;  %v1328_v47 = vpop.permute.xlu1 %1327  ;;  %v1424_v35 = vmul.f32 %v2740_v20, %v3353_v25 }
 0x4a9   : > { %v1431_v26 = vmul.f32 %v1422_v8, %v1358_v63  ;;  %2641 = vset.pattern.permute.xlu0 %v2856_v34  ;;  %v1344_v49 = vmul.f32 %v1328_v47, %v3450_v53  ;;  %v2059_v47 = vld [vmem:[%s3039_s20 + $0x28] sm:$0xff] }
 0x4aa   : > { %2642 = vset.pattern.permute.xlu1 %v2857_v4  ;;  %1492 = vperm.xlu0 %2641, %v1374_v52   ;;  %v1375_v40 = vadd.f32 %v1358_v63, %v1343_v59  ;;  %v1432_v7 = vmul.f32 %v1424_v35, %v1360_v43 }
 0x4ab   : > { %v1446_v45 = vpop.permute.xlu0 %1445  ;;  %1544 = vperm.xlu1 %2642, %v1462_v0   ;;  %v1376_v25 = vadd.f32 %v1360_v43, %v1344_v49 }
 0x4ac   : > { %v1463_v14 = vadd.f32 %v1446_v45, %v1431_v26  ;;  %v1448_v54 = vpop.permute.xlu1 %1447 }
 0x4ad   : > { %v1464_v27 = vadd.f32 %v1448_v54, %v1432_v7  ;;  %v2060_v54 = vld [vmem:[%s3039_s20 + $0x30] sm:$0xff] }
 0x4ae   : > { %1497 = vperm.xlu0 %2641, %v1375_v40  }
 0x4af   : > { %1549 = vperm.xlu1 %2642, %v1463_v14  }
 0x4b2   : > { %2644 = vset.pattern.permute.xlu0 %v2857_v4 }
 0x4b3   : > { %1554 = vperm.xlu1 %2642, %v1464_v27  }
 0x4b7   : > { %2643 = vset.pattern.permute.xlu1 %v2856_v34 }
 0x4b8   : > { %1502 = vperm.xlu1 %2643, %v1376_v25  }
 0x4bc   : > { %v3583_v11 = vpop.permute.xlu0 %1472 }
 0x4bd   : > { %v3579_v17 = vpop.permute.xlu1 %1467  ;;  %v1506_v22 = vmul.f32 %v3583_v11, %v3140_v15 }
 0x4be   : > { %v1505_v23 = vmul.f32 %v3579_v17, %v3138_v13 }
 0x4c0   : > { %v1513_v1 = vpack.c.bf16 %v1506_v22, %v1505_v23 }
 0x4c1   : > { %v3587_v37 = vpop.permute.xlu1 %1482 }
 0x4c2   : > { %v1508_v6 = vmul.f32 %v3587_v37, %v3149_v32 }
 0x4d9   : > { %v3590_v53 = vpop.permute.xlu0 %1519 }
 0x4da   : > { %v2038_v34 = vsel %vm2037_vm0, %v3590_v53, 0.0  ;;  %v1557_v33 = vmul.f32 %v3590_v53, %v3091_v30 }
 0x4db   : > { %v2046_v4 = vsel %vm2036_vm1, %v3579_v17, %v2038_v34 }
 0x4dc   : > { %v2062_v12 = vadd.f32 %v2054_v50, %v2046_v4 }
 0x4dd   : > { %v3603_v10 = vpop.permute.xlu1 %1524 }
 0x4de   : > { %2070 = vst [vmem:[%s3049_s4] sm:$0xff] %v2062_v12  ;;  %v2039_v29 = vsel %vm2037_vm0, %v3603_v10, 0.0  ;;  %v1558_v39 = vmul.f32 %v3603_v10, %v3107_v42  ;;  %v3620_v24 = vpop.permute.xlu0 %1477  ;;  %v2061_v12 = vld [vmem:[%s3039_s20 + $0x38] sm:$0xff]  ;;  %s2858_s20 = smov [#allocation6]  }
 0x4df   : > { %v2047_v15 = vsel %vm2036_vm1, %v3583_v11, %v2039_v29  ;;  %v1507_v2 = vmul.f32 %v3620_v24, %v3147_v28  ;;  %s2769_s8 = sshll.u32 %s2858_s20, 4  ;;  %s2770_s8 = int_to_ptr.vmem [resolvable:$false] %s2769_s8 }
 0x4e0   : > { %v2063_v13 = vadd.f32 %v2055_v16, %v2047_v15  ;;  %v1565_v60 = vpack.c.bf16 %v1558_v39, %v1557_v33  ;;  %v3913_v16 = vld [vmem:[#allocation19_spill] sm:$0xff]  ;;  %v3914_v33 = vld [vmem:[#allocation20_spill] sm:$0xff]  ;;  %p2772_p3 = scmp.lt.s32.totalorder %s3803_s21, %s2770_s8 }
 0x4e1   : > { %v1514_v20 = vpack.c.bf16 %v1508_v6, %v1507_v2 }
 0x4e2   : > { %2071 = vst [vmem:[%s3049_s4 + $0x8] sm:$0xff] %v2063_v13  ;;  %1830 = vmatprep.mubr.bf16.mxu0 %v1565_v60 }
 0x4e3   : > { %1831 = vmatmul.mubr.bf16.vlgmr.msra.gmra.mrb[0].mxu0 %v1513_v1 }
 0x51c   : > { %v3618_v19 = vpop.permute.xlu1 %1529 }
 0x51d   : > { %v2040_v30 = vsel %vm2037_vm0, %v3618_v19, 0.0  ;;  %v1559_v58 = vmul.f32 %v3618_v19, %v3093_v31 }
 0x51e   : > { %v2048_v42 = vsel %vm2036_vm1, %v3620_v24, %v2040_v30 }
 0x51f   : > { %v2064_v56 = vadd.f32 %v2056_v48, %v2048_v42 }
 0x520   : > { %v3631_v51 = vpop.permute.xlu1 %1534 }
 0x521   : > { %2072 = vst [vmem:[%s3049_s4 + $0x10] sm:$0xff] %v2064_v56  ;;  %v1560_v63 = vmul.f32 %v3631_v51, %v3109_v44  ;;  %v2041_v38 = vsel %vm2037_vm0, %v3631_v51, 0.0 }
 0x522   : > { %v2049_v28 = vsel %vm2036_vm1, %v3587_v37, %v2041_v38 }
 0x523   : > { %v2065_v43 = vadd.f32 %v2057_v18, %v2049_v28  ;;  %v1566_v61 = vpack.c.bf16 %v1560_v63, %v1559_v58  ;;  %v1646_v63 = vmul.f32 %v3722_v62, %v3579_v17  ;;  %v3729_v28 = vld [vmem:[%s3915_s30 + $0x1] ss:$0 sm:$0xff] }
 0x524   : > { %v3646_v31 = vpop.permute.xlu0 %1539 }
 0x525   : > { %2073 = vst [vmem:[%s3049_s4 + $0x18] sm:$0xff] %v2065_v43  ;;  %v2042_v44 = vsel %vm2037_vm0, %v3646_v31, 0.0  ;;  %1838 = vmatprep.mubr.bf16.mxu0 %v1566_v61  ;;  %v3653_v8 = vpop.permute.xlu1 %1487  ;;  %v1561_v26 = vmul.f32 %v3646_v31, %v3120_v55  ;;  %v1647_v61 = vmul.f32 %v3722_v62, %v3583_v11 }
 0x526   : > { %v2050_v32 = vsel %vm2036_vm1, %v3653_v8, %v2042_v44  ;;  %1839 = vmatmul.mubr.bf16.gmra.mrb[4].mxu0 %v1514_v20  ;;  %v1509_v40 = vmul.f32 %v3653_v8, %v3157_v41  ;;  %v1933_v44 = vmul.f32 %v3729_v28, %v3590_v53 }
 0x527   : > { %v2066_v36 = vadd.f32 %v2058_v21, %v2050_v32 }
 0x529   : > { %2074 = vst [vmem:[%s3049_s4 + $0x20] sm:$0xff] %v2066_v36  ;;  %v3659_v52 = vpop.permute.xlu0 %1492  ;;  %v3738_v36 = vld [vmem:[%s3915_s30 + $0x2] ss:$0 sm:$0xff] }
 0x52a   : > { %v1510_v59 = vmul.f32 %v3659_v52, %v3159_v46  ;;  %v3664_v0 = vpop.permute.xlu1 %1544 }
 0x52b   : > { %v1562_v35 = vmul.f32 %v3664_v0, %v3122_v57  ;;  %v2043_v45 = vsel %vm2037_vm0, %v3664_v0, 0.0 }
 0x52c   : > { %v2051_v46 = vsel %vm2036_vm1, %v3659_v52, %v2043_v45  ;;  %v1515_v27 = vpack.c.bf16 %v1510_v59, %v1509_v40  ;;  %v1934_v59 = vmul.f32 %v3729_v28, %v3603_v10  ;;  %v2010_v45 = vld [vmem:[%s3034_s28] sm:$0xff]  ;;  %v1648_v10 = vmul.f32 %v3722_v62, %v3620_v24 }
 0x52d   : > { %v2067_v14 = vadd.f32 %v2059_v47, %v2051_v46  ;;  %v1567_v7 = vpack.c.bf16 %v1562_v35, %v1561_v26  ;;  %v3682_v57 = vpop.permute.xlu0 %1497  ;;  %v2011_v46 = vld [vmem:[%s3034_s28 + $0x8] sm:$0xff] }
 0x52e   : > { %v3679_v55 = vpop.permute.xlu1 %1549  ;;  %v1511_v29 = vmul.f32 %v3682_v57, %v3913_v16  ;;  %v1935_v16 = vmul.f32 %v3729_v28, %v3618_v19 }
 0x52f   : > { %2075 = vst [vmem:[%s3049_s4 + $0x28] sm:$0xff] %v2067_v14  ;;  %v2044_v49 = vsel %vm2037_vm0, %v3679_v55, 0.0  ;;  %1846 = vmatprep.mubr.bf16.mxu0 %v1567_v7  ;;  %v1563_v50 = vmul.f32 %v3679_v55, %v3130_v3 }
 0x530   : > { %v2052_v41 = vsel %vm2036_vm1, %v3682_v57, %v2044_v49  ;;  %1847 = vmatmul.mubr.bf16.gmra.mrb[8].mxu0 %v1515_v27 }
 0x531   : > { %v2068_v25 = vadd.f32 %v2060_v54, %v2052_v41 }
 0x532   : > { %v3690_v9 = vpop.permute.xlu1 %1554 }
 0x533   : > { %2076 = vst [vmem:[%s3049_s4 + $0x30] sm:$0xff] %v2068_v25  ;;  %v1564_v34 = vmul.f32 %v3690_v9, %v3132_v5  ;;  %v2045_v22 = vsel %vm2037_vm0, %v3690_v9, 0.0 }
 0x535   : > { %v1568_v4 = vpack.c.bf16 %v1564_v34, %v1563_v50 }
 0x536   : > { %v2535_v13 = vpop.f32.mrb[0].mxu1 }
 0x537   : > { %1854 = vmatprep.mubr.bf16.mxu0 %v1568_v4  ;;  %v3701_v23 = vpop.permute.xlu1 %1502  ;;  %v1897_v60 = vpop.f32.mrb[1].mxu1  ;;  %v1649_v4 = vmul.f32 %v3722_v62, %v3587_v37 }
 0x538   : > { %v1512_v39 = vmul.f32 %v3701_v23, %v3914_v33  ;;  %v2053_v3 = vsel %vm2036_vm1, %v3701_v23, %v2045_v22  ;;  %v2536_v1 = vpop.f32.mrb[2].mxu1 }
 0x539   : > { %v2069_v5 = vadd.f32 %v2061_v12, %v2053_v3  ;;  %v1900_v48 = vpop.f32.mrb[3].mxu1 }
 0x53a   : > { %v1516_v15 = vpack.c.bf16 %v1512_v39, %v1511_v29  ;;  %v1936_v39 = vmul.f32 %v3729_v28, %v3631_v51  ;;  %v1651_v51 = vmul.f32 %v3722_v62, %v3659_v52  ;;  %v1938_v52 = vmul.f32 %v3729_v28, %v3664_v0 }
 0x53b   : > { %2077 = vst [vmem:[%s3049_s4 + $0x38] sm:$0xff] %v2069_v5  ;;  %v1652_v0 = vmul.f32 %v3722_v62, %v3682_v57  ;;  %v1939_v57 = vmul.f32 %v3729_v28, %v3679_v55  ;;  %s2771_s4 = scalar_lea.vmem %s2770_s8, 1024 }
 0x53c   : > { %1855 = vmatmul.mubr.bf16.gmra.mrb[12].mxu0 %v1516_v15  ;;  %p2773_p5 = scmp.lt.s32.totalorder %s2771_s4, %s2765_s22 }
 0x53e   : > { %v3711_v30 = vpop.f32.mrb[4].mxu1  ;;  %p2774_p6 = por %p2773_p5, %p2772_p3 }
 0x53f   : > { %v3713_v42 = vpop.f32.mrb[5].mxu1 }
 0x540   : > { %v3715_v56 = vpop.f32.mrb[6].mxu1  ;;  %p2775_p7 = pnand %p2774_p6, %p2768_p2 }
 0x541   : > { %v3717_v2 = vpop.f32.mrb[7].mxu1 }
 0x5b6   : > { %v2449_v18 = vpop.f32.mrb[0].mxu0 }
 0x5b7   : > { %v2450_v58 = vpop.f32.mrb[1].mxu0 }
 0x5b8   : > { %v2451_v38 = vadd.f32 %v2450_v58, %v2449_v18  ;;  %v2452_v6 = vpop.f32.mrb[2].mxu0  ;;  %v1650_v18 = vmul.f32 %v3722_v62, %v3653_v8  ;;  %v1937_v8 = vmul.f32 %v3729_v28, %v3646_v31  ;;  %v2014_v31 = vld [vmem:[%s3034_s28 + $0x20] sm:$0xff] }
 0x5b9   : > { %v2453_v43 = vpop.f32.mrb[3].mxu0 }
 0x5ba   : > { %v2454_v21 = vadd.f32 %v2453_v43, %v2452_v6  ;;  %v1833_v20 = vadd.f32 %v2451_v38, %v1646_v63 }
 0x5bc   : > { %v1898_v17 = vadd.f32 %v1897_v60, %v1833_v20  ;;  %v1836_v32 = vadd.f32 %v2454_v21, %v1647_v61 }
 0x5be   : > { %v1941_v47 = vadd.f32 %v1933_v44, %v1898_v17  ;;  %v1901_v11 = vadd.f32 %v1900_v48, %v1836_v32  ;;  %v2012_v48 = vld [vmem:[%s3034_s28 + $0x10] sm:$0xff] }
 0x5c0   : > { %v1954_v26 = vadd.f32 %v3738_v36, %v1941_v47  ;;  %v1942_v35 = vadd.f32 %v1934_v59, %v1901_v11 }
 0x5c2   : > { %v1962_v40 = vmax.f32 %v1954_v26, 0.0  ;;  %v1955_v53 = vadd.f32 %v3738_v36, %v1942_v35 }
 0x5c4   : > { %v2018_v14 = vmax.f32 %v2010_v45, %v1962_v40  ;;  %v1963_v7 = vmax.f32 %v1955_v53, 0.0 }
 0x5c6   : > { %2026 = vst [vmem:[%s3044_s27] sm:$0xff] %v2018_v14  ;;  %v2397_v54 = vpack.c.bf16 %v1963_v7, %v1962_v40  ;;  %v2019_v27 = vmax.f32 %v2011_v46, %v1963_v7 }
 0x5c8   : > { %2398 = vst [vmem:[%s3053_s19] sm:$0xff] %v2397_v54   ;;  %2027 = vst [vmem:[%s3044_s27 + $0x8] sm:$0xff] %v2019_v27  ;;  %v1653_v54 = vmul.f32 %v3722_v62, %v3701_v23  ;;  %v1940_v23 = vmul.f32 %v3729_v28, %v3690_v9 }
 0x5f9   : > { %v2455_v49 = vpop.f32.mrb[4].mxu0 }
 0x5fa   : > { %v2456_v41 = vpop.f32.mrb[5].mxu0 }
 0x5fb   : > { %v2457_v25 = vadd.f32 %v2456_v41, %v2455_v49  ;;  %v2458_v50 = vpop.f32.mrb[6].mxu0 }
 0x5fc   : > { %v2459_v34 = vpop.f32.mrb[7].mxu0 }
 0x5fd   : > { %v1841_v12 = vadd.f32 %v2457_v25, %v1648_v10  ;;  %v2460_v22 = vadd.f32 %v2459_v34, %v2458_v50 }
 0x5ff   : > { %v1906_v29 = vadd.f32 %v2535_v13, %v1841_v12  ;;  %v1844_v33 = vadd.f32 %v2460_v22, %v1649_v4 }
 0x601   : > { %v1943_v3 = vadd.f32 %v1935_v16, %v1906_v29  ;;  %v1909_v24 = vadd.f32 %v2536_v1, %v1844_v33  ;;  %v2013_v1 = vld [vmem:[%s3034_s28 + $0x18] sm:$0xff]  ;;  %v2016_v16 = vld [vmem:[%s3034_s28 + $0x30] sm:$0xff] }
 0x603   : > { %v1956_v5 = vadd.f32 %v3738_v36, %v1943_v3  ;;  %v1944_v15 = vadd.f32 %v1936_v39, %v1909_v24  ;;  %v2461_v60 = vpop.f32.mrb[8].mxu0 }
 0x604   : > { %v2462_v37 = vpop.f32.mrb[9].mxu0 }
 0x605   : > { %v1964_v58 = vmax.f32 %v1956_v5, 0.0  ;;  %v1957_v19 = vadd.f32 %v3738_v36, %v1944_v15  ;;  %v2463_v13 = vadd.f32 %v2462_v37, %v2461_v60  ;;  %v2464_v63 = vpop.f32.mrb[10].mxu0 }
 0x606   : > { %v2465_v38 = vpop.f32.mrb[11].mxu0 }
 0x607   : > { %v2020_v6 = vmax.f32 %v2012_v48, %v1964_v58  ;;  %v1965_v43 = vmax.f32 %v1957_v19, 0.0  ;;  %v2466_v61 = vadd.f32 %v2465_v38, %v2464_v63  ;;  %v1849_v21 = vadd.f32 %v2463_v13, %v1650_v18 }
 0x609   : > { %2028 = vst [vmem:[%s3044_s27 + $0x10] sm:$0xff] %v2020_v6  ;;  %v2402_v20 = vpack.c.bf16 %v1965_v43, %v1964_v58  ;;  %v2021_v44 = vmax.f32 %v2013_v1, %v1965_v43  ;;  %v1914_v17 = vadd.f32 %v3713_v42, %v1849_v21  ;;  %v1852_v32 = vadd.f32 %v2466_v61, %v1651_v51  ;;  %v2015_v42 = vld [vmem:[%s3034_s28 + $0x28] sm:$0xff] }
 0x60b   : > { %2414 = vst [vmem:[%s3053_s19 + $0x8] sm:$0xff] %v2402_v20   ;;  %2029 = vst [vmem:[%s3044_s27 + $0x18] sm:$0xff] %v2021_v44  ;;  %v1945_v59 = vadd.f32 %v1937_v8, %v1914_v17  ;;  %v1917_v47 = vadd.f32 %v3717_v2, %v1852_v32 }
 0x60d   : > { %v1958_v11 = vadd.f32 %v3738_v36, %v1945_v59  ;;  %v1946_v26 = vadd.f32 %v1938_v52, %v1917_v47 }
 0x60f   : > { %v1966_v35 = vmax.f32 %v1958_v11, 0.0  ;;  %v1959_v45 = vadd.f32 %v3738_v36, %v1946_v26  ;;  %v2467_v40 = vpop.f32.mrb[12].mxu0 }
 0x610   : > { %v2468_v53 = vpop.f32.mrb[13].mxu0 }
 0x611   : > { %v2022_v46 = vmax.f32 %v2014_v31, %v1966_v35  ;;  %v1967_v14 = vmax.f32 %v1959_v45, 0.0  ;;  %v2469_v7 = vadd.f32 %v2468_v53, %v2467_v40  ;;  %v2470_v2 = vpop.f32.mrb[14].mxu0 }
 0x612   : > { %v2471_v27 = vpop.f32.mrb[15].mxu0 }
 0x613   : > { %2030 = vst [vmem:[%s3044_s27 + $0x20] sm:$0xff] %v2022_v46  ;;  %v2407_v49 = vpack.c.bf16 %v1967_v14, %v1966_v35  ;;  %v2023_v41 = vmax.f32 %v2015_v42, %v1967_v14  ;;  %v1857_v10 = vadd.f32 %v2469_v7, %v1652_v0  ;;  %v2472_v25 = vadd.f32 %v2471_v27, %v2470_v2 }
 0x615   : > { %2415 = vst [vmem:[%s3053_s19 + $0x10] sm:$0xff] %v2407_v49   ;;  %2031 = vst [vmem:[%s3044_s27 + $0x28] sm:$0xff] %v2023_v41  ;;  %v1922_v50 = vadd.f32 %v3711_v30, %v1857_v10  ;;  %v1860_v34 = vadd.f32 %v2472_v25, %v1653_v54  ;;  %v2017_v30 = vld [vmem:[%s3034_s28 + $0x38] sm:$0xff]  ;;  %s3809_s28 = scalar_lea.sflag [#allocation7], %s3920_s24 }
 0x617   : > { %v1947_v62 = vadd.f32 %v1939_v57, %v1922_v50  ;;  %v1925_v4 = vadd.f32 %v3715_v56, %v1860_v34 }
 0x619   : > { %v1960_v12 = vadd.f32 %v3738_v36, %v1947_v62  ;;  %v1948_v22 = vadd.f32 %v1940_v23, %v1925_v4 }
 0x61b   : > { %v1968_v55 = vmax.f32 %v1960_v12, 0.0  ;;  %v1961_v29 = vadd.f32 %v3738_v36, %v1948_v22 }
 0x61d   : > { %v2024_v33 = vmax.f32 %v2016_v16, %v1968_v55  ;;  %v1969_v39 = vmax.f32 %v1961_v29, 0.0 }
 0x61f   : > { %2032 = vst [vmem:[%s3044_s27 + $0x30] sm:$0xff] %v2024_v33  ;;  %v2412_v9 = vpack.c.bf16 %v1969_v39, %v1968_v55  ;;  %v2025_v56 = vmax.f32 %v2017_v30, %v1969_v39 }
 0x621   : > { %2416 = vst [vmem:[%s3053_s19 + $0x18] sm:$0xff] %v2412_v9   ;;  %2033 = vst [vmem:[%s3044_s27 + $0x38] sm:$0xff] %v2025_v56 }
 0x622   : > { %2778 = shalt.err (!%p2775_p7)
}
 0x623   : > { %s2779_s27 = scalar_lea.hbm %s3800_s26, 512  ;;  %s2783_s18 = scalar_lea.hbm %s3919_s16, 1024 }
 0x624   : > { %p2780_p8 = scmp.ne.s32.totalorder %s3800_s26, %s2779_s27  ;;  %p2784_p11 = scmp.lt.u32.totalorder %s3800_s26, %s3919_s16 }
 0x625   : > { %p2785_p12 = scmp.lt.u32.totalorder %s2783_s18, %s2779_s27  ;;  %p2787_p1 = scmp.lt.u32.totalorder %s2779_s27, %s3800_s26 }
 0x626   : > { %p2781_p9 = pnand %p2780_p8, %p2981_p0 }
 0x627   : > { %p2786_p13 = por %p2785_p12, %p2784_p11 }
 0x628   : > { %p2782_p10 = pneg %p2781_p9 }
 0x629   : > { %p2788_p2 = por %p2787_p1, %p2786_p13 }
 0x62b   : > { %p2789_p3 = pnand %p2788_p2, %p2782_p10 }
 0x62d   : > { %2792 = shalt.err (!%p2789_p3)
}
 0x62e   : > { %s2859_s17 = smov 64  }
 0x62f   : > { %2557 = dma.vmem_to_hbm [thread:$0]  (%p2981_p0), %s3803_s21, 512, %s3800_s26, %s3809_s28, %s2859_s17, %s2859_s17, %s2854_s1  }
 0x630 PF: > { %s3921_s0 = sld [smem:[#allocation14_spill]]  ;;  %s3922_s23 = sld [smem:[#allocation10_spill]] }
 0x636   : > { %p2563_p5 = scmp.ge.s32.totalorder %s3921_s0, 2  ;;  %s2125_s24 = sand.u32 1, %s3922_s23  }
 0x637   : > { %s2126_s22 = scalar_lea.sflag [#allocation7], %s2125_s24 }
 0x638   : > { %p2560_p6 = pnand %p2563_p5, %p2988_p4 }
 0x63a   : > { %2820 = dma.done.wait (!%p2560_p6), %s2126_s22, 512  }
 0x63b   : > { %2822 = vsyncadd (!%p2560_p6), %s2126_s22, 4294966784  ;;  %s38_s26 = sadd.s32 1, %s3921_s0   ;;  %s3924_s1 = sld [smem:[#allocation11_spill]] }
 0x63c   : > { %p35_p7 = scmp.ge.s32.totalorder %s38_s26, 4   ;;  %s3925_s22 = sld [smem:[#allocation12_spill]] }
 0x63d   : > { %s3926_s23 = sld [smem:[#allocation18_spill]]  ;;  %s3927_s24 = sld [smem:[#allocation13_spill]] }
 0x63e   : > { %s3928_s25 = sld [smem:[#allocation15_spill]]  ;;  %37 = sbr.rel (!%p35_p7) target bundleno = 31 (0x1f), region = 149 }
 0x645   :  { %2147 = vsyncpa [#allocation7], 1 }
 0x646   :  { %2149 = vsyncpa [#allocation7 + $0x1], 1 }

// kernel: gnn_forward.7
= control target key start
LH: loop header
LB: loop body
LE: loop exit
PB: predicated region body
PF: predicated region fallthrough
CT: control target
= control target key end

     0   :  { %v988_v0 = vmov 1   ;;  %v989_v10 = vmov 0   ;;  %v31_v34 = vlaneseq  ;;  %v990_v40 = vmov 1.0|1.0   ;;  %s1392_s0 = inlined_call_operand.vmem [shape: s32[128,128], index: 0, kind: input, shape index: {}]   ;;  %s1393_s1 = inlined_call_operand.vmem [shape: bf16[128,256], index: 1, kind: input, shape index: {}]   ;;  %s1394_s2 = inlined_call_operand.vmem [shape: f32[1,128], index: 2, kind: input, shape index: {}]   ;;  %s1395_s3 = inlined_call_operand.vmem [shape: f32[128,128], index: 3, kind: output, shape index: {}]  }
   0x1   :  { %884 = vset.pattern.permute.xlu0 %v988_v0  ;;  %882 = vset.pattern.permute.xlu1 %v988_v0  ;;  %v17_v1 = vld [vmem:[%s1392_s0 + $0x10] sm:$0xff]  ;;  %v15_v2 = vld [vmem:[%s1392_s0] sm:$0xff]  ;;  %v16_v4 = vld [vmem:[%s1392_s0 + $0x8] sm:$0xff] }
   0x2   :  { %128 = vperm.xlu0 %884, %v17_v1   ;;  %122 = vperm.xlu1 %882, %v15_v2   ;;  %v21_v3 = vld [vmem:[%s1392_s0 + $0x30] sm:$0xff]  ;;  %v18_v6 = vld [vmem:[%s1392_s0 + $0x18] sm:$0xff]  ;;  %v900_v7 = vld [vmem:[%s1393_s1 + $0x4] ss:$8 sps:$4 sm:$0xff]   ;;  %v1129_v37 = vand.u32 127, %v31_v34 }
   0x3   :  { %v1028_v5 = vld [vmem:[%s1392_s0 + $0x50] sm:$0xff]  ;;  %v904_v9 = vld [vmem:[%s1393_s1] ss:$8 sps:$4 sm:$0xff]   ;;  %799 = vmatprep.subr.bf16.mxu1 %v900_v7  ;;  %v905_v12 = vld [vmem:[%s1393_s1 + $0x24] ss:$8 sps:$4 sm:$0xff]  }
   0x4   :  { %v902_v8 = vld [vmem:[%s1393_s1 + $0x14] ss:$8 sps:$4 sm:$0xff]   ;;  %v907_v11 = vld [vmem:[%s1393_s1 + $0x10] ss:$8 sps:$4 sm:$0xff]   ;;  %800 = vmatpush3.bf16.msra.mxu1 %v900_v7  ;;  %831 = vmatprep.subr.bf16.mxu0 %v904_v9  ;;  %v910_v13 = vld [vmem:[%s1393_s1 + $0x20] ss:$8 sps:$4 sm:$0xff]  }
   0x5   :  { %801 = vmatprep.subr.bf16.mxu1 %v902_v8  ;;  %832 = vmatpush3.bf16.msra.mxu0 %v904_v9  ;;  %v908_v14 = vld [vmem:[%s1393_s1 + $0x34] ss:$8 sps:$4 sm:$0xff]   ;;  %v19_v15 = vld [vmem:[%s1392_s0 + $0x20] sm:$0xff]  ;;  %v913_v16 = vld [vmem:[%s1393_s1 + $0x30] ss:$8 sps:$4 sm:$0xff]  }
   0x6   :  { %140 = vperm.xlu0 %884, %v21_v3   ;;  %125 = vperm.xlu1 %882, %v16_v4   ;;  %v911_v17 = vld [vmem:[%s1393_s1 + $0x44] ss:$8 sps:$4 sm:$0xff]   ;;  %v916_v18 = vld [vmem:[%s1393_s1 + $0x40] ss:$8 sps:$4 sm:$0xff]   ;;  %v914_v20 = vld [vmem:[%s1393_s1 + $0x54] ss:$8 sps:$4 sm:$0xff]  }
   0x7   :  { %833 = vmatprep.subr.bf16.mxu0 %v907_v11  ;;  %v20_v19 = vld [vmem:[%s1392_s0 + $0x28] sm:$0xff]  ;;  %v919_v21 = vld [vmem:[%s1393_s1 + $0x50] ss:$8 sps:$4 sm:$0xff]   ;;  %v920_v26 = vld [vmem:[%s1393_s1 + $0x74] ss:$8 sps:$4 sm:$0xff]  }
   0x8   :  { %802 = vmatpush3.bf16.msra.mxu1 %v902_v8  ;;  %v917_v22 = vld [vmem:[%s1393_s1 + $0x64] ss:$8 sps:$4 sm:$0xff]   ;;  %v22_v23 = vld [vmem:[%s1392_s0 + $0x38] sm:$0xff]  ;;  %v922_v25 = vld [vmem:[%s1393_s1 + $0x60] ss:$8 sps:$4 sm:$0xff]  }
   0x9   :  { %803 = vmatprep.subr.bf16.mxu1 %v905_v12  ;;  %834 = vmatpush3.bf16.msra.mxu0 %v907_v11  ;;  %v24_v24 = vld [vmem:[%s1392_s0 + $0x48] sm:$0xff]  ;;  %v923_v27 = vld [vmem:[%s1393_s1 + $0x70] ss:$8 sps:$4 sm:$0xff]   ;;  %v23_v29 = vld [vmem:[%s1392_s0 + $0x40] sm:$0xff] }
   0xa   :  { %152 = vperm.xlu0 %884, %v1028_v5   ;;  %883 = vset.pattern.permute.xlu1 %v989_v10  ;;  %v28_v28 = vld [vmem:[%s1392_s0 + $0x68] sm:$0xff]  ;;  %v29_v30 = vld [vmem:[%s1392_s0 + $0x70] sm:$0xff]  ;;  %v26_v31 = vld [vmem:[%s1392_s0 + $0x58] sm:$0xff] }
   0xb   :  { %43 = vperm.xlu1 %883, %v18_v6   ;;  %835 = vmatprep.subr.bf16.mxu0 %v910_v13  ;;  %v27_v32 = vld [vmem:[%s1392_s0 + $0x60] sm:$0xff]  ;;  %v30_v33 = vld [vmem:[%s1392_s0 + $0x78] sm:$0xff] }
   0xc   :  { %804 = vmatpush3.bf16.msra.mxu1 %v905_v12 }
   0xd   :  { %805 = vmatprep.subr.bf16.mxu1 %v908_v14  ;;  %836 = vmatpush3.bf16.msra.mxu0 %v910_v13 }
   0xe   :  { %893 = vset.pattern.permute.xlu0 %v989_v10  ;;  %837 = vmatprep.subr.bf16.mxu0 %v913_v16 }
   0xf   :  { %34 = vperm.xlu0 %893, %v15_v2   ;;  %885 = vset.pattern.permute.xlu1 %v988_v0 }
  0x10   :  { %131 = vperm.xlu1 %885, %v18_v6   ;;  %806 = vmatpush3.bf16.msra.mxu1 %v908_v14 }
  0x11   :  { %807 = vmatprep.subr.bf16.mxu1 %v911_v17  ;;  %838 = vmatpush3.bf16.msra.mxu0 %v913_v16 }
  0x12   :  { %839 = vmatprep.subr.bf16.mxu0 %v916_v18 }
  0x13   :  { %37 = vperm.xlu0 %893, %v16_v4  }
  0x14   :  { %886 = vset.pattern.permute.xlu1 %v989_v10  ;;  %808 = vmatpush3.bf16.msra.mxu1 %v911_v17 }
  0x15   :  { %46 = vperm.xlu1 %886, %v19_v15   ;;  %809 = vmatprep.subr.bf16.mxu1 %v914_v20 }
  0x16   :  { %840 = vmatpush3.bf16.msra.mxu0 %v916_v18 }
  0x17   :  { %40 = vperm.xlu0 %893, %v17_v1   ;;  %841 = vmatprep.subr.bf16.mxu0 %v919_v21 }
  0x18   :  { %810 = vmatpush3.bf16.msra.mxu1 %v914_v20 }
  0x19   :  { %887 = vset.pattern.permute.xlu1 %v988_v0  ;;  %811 = vmatprep.subr.bf16.mxu1 %v917_v22 }
  0x1a   :  { %134 = vperm.xlu1 %887, %v19_v15   ;;  %842 = vmatpush3.bf16.msra.mxu0 %v919_v21 }
  0x1b   :  { %49 = vperm.xlu0 %893, %v20_v19   ;;  %843 = vmatprep.subr.bf16.mxu0 %v922_v25 }
  0x1c   :  { %812 = vmatpush3.bf16.msra.mxu1 %v917_v22 }
  0x1d   :  { %813 = vmatprep.subr.bf16.mxu1 %v920_v26 }
  0x1e   :  { %137 = vperm.xlu1 %887, %v20_v19   ;;  %844 = vmatpush3.bf16.msra.mxu0 %v922_v25 }
  0x1f   :  { %52 = vperm.xlu0 %893, %v21_v3   ;;  %845 = vmatprep.subr.bf16.mxu0 %v923_v27 }
  0x20   :  { %814 = vmatpush3.bf16.msra.mxu1 %v920_v26 }
  0x22   :  { %888 = vset.pattern.permute.xlu1 %v989_v10  ;;  %846 = vmatpush3.bf16.msra.mxu0 %v923_v27 }
  0x23   :  { %55 = vperm.xlu1 %888, %v22_v23   ;;  %61 = vperm.xlu0 %893, %v24_v24  }
  0x27   :  { %889 = vset.pattern.permute.xlu1 %v988_v0  ;;  %64 = vperm.xlu0 %893, %v1028_v5  }
  0x28   :  { %143 = vperm.xlu1 %889, %v22_v23  }
  0x2b   :  { %73 = vperm.xlu0 %893, %v28_v28  }
  0x2c   :  { %890 = vset.pattern.permute.xlu1 %v989_v10 }
  0x2d   :  { %58 = vperm.xlu1 %890, %v23_v29  }
  0x2f   :  { %76 = vperm.xlu0 %893, %v29_v30  }
  0x31   :  { %891 = vset.pattern.permute.xlu1 %v988_v0 }
  0x32   :  { %146 = vperm.xlu1 %891, %v23_v29  }
  0x33   :  { %898 = vset.pattern.permute.xlu0 %v988_v0 }
  0x34   :  { %164 = vperm.xlu0 %898, %v29_v30  }
  0x36   :  { %149 = vperm.xlu1 %891, %v24_v24  }
  0x3a   :  { %892 = vset.pattern.permute.xlu1 %v989_v10 }
  0x3b   :  { %67 = vperm.xlu1 %892, %v26_v31  }
  0x3f   :  { %894 = vset.pattern.permute.xlu1 %v988_v0 }
  0x40   :  { %155 = vperm.xlu1 %894, %v26_v31  }
  0x44   :  { %895 = vset.pattern.permute.xlu1 %v989_v10 }
  0x45   :  { %70 = vperm.xlu1 %895, %v27_v32  }
  0x49   :  { %896 = vset.pattern.permute.xlu1 %v988_v0 }
  0x4a   :  { %158 = vperm.xlu1 %896, %v27_v32  }
  0x4e   :  { %161 = vperm.xlu1 %896, %v28_v28  }
  0x52   :  { %897 = vset.pattern.permute.xlu1 %v989_v10  ;;  %v1182_v10 = vld [vmem:[%s1394_s2] ss:$0 sm:$0xff] }
  0x53   :  { %79 = vperm.xlu1 %897, %v30_v33  }
  0x57   :  { %899 = vset.pattern.permute.xlu1 %v988_v0 }
  0x58   :  { %167 = vperm.xlu1 %899, %v30_v33  }
  0x81   :  { %v123_v35 = vpop.permute.xlu1 %122  ;;  %v129_v36 = vpop.permute.xlu0 %128 }
  0x82   :  { %vm169_vm0 = vcmp.eq.s32.totalorder %v1129_v37, %v123_v35  ;;  %vm171_vm3 = vcmp.eq.s32.totalorder %v1129_v37, %v129_v36 }
  0x85   :  { %v126_v38 = vpop.permute.xlu1 %125  ;;  %v141_v39 = vpop.permute.xlu0 %140 }
  0x86   :  { %vm170_vm1 = vcmp.eq.s32.totalorder %v1129_v37, %v126_v38 }
  0x87   :  { %vm726_vm2 = vmpackc.low %vm170_vm1, %vm169_vm0 }
  0x88   :  { %815 = vmatprep.mubr.msk.bf16.mxu1 %vm726_vm2, %v990_v40 }
  0x89   :  { %v153_v41 = vpop.permute.xlu0 %152 }
  0x8a   :  { %v44_v42 = vpop.permute.xlu1 %43 }
  0x8b   :  { %vm84_vm9 = vcmp.eq.s32.totalorder %v1129_v37, %v44_v42 }
  0x8e   :  { %v35_v43 = vpop.permute.xlu0 %34 }
  0x8f   :  { %v132_v44 = vpop.permute.xlu1 %131  ;;  %vm81_vm5 = vcmp.eq.s32.totalorder %v1129_v37, %v35_v43 }
  0x90   :  { %vm172_vm4 = vcmp.eq.s32.totalorder %v1129_v37, %v132_v44 }
  0x91   :  { %vm728_vm6 = vmpackc.low %vm172_vm4, %vm171_vm3 }
  0x92   :  { %v38_v45 = vpop.permute.xlu0 %37  ;;  %816 = vmatmul.mubr.msk.bf16.vlgmr.msra.gmra.mrb[0].mxu1 %vm728_vm6, %v990_v40 }
  0x93   :  { %vm82_vm7 = vcmp.eq.s32.totalorder %v1129_v37, %v38_v45 }
  0x94   :  { %v47_v46 = vpop.permute.xlu1 %46  ;;  %vm750_vm8 = vmpackc.low %vm82_vm7, %vm81_vm5  ;;  %vm175_vm5 = vcmp.eq.s32.totalorder %v1129_v37, %v141_v39 }
  0x95   :  { %847 = vmatprep.mubr.msk.bf16.mxu0 %vm750_vm8, %v990_v40  ;;  %vm85_vm12 = vcmp.eq.s32.totalorder %v1129_v37, %v47_v46 }
  0x96   :  { %v41_v47 = vpop.permute.xlu0 %40 }
  0x97   :  { %vm83_vm10 = vcmp.eq.s32.totalorder %v1129_v37, %v41_v47 }
  0x98   :  { %vm752_vm11 = vmpackc.low %vm84_vm9, %vm83_vm10 }
  0x99   :  { %848 = vmatmul.mubr.msk.bf16.vlgmr.msra.gmra.mrb[0].mxu0 %vm752_vm11, %v990_v40  ;;  %v135_v48 = vpop.permute.xlu1 %134 }
  0x9a   :  { %v50_v49 = vpop.permute.xlu0 %49  ;;  %vm173_vm15 = vcmp.eq.s32.totalorder %v1129_v37, %v135_v48 }
  0x9b   :  { %vm86_vm13 = vcmp.eq.s32.totalorder %v1129_v37, %v50_v49 }
  0x9c   :  { %vm754_vm14 = vmpackc.low %vm86_vm13, %vm85_vm12 }
  0x9d   :  { %851 = vmatprep.mubr.msk.bf16.mxu0 %vm754_vm14, %v990_v40  ;;  %v138_v50 = vpop.permute.xlu1 %137 }
  0x9e   :  { %vm174_vm0 = vcmp.eq.s32.totalorder %v1129_v37, %v138_v50  ;;  %v53_v51 = vpop.permute.xlu0 %52 }
  0x9f   :  { %vm730_vm1 = vmpackc.low %vm174_vm0, %vm173_vm15  ;;  %vm87_vm2 = vcmp.eq.s32.totalorder %v1129_v37, %v53_v51 }
  0xa0   :  { %819 = vmatprep.mubr.msk.bf16.mxu1 %vm730_vm1, %v990_v40  ;;  %vm179_vm1 = vcmp.eq.s32.totalorder %v1129_v37, %v153_v41 }
  0xa2   :  { %v56_v52 = vpop.permute.xlu1 %55  ;;  %v62_v54 = vpop.permute.xlu0 %61 }
  0xa3   :  { %vm88_vm3 = vcmp.eq.s32.totalorder %v1129_v37, %v56_v52  ;;  %vm90_vm8 = vcmp.eq.s32.totalorder %v1129_v37, %v62_v54 }
  0xa4   :  { %vm756_vm4 = vmpackc.low %vm88_vm3, %vm87_vm2 }
  0xa5   :  { %852 = vmatmul.mubr.msk.bf16.gmra.mrb[4].mxu0 %vm756_vm4, %v990_v40 }
  0xa6   :  { %v65_v58 = vpop.permute.xlu0 %64 }
  0xa7   :  { %v144_v53 = vpop.permute.xlu1 %143  ;;  %vm91_vm14 = vcmp.eq.s32.totalorder %v1129_v37, %v65_v58 }
  0xa8   :  { %vm176_vm6 = vcmp.eq.s32.totalorder %v1129_v37, %v144_v53 }
  0xa9   :  { %vm732_vm7 = vmpackc.low %vm176_vm6, %vm175_vm5 }
  0xaa   :  { %820 = vmatmul.mubr.msk.bf16.gmra.mrb[4].mxu1 %vm732_vm7, %v990_v40  ;;  %v74_v61 = vpop.permute.xlu0 %73 }
  0xab   :  { %vm94_vm4 = vcmp.eq.s32.totalorder %v1129_v37, %v74_v61 }
  0xac   :  { %v59_v55 = vpop.permute.xlu1 %58 }
  0xad   :  { %vm89_vm9 = vcmp.eq.s32.totalorder %v1129_v37, %v59_v55 }
  0xae   :  { %vm758_vm10 = vmpackc.low %vm90_vm8, %vm89_vm9  ;;  %v77_v1 = vpop.permute.xlu0 %76 }
  0xaf   :  { %855 = vmatprep.mubr.msk.bf16.mxu0 %vm758_vm10, %v990_v40  ;;  %vm95_vm10 = vcmp.eq.s32.totalorder %v1129_v37, %v77_v1 }
  0xb1   :  { %v147_v56 = vpop.permute.xlu1 %146 }
  0xb2   :  { %vm177_vm11 = vcmp.eq.s32.totalorder %v1129_v37, %v147_v56 }
  0xb3   :  { %v165_v3 = vpop.permute.xlu0 %164 }
  0xb5   :  { %v150_v57 = vpop.permute.xlu1 %149 }
  0xb6   :  { %vm178_vm12 = vcmp.eq.s32.totalorder %v1129_v37, %v150_v57 }
  0xb7   :  { %vm734_vm13 = vmpackc.low %vm178_vm12, %vm177_vm11 }
  0xb8   :  { %823 = vmatprep.mubr.msk.bf16.mxu1 %vm734_vm13, %v990_v40  ;;  %vm183_vm13 = vcmp.eq.s32.totalorder %v1129_v37, %v165_v3 }
  0xba   :  { %v68_v59 = vpop.permute.xlu1 %67 }
  0xbb   :  { %vm92_vm15 = vcmp.eq.s32.totalorder %v1129_v37, %v68_v59 }
  0xbc   :  { %vm760_vm0 = vmpackc.low %vm92_vm15, %vm91_vm14 }
  0xbd   :  { %856 = vmatmul.mubr.msk.bf16.gmra.mrb[8].mxu0 %vm760_vm0, %v990_v40 }
  0xbf   :  { %v156_v60 = vpop.permute.xlu1 %155 }
  0xc0   :  { %vm180_vm2 = vcmp.eq.s32.totalorder %v1129_v37, %v156_v60 }
  0xc1   :  { %vm736_vm3 = vmpackc.low %vm180_vm2, %vm179_vm1 }
  0xc2   :  { %824 = vmatmul.mubr.msk.bf16.gmra.mrb[8].mxu1 %vm736_vm3, %v990_v40 }
  0xc4   :  { %v71_v62 = vpop.permute.xlu1 %70 }
  0xc5   :  { %vm93_vm5 = vcmp.eq.s32.totalorder %v1129_v37, %v71_v62 }
  0xc6   :  { %vm762_vm6 = vmpackc.low %vm94_vm4, %vm93_vm5 }
  0xc7   :  { %859 = vmatprep.mubr.msk.bf16.mxu0 %vm762_vm6, %v990_v40 }
  0xc9   :  { %v159_v63 = vpop.permute.xlu1 %158 }
  0xca   :  { %vm181_vm7 = vcmp.eq.s32.totalorder %v1129_v37, %v159_v63 }
  0xcd   :  { %v162_v0 = vpop.permute.xlu1 %161 }
  0xce   :  { %vm182_vm8 = vcmp.eq.s32.totalorder %v1129_v37, %v162_v0 }
  0xcf   :  { %vm738_vm9 = vmpackc.low %vm182_vm8, %vm181_vm7 }
  0xd0   :  { %827 = vmatprep.mubr.msk.bf16.mxu1 %vm738_vm9, %v990_v40 }
  0xd2   :  { %v80_v2 = vpop.permute.xlu1 %79 }
  0xd3   :  { %vm96_vm11 = vcmp.eq.s32.totalorder %v1129_v37, %v80_v2 }
  0xd4   :  { %vm764_vm12 = vmpackc.low %vm96_vm11, %vm95_vm10 }
  0xd5   :  { %860 = vmatmul.mubr.msk.bf16.gmra.mrb[12].mxu0 %vm764_vm12, %v990_v40 }
  0xd7   :  { %v168_v4 = vpop.permute.xlu1 %167 }
  0xd8   :  { %vm184_vm14 = vcmp.eq.s32.totalorder %v1129_v37, %v168_v4 }
  0xd9   :  { %vm740_vm15 = vmpackc.low %vm184_vm14, %vm183_vm13 }
  0xda   :  { %828 = vmatmul.mubr.msk.bf16.gmra.mrb[12].mxu1 %vm740_vm15, %v990_v40 }
 0x165   :  { %v817_v5 = vpop.f32.mrb[0].mxu1 }
 0x166   :  { %v307_v6 = vpop.f32.mrb[1].mxu1 }
 0x167   :  { %v818_v7 = vpop.f32.mrb[2].mxu1 }
 0x168   :  { %v310_v8 = vpop.f32.mrb[3].mxu1 }
 0x16c   :  { %v849_v9 = vpop.f32.mrb[0].mxu0 }
 0x16d   :  { %v445_v11 = vadd.f32 %v849_v9, %v817_v5  ;;  %v436_v12 = vpop.f32.mrb[1].mxu0 }
 0x16e   :  { %v437_v13 = vadd.f32 %v436_v12, %v307_v6  ;;  %v850_v14 = vpop.f32.mrb[2].mxu0 }
 0x16f   :  { %v1185_v15 = vadd.f32 %v1182_v10, %v445_v11  ;;  %v448_v16 = vadd.f32 %v850_v14, %v818_v7  ;;  %v439_v17 = vpop.f32.mrb[3].mxu0 }
 0x170   :  { %v1188_v18 = vadd.f32 %v1182_v10, %v437_v13  ;;  %v440_v19 = vadd.f32 %v439_v17, %v310_v8 }
 0x171   :  { %526 = vmax.xlane.f32.xlu0 %v1185_v15  ;;  %v1196_v21 = vadd.f32 %v1182_v10, %v448_v16 }
 0x172   :  { %v1192_v20 = vadd.f32 %v1182_v10, %v440_v19  ;;  %522 = vmax.xlane.f32.xlu1 %v1188_v18 }
 0x175   :  { %524 = vmax.xlane.f32.xlu0 %v1192_v20 }
 0x176   :  { %528 = vmax.xlane.f32.xlu1 %v1196_v21 }
 0x178   :  { %v853_v22 = vpop.f32.mrb[4].mxu0 }
 0x179   :  { %v452_v23 = vpop.f32.mrb[5].mxu0 }
 0x17a   :  { %v854_v24 = vpop.f32.mrb[6].mxu0 }
 0x17b   :  { %v455_v25 = vpop.f32.mrb[7].mxu0 }
 0x17d   :  { %v821_v26 = vpop.f32.mrb[4].mxu1 }
 0x17e   :  { %v461_v27 = vadd.f32 %v853_v22, %v821_v26  ;;  %v323_v28 = vpop.f32.mrb[5].mxu1 }
 0x17f   :  { %v453_v29 = vadd.f32 %v452_v23, %v323_v28  ;;  %v822_v30 = vpop.f32.mrb[6].mxu1 }
 0x180   :  { %v1201_v31 = vadd.f32 %v1182_v10, %v461_v27  ;;  %v464_v32 = vadd.f32 %v854_v24, %v822_v30  ;;  %v326_v33 = vpop.f32.mrb[7].mxu1 }
 0x181   :  { %v456_v34 = vadd.f32 %v455_v25, %v326_v33  ;;  %v1208_v36 = vadd.f32 %v1182_v10, %v453_v29 }
 0x182   :  { %v1204_v35 = vadd.f32 %v1182_v10, %v464_v32  ;;  %534 = vmax.xlane.f32.xlu0 %v1201_v31 }
 0x183   :  { %v1212_v37 = vadd.f32 %v1182_v10, %v456_v34 }
 0x184   :  { %536 = vmax.xlane.f32.xlu1 %v1204_v35 }
 0x186   :  { %530 = vmax.xlane.f32.xlu0 %v1208_v36 }
 0x188   :  { %532 = vmax.xlane.f32.xlu1 %v1212_v37 }
 0x190   :  { %v857_v38 = vpop.f32.mrb[8].mxu0 }
 0x191   :  { %v468_v39 = vpop.f32.mrb[9].mxu0 }
 0x192   :  { %v858_v40 = vpop.f32.mrb[10].mxu0 }
 0x193   :  { %v471_v41 = vpop.f32.mrb[11].mxu0 }
 0x195   :  { %v825_v42 = vpop.f32.mrb[8].mxu1 }
 0x196   :  { %v477_v43 = vadd.f32 %v857_v38, %v825_v42  ;;  %v339_v44 = vpop.f32.mrb[9].mxu1 }
 0x197   :  { %v469_v45 = vadd.f32 %v468_v39, %v339_v44  ;;  %v826_v46 = vpop.f32.mrb[10].mxu1 }
 0x198   :  { %v1217_v47 = vadd.f32 %v1182_v10, %v477_v43  ;;  %v480_v48 = vadd.f32 %v858_v40, %v826_v46  ;;  %v342_v49 = vpop.f32.mrb[11].mxu1 }
 0x199   :  { %v472_v50 = vadd.f32 %v471_v41, %v342_v49  ;;  %v1224_v52 = vadd.f32 %v1182_v10, %v469_v45 }
 0x19a   :  { %v1220_v51 = vadd.f32 %v1182_v10, %v480_v48  ;;  %542 = vmax.xlane.f32.xlu0 %v1217_v47 }
 0x19b   :  { %v1228_v53 = vadd.f32 %v1182_v10, %v472_v50 }
 0x19c   :  { %544 = vmax.xlane.f32.xlu1 %v1220_v51 }
 0x19e   :  { %538 = vmax.xlane.f32.xlu0 %v1224_v52 }
 0x1a0   :  { %540 = vmax.xlane.f32.xlu1 %v1228_v53 }
 0x1a8   :  { %v861_v54 = vpop.f32.mrb[12].mxu0 }
 0x1a9   :  { %v484_v55 = vpop.f32.mrb[13].mxu0 }
 0x1aa   :  { %v862_v56 = vpop.f32.mrb[14].mxu0 }
 0x1ab   :  { %v487_v57 = vpop.f32.mrb[15].mxu0 }
 0x1ad   :  { %v829_v58 = vpop.f32.mrb[12].mxu1 }
 0x1ae   :  { %v493_v59 = vadd.f32 %v861_v54, %v829_v58  ;;  %v355_v60 = vpop.f32.mrb[13].mxu1 }
 0x1af   :  { %v485_v61 = vadd.f32 %v484_v55, %v355_v60  ;;  %v830_v62 = vpop.f32.mrb[14].mxu1 }
 0x1b0   :  { %v496_v63 = vadd.f32 %v862_v56, %v830_v62  ;;  %v358_v0 = vpop.f32.mrb[15].mxu1  ;;  %v1240_v4 = vadd.f32 %v1182_v10, %v493_v59 }
 0x1b1   :  { %v1233_v1 = vadd.f32 %v1182_v10, %v485_v61  ;;  %v488_v2 = vadd.f32 %v487_v57, %v358_v0 }
 0x1b2   :  { %v1244_v5 = vadd.f32 %v1182_v10, %v496_v63 }
 0x1b3   :  { %v1236_v3 = vadd.f32 %v1182_v10, %v488_v2  ;;  %546 = vmax.xlane.f32.xlu0 %v1233_v1 }
 0x1b5   :  { %548 = vmax.xlane.f32.xlu1 %v1236_v3 }
 0x1b7   :  { %550 = vmax.xlane.f32.xlu0 %v1240_v4 }
 0x1b9   :  { %552 = vmax.xlane.f32.xlu1 %v1244_v5 }
 0x1fe   :  { %v1248_v6 = vpop.xlane.xlu0 %526 }
 0x1ff   :  { %v556_v7 = vsub.f32 %v1185_v15, %v1248_v6  ;;  %v1252_v8 = vpop.xlane.xlu1 %522 }
 0x200   :  { %v554_v9 = vsub.f32 %v1188_v18, %v1252_v8 }
 0x201   :  { %v574_v11 = vmul.f32 1.442695, %v556_v7 }
 0x202   :  { %v1256_v12 = vpop.xlane.xlu0 %524  ;;  %v570_v10 = vmul.f32 1.442695, %v554_v9 }
 0x203   :  { %924 = vpow2.f32 %v574_v11  ;;  %v1258_v13 = vpop.xlane.xlu1 %528  ;;  %v555_v14 = vsub.f32 %v1192_v20, %v1256_v12 }
 0x204   :  { %v557_v16 = vsub.f32 %v1196_v21, %v1258_v13  ;;  %926 = vpow2.f32 %v570_v10 }
 0x205   :  { %v572_v19 = vmul.f32 1.442695, %v555_v14 }
 0x206   :  { %v576_v17 = vmul.f32 1.442695, %v557_v16 }
 0x208   :  { %928 = vpow2.f32 %v576_v17 }
 0x209   :  { %930 = vpow2.f32 %v572_v19 }
 0x20d   :  { %v925_v22 = vpop.eup %924 }
 0x20e   :  { %606 = vadd.xlane.f32.xlu0 %v925_v22  ;;  %v927_v25 = vpop.eup %926 }
 0x20f   :  { %v1264_v23 = vpop.xlane.xlu0 %534 }
 0x210   :  { %v560_v24 = vsub.f32 %v1201_v31, %v1264_v23 }
 0x211   :  { %v1268_v26 = vpop.xlane.xlu1 %536 }
 0x212   :  { %v929_v27 = vpop.eup %928  ;;  %v582_v28 = vmul.f32 1.442695, %v560_v24  ;;  %v561_v29 = vsub.f32 %v1204_v35, %v1268_v26  ;;  %602 = vadd.xlane.f32.xlu0 %v927_v25 }
 0x213   :  { %v1272_v30 = vpop.xlane.xlu0 %530  ;;  %608 = vadd.xlane.f32.xlu1 %v929_v27  ;;  %v931_v38 = vpop.eup %930 }
 0x214   :  { %932 = vpow2.f32 %v582_v28  ;;  %v584_v32 = vmul.f32 1.442695, %v561_v29  ;;  %v558_v33 = vsub.f32 %v1208_v36, %v1272_v30 }
 0x215   :  { %v1276_v34 = vpop.xlane.xlu1 %532 }
 0x216   :  { %934 = vpow2.f32 %v584_v32  ;;  %v578_v39 = vmul.f32 1.442695, %v558_v33  ;;  %v559_v40 = vsub.f32 %v1212_v37, %v1276_v34 }
 0x217   :  { %604 = vadd.xlane.f32.xlu1 %v931_v38 }
 0x218   :  { %936 = vpow2.f32 %v578_v39  ;;  %v580_v41 = vmul.f32 1.442695, %v559_v40 }
 0x21a   :  { %938 = vpow2.f32 %v580_v41 }
 0x21e   :  { %v933_v42 = vpop.eup %932 }
 0x21f   :  { %614 = vadd.xlane.f32.xlu0 %v933_v42 }
 0x220   :  { %v935_v43 = vpop.eup %934 }
 0x221   :  { %616 = vadd.xlane.f32.xlu1 %v935_v43 }
 0x222   :  { %v937_v44 = vpop.eup %936 }
 0x223   :  { %610 = vadd.xlane.f32.xlu0 %v937_v44 }
 0x224   :  { %v939_v45 = vpop.eup %938 }
 0x225   :  { %612 = vadd.xlane.f32.xlu1 %v939_v45 }
 0x227   :  { %v1280_v46 = vpop.xlane.xlu0 %542 }
 0x228   :  { %v564_v48 = vsub.f32 %v1217_v47, %v1280_v46 }
 0x229   :  { %v1284_v49 = vpop.xlane.xlu1 %544 }
 0x22a   :  { %v590_v50 = vmul.f32 1.442695, %v564_v48  ;;  %v565_v54 = vsub.f32 %v1220_v51, %v1284_v49 }
 0x22b   :  { %v1288_v55 = vpop.xlane.xlu0 %538 }
 0x22c   :  { %940 = vpow2.f32 %v590_v50  ;;  %v592_v56 = vmul.f32 1.442695, %v565_v54  ;;  %v562_v57 = vsub.f32 %v1224_v52, %v1288_v55 }
 0x22d   :  { %v1292_v58 = vpop.xlane.xlu1 %540 }
 0x22e   :  { %942 = vpow2.f32 %v592_v56  ;;  %v586_v59 = vmul.f32 1.442695, %v562_v57  ;;  %v563_v60 = vsub.f32 %v1228_v53, %v1292_v58 }
 0x230   :  { %944 = vpow2.f32 %v586_v59  ;;  %v588_v61 = vmul.f32 1.442695, %v563_v60 }
 0x232   :  { %946 = vpow2.f32 %v588_v61 }
 0x236   :  { %v941_v62 = vpop.eup %940 }
 0x237   :  { %622 = vadd.xlane.f32.xlu0 %v941_v62 }
 0x238   :  { %v943_v63 = vpop.eup %942 }
 0x239   :  { %624 = vadd.xlane.f32.xlu1 %v943_v63 }
 0x23a   :  { %v945_v0 = vpop.eup %944 }
 0x23b   :  { %618 = vadd.xlane.f32.xlu0 %v945_v0 }
 0x23c   :  { %v947_v2 = vpop.eup %946 }
 0x23d   :  { %620 = vadd.xlane.f32.xlu1 %v947_v2 }
 0x240   :  { %v1296_v7 = vpop.xlane.xlu0 %546 }
 0x241   :  { %v566_v9 = vsub.f32 %v1233_v1, %v1296_v7 }
 0x242   :  { %v1300_v11 = vpop.xlane.xlu1 %548 }
 0x243   :  { %v594_v10 = vmul.f32 1.442695, %v566_v9  ;;  %v567_v14 = vsub.f32 %v1236_v3, %v1300_v11 }
 0x244   :  { %v1304_v16 = vpop.xlane.xlu0 %550 }
 0x245   :  { %948 = vpow2.f32 %v594_v10  ;;  %v596_v17 = vmul.f32 1.442695, %v567_v14  ;;  %v568_v19 = vsub.f32 %v1240_v4, %v1304_v16 }
 0x246   :  { %v1308_v22 = vpop.xlane.xlu1 %552 }
 0x247   :  { %950 = vpow2.f32 %v596_v17  ;;  %v598_v24 = vmul.f32 1.442695, %v568_v19  ;;  %v569_v25 = vsub.f32 %v1244_v5, %v1308_v22 }
 0x249   :  { %952 = vpow2.f32 %v598_v24  ;;  %v600_v27 = vmul.f32 1.442695, %v569_v25 }
 0x24b   :  { %954 = vpow2.f32 %v600_v27 }
 0x24f   :  { %v949_v28 = vpop.eup %948 }
 0x250   :  { %626 = vadd.xlane.f32.xlu0 %v949_v28 }
 0x251   :  { %v951_v29 = vpop.eup %950 }
 0x252   :  { %628 = vadd.xlane.f32.xlu1 %v951_v29 }
 0x253   :  { %v953_v32 = vpop.eup %952 }
 0x254   :  { %630 = vadd.xlane.f32.xlu0 %v953_v32 }
 0x255   :  { %v955_v33 = vpop.eup %954 }
 0x256   :  { %632 = vadd.xlane.f32.xlu1 %v955_v33 }
 0x29b   :  { %v607_v38 = vpop.xlane.xlu0 %606 }
 0x29c   :  { %956 = vlog2.f32 %v607_v38 }
 0x29f   :  { %v603_v39 = vpop.xlane.xlu0 %602 }
 0x2a0   :  { %958 = vlog2.f32 %v603_v39  ;;  %v609_v40 = vpop.xlane.xlu1 %608 }
 0x2a1   :  { %960 = vlog2.f32 %v609_v40 }
 0x2a4   :  { %v605_v41 = vpop.xlane.xlu1 %604 }
 0x2a5   :  { %962 = vlog2.f32 %v605_v41 }
 0x2a6   :  { %v957_v42 = vpop.eup %956 }
 0x2a7   :  { %v639_v43 = vmul.f32 0.6931472, %v957_v42 }
 0x2a9   :  { %v668_v44 = vadd.f32 %v639_v43, %v1248_v6 }
 0x2aa   :  { %v959_v45 = vpop.eup %958 }
 0x2ab   :  { %v961_v48 = vpop.eup %960  ;;  %v684_v50 = vsub.f32 %v1185_v15, %v668_v44  ;;  %v635_v54 = vmul.f32 0.6931472, %v959_v45 }
 0x2ac   :  { %v641_v56 = vmul.f32 0.6931472, %v961_v48  ;;  %v615_v57 = vpop.xlane.xlu0 %614 }
 0x2ad   :  { %700 = vst [vmem:[%s1395_s3 + $0x10] sm:$0xff] %v684_v50  ;;  %v666_v59 = vadd.f32 %v635_v54, %v1252_v8  ;;  %964 = vlog2.f32 %v615_v57 }
 0x2ae   :  { %v669_v60 = vadd.f32 %v641_v56, %v1258_v13  ;;  %v617_v61 = vpop.xlane.xlu1 %616 }
 0x2af   :  { %v963_v62 = vpop.eup %962  ;;  %v682_v6 = vsub.f32 %v1188_v18, %v666_v59  ;;  %966 = vlog2.f32 %v617_v61 }
 0x2b0   :  { %v685_v63 = vsub.f32 %v1196_v21, %v669_v60  ;;  %v637_v15 = vmul.f32 0.6931472, %v963_v62  ;;  %v611_v0 = vpop.xlane.xlu0 %610 }
 0x2b1   :  { %698 = vst [vmem:[%s1395_s3] sm:$0xff] %v682_v6  ;;  %968 = vlog2.f32 %v611_v0 }
 0x2b2   :  { %701 = vst [vmem:[%s1395_s3 + $0x18] sm:$0xff] %v685_v63  ;;  %v667_v8 = vadd.f32 %v637_v15, %v1256_v12  ;;  %v613_v13 = vpop.xlane.xlu1 %612 }
 0x2b3   :  { %970 = vlog2.f32 %v613_v13 }
 0x2b4   :  { %v683_v18 = vsub.f32 %v1192_v20, %v667_v8 }
 0x2b6   :  { %699 = vst [vmem:[%s1395_s3 + $0x8] sm:$0xff] %v683_v18 }
 0x2b7   :  { %v965_v21 = vpop.eup %964 }
 0x2b8   :  { %v647_v2 = vmul.f32 0.6931472, %v965_v21 }
 0x2b9   :  { %v967_v9 = vpop.eup %966 }
 0x2ba   :  { %v672_v10 = vadd.f32 %v647_v2, %v1264_v23  ;;  %v649_v14 = vmul.f32 0.6931472, %v967_v9 }
 0x2bb   :  { %v969_v17 = vpop.eup %968 }
 0x2bc   :  { %v688_v19 = vsub.f32 %v1201_v31, %v672_v10  ;;  %v673_v24 = vadd.f32 %v649_v14, %v1268_v26  ;;  %v643_v12 = vmul.f32 0.6931472, %v969_v17 }
 0x2bd   :  { %v971_v25 = vpop.eup %970 }
 0x2be   :  { %704 = vst [vmem:[%s1395_s3 + $0x30] sm:$0xff] %v688_v19  ;;  %v689_v20 = vsub.f32 %v1204_v35, %v673_v24  ;;  %v670_v27 = vadd.f32 %v643_v12, %v1272_v30  ;;  %v645_v28 = vmul.f32 0.6931472, %v971_v25 }
 0x2c0   :  { %705 = vst [vmem:[%s1395_s3 + $0x38] sm:$0xff] %v689_v20  ;;  %v686_v23 = vsub.f32 %v1208_v36, %v670_v27  ;;  %v671_v31 = vadd.f32 %v645_v28, %v1276_v34 }
 0x2c2   :  { %702 = vst [vmem:[%s1395_s3 + $0x20] sm:$0xff] %v686_v23  ;;  %v687_v26 = vsub.f32 %v1212_v37, %v671_v31 }
 0x2c4   :  { %703 = vst [vmem:[%s1395_s3 + $0x28] sm:$0xff] %v687_v26  ;;  %v623_v35 = vpop.xlane.xlu0 %622 }
 0x2c5   :  { %972 = vlog2.f32 %v623_v35 }
 0x2c6   :  { %v625_v30 = vpop.xlane.xlu1 %624 }
 0x2c7   :  { %974 = vlog2.f32 %v625_v30 }
 0x2c8   :  { %v619_v29 = vpop.xlane.xlu0 %618 }
 0x2c9   :  { %976 = vlog2.f32 %v619_v29 }
 0x2ca   :  { %v621_v32 = vpop.xlane.xlu1 %620 }
 0x2cb   :  { %978 = vlog2.f32 %v621_v32 }
 0x2cf   :  { %v973_v36 = vpop.eup %972 }
 0x2d0   :  { %v655_v34 = vmul.f32 0.6931472, %v973_v36 }
 0x2d1   :  { %v975_v33 = vpop.eup %974 }
 0x2d2   :  { %v676_v38 = vadd.f32 %v655_v34, %v1280_v46  ;;  %v657_v39 = vmul.f32 0.6931472, %v975_v33 }
 0x2d3   :  { %v977_v40 = vpop.eup %976 }
 0x2d4   :  { %v692_v37 = vsub.f32 %v1217_v47, %v676_v38  ;;  %v677_v41 = vadd.f32 %v657_v39, %v1284_v49  ;;  %v651_v42 = vmul.f32 0.6931472, %v977_v40 }
 0x2d5   :  { %v979_v43 = vpop.eup %978 }
 0x2d6   :  { %708 = vst [vmem:[%s1395_s3 + $0x50] sm:$0xff] %v692_v37  ;;  %v693_v44 = vsub.f32 %v1220_v51, %v677_v41  ;;  %v674_v45 = vadd.f32 %v651_v42, %v1288_v55  ;;  %v653_v48 = vmul.f32 0.6931472, %v979_v43 }
 0x2d8   :  { %709 = vst [vmem:[%s1395_s3 + $0x58] sm:$0xff] %v693_v44  ;;  %v690_v46 = vsub.f32 %v1224_v52, %v674_v45  ;;  %v675_v47 = vadd.f32 %v653_v48, %v1292_v58 }
 0x2da   :  { %706 = vst [vmem:[%s1395_s3 + $0x40] sm:$0xff] %v690_v46  ;;  %v691_v49 = vsub.f32 %v1228_v53, %v675_v47 }
 0x2dc   :  { %707 = vst [vmem:[%s1395_s3 + $0x48] sm:$0xff] %v691_v49 }
 0x2dd   :  { %v627_v51 = vpop.xlane.xlu0 %626 }
 0x2de   :  { %980 = vlog2.f32 %v627_v51 }
 0x2df   :  { %v629_v55 = vpop.xlane.xlu1 %628 }
 0x2e0   :  { %982 = vlog2.f32 %v629_v55 }
 0x2e1   :  { %v631_v50 = vpop.xlane.xlu0 %630 }
 0x2e2   :  { %984 = vlog2.f32 %v631_v50 }
 0x2e3   :  { %v633_v54 = vpop.xlane.xlu1 %632 }
 0x2e4   :  { %986 = vlog2.f32 %v633_v54 }
 0x2e8   :  { %v981_v52 = vpop.eup %980 }
 0x2e9   :  { %v659_v58 = vmul.f32 0.6931472, %v981_v52 }
 0x2ea   :  { %v983_v56 = vpop.eup %982 }
 0x2eb   :  { %v678_v57 = vadd.f32 %v659_v58, %v1296_v7  ;;  %v661_v59 = vmul.f32 0.6931472, %v983_v56 }
 0x2ec   :  { %v985_v60 = vpop.eup %984 }
 0x2ed   :  { %v694_v53 = vsub.f32 %v1233_v1, %v678_v57  ;;  %v679_v61 = vadd.f32 %v661_v59, %v1300_v11  ;;  %v663_v62 = vmul.f32 0.6931472, %v985_v60 }
 0x2ee   :  { %v987_v6 = vpop.eup %986 }
 0x2ef   :  { %710 = vst [vmem:[%s1395_s3 + $0x60] sm:$0xff] %v694_v53  ;;  %v695_v63 = vsub.f32 %v1236_v3, %v679_v61  ;;  %v680_v15 = vadd.f32 %v663_v62, %v1304_v16  ;;  %v665_v0 = vmul.f32 0.6931472, %v987_v6 }
 0x2f1   :  { %711 = vst [vmem:[%s1395_s3 + $0x68] sm:$0xff] %v695_v63  ;;  %v696_v7 = vsub.f32 %v1240_v4, %v680_v15  ;;  %v681_v1 = vadd.f32 %v665_v0, %v1308_v22 }
 0x2f3   :  { %712 = vst [vmem:[%s1395_s3 + $0x70] sm:$0xff] %v696_v7  ;;  %v697_v11 = vsub.f32 %v1244_v5, %v681_v1 }
 0x2f5   :  { %713 = vst [vmem:[%s1395_s3 + $0x78] sm:$0xff] %v697_v11 }

</bundles_post_ra>
